<compile_context>
chip_gen: v7x
topology: tpu7x:2x2x1
jax: 0.10.0
libtpu: 0.0.40
codegen_flags: <defaults>
</compile_context>

<pallas_src>
import functools

import jax
import jax.numpy as jnp
from jax.experimental import pallas as pl
from jax.experimental.pallas import tpu as pltpu


def _vq_argmin_kernel(x_ref, cbt_ref, cbsq_ref, idx_ref, *, matmul_dtype):
    """One tile of tokens vs the full (resident) codebook.

    x_ref   : (TM, C)     f32  token tile
    cbt_ref : (C,  K)     f32  codebook, pre-transposed in the wrapper (resident)
    cbsq_ref: (1,  K)     f32  per-code ||e||^2, precomputed in the wrapper (resident)
    idx_ref : (1, 1, TM)  i32  lane-dense argmin indices for this tile
    """
    x = x_ref[...]
    cbt = cbt_ref[...]
    if matmul_dtype != jnp.float32:
        # Optional bf16 distance matmul (2-4x MXU on v6e/v7x for large K/D).
        # Only the argmin depends on this matmul, so bf16 rounding only matters
        # for near-ties.
        x = x.astype(matmul_dtype)
        cbt = cbt.astype(matmul_dtype)

    # score = ||e||^2 - 2 x.e ; identical argmin to the full squared distance
    # (the dropped ||x||^2 is constant per token row).
    dots = jnp.dot(x, cbt, preferred_element_type=jnp.float32)   # (TM, K)  MXU
    score = cbsq_ref[...] - 2.0 * dots                           # (TM, K)  VPU

    idx = jnp.argmin(score, axis=-1).astype(jnp.int32)           # (TM,)
    idx_ref[...] = idx.reshape(idx_ref.shape)                    # lane-dense store


def euclidean_codebook_forward(x, codebook, *, tm=512, matmul_dtype=jnp.float32):
    """Pallas forward of EuclideanCodebook.

    x        : (B, ..., C) float, channels-last (as in the PyTorch module)
    codebook : (K, C) float embedding weight
    returns  : (quantized (B, prod(...), C) float32, embed_idx (B, prod(...)) int32)
    """
    x = x.astype(jnp.float32)
    codebook = codebook.astype(jnp.float32)

    b = x.shape[0]
    c = x.shape[-1]
    k, d = codebook.shape
    assert d == c, "codebook embedding_dim must match the channel dim of x"

    n_tok = 1
    for s in x.shape[1:-1]:
        n_tok *= s
    tokens = x.reshape(b * n_tok, c)
    n = tokens.shape[0]

    assert tm % 8 == 0, "tm must be a multiple of 8 (sublane granularity)"
    tm = max(8, min(int(tm), pl.cdiv(n, 8) * 8))      # never bigger than needed
    g = pl.cdiv(n, tm)
    n_pad = g * tm
    if n_pad != n:
        # Pad tokens up to a whole number of tiles; padded rows are discarded.
        tokens = jnp.pad(tokens, ((0, n_pad - n), (0, 0)))

    # Hoisted out of the kernel (review): codebook transpose + ||e||^2 reduce
    # are done once here instead of on the XLU every grid step.
    cb_t = codebook.T                                          # (C, K)
    cb_sq = jnp.sum(codebook * codebook, axis=-1)[None, :]     # (1, K)

    idx3 = pl.pallas_call(
        functools.partial(_vq_argmin_kernel, matmul_dtype=matmul_dtype),
        out_shape=jax.ShapeDtypeStruct((g, 1, tm), jnp.int32),
        grid=(g,),
        in_specs=[
            pl.BlockSpec((tm, c), lambda i: (i, 0)),   # token tile
            pl.BlockSpec((c, k), lambda i: (0, 0)),    # resident transposed codebook
            pl.BlockSpec((1, k), lambda i: (0, 0)),    # resident ||e||^2
        ],
        out_specs=pl.BlockSpec((1, 1, tm), lambda i: (i, 0, 0)),  # lane-dense idx
        compiler_params=pltpu.CompilerParams(
            # No cross-step state -> safe to shard the grid across TensorCores
            # (2x on v7x megacore; no effect on single-TC v5e/v6e).
            dimension_semantics=("parallel",),
            # Explicit scoped-VMEM budget, valid on v5e/v6e/v7x.
            vmem_limit_bytes=32 * 1024 * 1024,
        ),
    )(tokens, cb_t, cb_sq)

    embed_idx = idx3.reshape(n_pad)[:n].reshape(b, n_tok)

    # one_hot(idx) @ codebook == exact row gather of the codebook; doing it as
    # an XLA gather here avoids a lane-sparse (tm, C) store and a second MXU
    # matmul inside the kernel (perf-review option (a)).
    quantized = codebook[embed_idx.reshape(-1)].reshape(b, n_tok, c)
    return quantized, embed_idx


if __name__ == "__main__":
    # Small shapes consistent with the module: channels-last x (b, h, w, c).
    embedding_dim = 32      # C
    num_embeddings = 64     # K
    b, h, w = 2, 16, 16     # N = 2*16*16 = 512 tokens

    key = jax.random.PRNGKey(0)
    kx, kcb = jax.random.split(key)
    x = jax.random.normal(kx, (b, h, w, embedding_dim), dtype=jnp.float32)
    # nn.Embedding init used by the module: uniform(-1/K, 1/K)
    codebook = jax.random.uniform(
        kcb, (num_embeddings, embedding_dim), dtype=jnp.float32,
        minval=-1.0 / num_embeddings, maxval=1.0 / num_embeddings)

    # Pure-JAX reference scores (same expansion; dropped ||x||^2 is a per-row
    # constant and cannot change the argmin).
    xt = x.reshape(-1, embedding_dim)
    score_ref = (jnp.sum(codebook ** 2, axis=-1)[None, :]
                 - 2.0 * xt @ codebook.T)                      # (N, K)
    best_score = jnp.min(score_ref, axis=-1)                   # (N,)

    def check(quantized, embed_idx):
        assert embed_idx.shape == (b, h * w) and embed_idx.dtype == jnp.int32
        assert quantized.shape == (b, h * w, embedding_dim)
        idx_flat = embed_idx.reshape(-1)
        # quantized rows are exactly the selected codebook rows (== one_hot @ W)
        assert bool(jnp.all(quantized.reshape(-1, embedding_dim)
                            == codebook[idx_flat]))
        # the selected code achieves the minimal euclidean distance
        # (tolerance covers fp near-ties between kernel and XLA matmuls)
        chosen = jnp.take_along_axis(score_ref, idx_flat[:, None], axis=1)[:, 0]
        assert bool(jnp.all(chosen - best_score <= 1e-5))

    # Preferred config for small N: one big tile -> grid=(1,)
    q1, i1 = euclidean_codebook_forward(x, codebook)            # tm=512
    jax.block_until_ready((q1, i1))
    check(q1, i1)

    # Also exercise the multi-tile ("parallel") grid path: 4 steps of 128 tokens.
    q2, i2 = euclidean_codebook_forward(x, codebook, tm=128)
    jax.block_until_ready((q2, i2))
    check(q2, i2)

    # TODO(synk): decay/eps (EMA codebook update) and kmeans_init are training-time
    # state updates not part of this forward pass; not implemented here.
    print("KERNEL_OK")
</pallas_src>

<mosaic_0001>
module attributes {stable_mosaic.version = 11 : i64} {
  func.func @_vq_argmin_kernel(%arg0: i32, %arg1: memref<512x32xf32, #tpu.memory_space<vmem>>, %arg2: memref<32x64xf32, #tpu.memory_space<vmem>>, %arg3: memref<1x64xf32, #tpu.memory_space<vmem>>, %arg4: memref<1x1x512xi32, #tpu.memory_space<vmem>>) attributes {dimension_semantics = [#tpu.dimension_semantics<parallel>], iteration_bounds = array<i64: 1>, scalar_prefetch = 0 : i64, scratch_operands = 0 : i64, tpu.core_type = #tpu.core_type<tc>, window_params = [{transform_indices = @transform_0, window_bounds = array<i64: 512, 32>}, {pipeline_mode = #tpu.pipeline_mode<synchronous>, transform_indices = @transform_1, window_bounds = array<i64: 32, 64>}, {pipeline_mode = #tpu.pipeline_mode<synchronous>, transform_indices = @transform_2, window_bounds = array<i64: 1, 64>}, {transform_indices = @transform_3, window_bounds = array<i64: 1, 1, 512>}]} {
    %c0 = arith.constant 0 : index
    %c0_0 = arith.constant 0 : index
    %0 = vector.load %arg1[%c0, %c0_0] : memref<512x32xf32, #tpu.memory_space<vmem>>, vector<512x32xf32>
    %c0_1 = arith.constant 0 : index
    %c0_2 = arith.constant 0 : index
    %1 = vector.load %arg2[%c0_1, %c0_2] : memref<32x64xf32, #tpu.memory_space<vmem>>, vector<32x64xf32>
    %cst = arith.constant dense<0.000000e+00> : vector<512x64xf32>
    %2 = tpu.matmul %0, %1, %cst {dimension_numbers = #tpu.dot_dimension_numbers<[1], [0], [0], [1], [0, 0, 1, 1], [], []>} : vector<512x32xf32>, vector<32x64xf32>, vector<512x64xf32> -> vector<512x64xf32>
    %c0_3 = arith.constant 0 : index
    %c0_4 = arith.constant 0 : index
    %3 = vector.load %arg3[%c0_3, %c0_4] : memref<1x64xf32, #tpu.memory_space<vmem>>, vector<1x64xf32>
    %cst_5 = arith.constant 2.000000e+00 : f32
    %4 = vector.broadcast %cst_5 : f32 to vector<512x64xf32>
    %5 = arith.mulf %4, %2 : vector<512x64xf32>
    %6 = vector.broadcast %3 : vector<1x64xf32> to vector<512x64xf32>
    %7 = arith.subf %6, %5 : vector<512x64xf32>
    %8 = tpu.reduce_index %7 {axis = 1 : i32, kind = #tpu.reduction_kind<arg_min>} : vector<512x64xf32> -> vector<512xi32>
    %9 = vector.shape_cast %8 : vector<512xi32> to vector<1x1x512xi32>
    %c0_6 = arith.constant 0 : index
    %c0_7 = arith.constant 0 : index
    %c0_8 = arith.constant 0 : index
    %10 = vector.load %arg4[%c0_6, %c0_7, %c0_8] : memref<1x1x512xi32, #tpu.memory_space<vmem>>, vector<1x1x512xi32>
    tpu.vector_store %arg4[%c0_6, %c0_7, %c0_8], %9 {strides = array<i32>} : memref<1x1x512xi32, #tpu.memory_space<vmem>>, vector<1x1x512xi32>,
    return
  }
  func.func @transform_0(%arg0: i32) -> (i32, i32) {
    %c0_i32 = arith.constant 0 : i32
    %c0_i32_0 = arith.constant 0 : i32
    return %arg0, %c0_i32 : i32, i32
  }
  func.func @transform_1(%arg0: i32) -> (i32, i32) {
    %c0_i32 = arith.constant 0 : i32
    %c0_i32_0 = arith.constant 0 : i32
    %c0_i32_1 = arith.constant 0 : i32
    return %c0_i32, %c0_i32_0 : i32, i32
  }
  func.func @transform_2(%arg0: i32) -> (i32, i32) {
    %c0_i32 = arith.constant 0 : i32
    %c0_i32_0 = arith.constant 0 : i32
    %c0_i32_1 = arith.constant 0 : i32
    return %c0_i32, %c0_i32_0 : i32, i32
  }
  func.func @transform_3(%arg0: i32) -> (i32, i32, i32) {
    %c0_i32 = arith.constant 0 : i32
    %c0_i32_0 = arith.constant 0 : i32
    %c0_i32_1 = arith.constant 0 : i32
    return %arg0, %c0_i32, %c0_i32_0 : i32, i32, i32
  }
}

</mosaic_0001>

<bundles_post_ra>
// kernel: tpu_custom_call.1
= control target key start
LH: loop header
LB: loop body
LE: loop exit
PB: predicated region body
PF: predicated region fallthrough
CT: control target
= control target key end

     0   :  { %vm83_vm0 = vcmask 261120   ;;  %s9021_s0 = inlined_call_operand.vmem [shape: f32[512,32], index: 0, kind: input, shape index: {}]   ;;  %s9022_s1 = inlined_call_operand.vmem [shape: f32[32,64], index: 1, kind: input, shape index: {}]   ;;  %s9023_s2 = inlined_call_operand.vmem [shape: f32[1,64], index: 2, kind: input, shape index: {}]   ;;  %s9024_s3 = inlined_call_operand.hbm [shape: s32[1,1,512], index: 3, kind: output, shape index: {}]  }
   0x1   :  { %v79_v0 = vld [vmem:[%s9022_s1] sm:$0xff]  ;;  %v80_v1 = vld [vmem:[%s9022_s1 + $0x8] sm:$0xff]  ;;  %v81_v2 = vld [vmem:[%s9022_s1 + $0x10] sm:$0xff] }
   0x2   :  { %v6993_v3 = vpack.c.bf16 %v80_v1, %v79_v0  ;;  %v82_v4 = vld [vmem:[%s9022_s1 + $0x18] sm:$0xff]  ;;  %v15_v5 = vld [vmem:[%s9021_s0] sm:$0xff]  ;;  %v16_v8 = vld [vmem:[%s9021_s0 + $0x8] sm:$0xff] }
   0x3   :  { %v47_v6 = vld [vmem:[%s9021_s0 + $0x100] sm:$0xff]  ;;  %v6997_v7 = vpack.c.bf16 %v82_v4, %v81_v2  ;;  %6897 = vmatprep.mubr.msk.f32.mxu0 %vm83_vm0, %v15_v5  ;;  %v48_v9 = vld [vmem:[%s9021_s0 + $0x108] sm:$0xff]  ;;  %v17_v10 = vld [vmem:[%s9021_s0 + $0x10] sm:$0xff] }
   0x4   :  { %6945 = vmatprep.mubr.msk.f32.mxu1 %vm83_vm0, %v47_v6  ;;  %6994 = vmatprep.subr.bf16.mxu0 %v6993_v3  ;;  %v49_v11 = vld [vmem:[%s9021_s0 + $0x110] sm:$0xff]  ;;  %v18_v12 = vld [vmem:[%s9021_s0 + $0x18] sm:$0xff]  ;;  %v19_v14 = vld [vmem:[%s9021_s0 + $0x20] sm:$0xff] }
   0x5   :  { %7001 = vmatprep.subr.bf16.mxu1 %v6993_v3  ;;  %6996 = vmatpush3.bf16.msra.mxu0 %v6993_v3  ;;  %v50_v13 = vld [vmem:[%s9021_s0 + $0x118] sm:$0xff]  ;;  %v51_v15 = vld [vmem:[%s9021_s0 + $0x120] sm:$0xff]  ;;  %v20_v16 = vld [vmem:[%s9021_s0 + $0x28] sm:$0xff] }
   0x6   :  { %7003 = vmatpush3.bf16.msra.mxu1 %v6993_v3  ;;  %6998 = vmatprep.subr.bf16.mxu0 %v6997_v7  ;;  %v52_v17 = vld [vmem:[%s9021_s0 + $0x128] sm:$0xff]  ;;  %v21_v18 = vld [vmem:[%s9021_s0 + $0x30] sm:$0xff]  ;;  %v22_v20 = vld [vmem:[%s9021_s0 + $0x38] sm:$0xff] }
   0x7   :  { %7002 = vmatprep.subr.bf16.mxu1 %v6997_v7  ;;  %v53_v19 = vld [vmem:[%s9021_s0 + $0x130] sm:$0xff]  ;;  %v54_v21 = vld [vmem:[%s9021_s0 + $0x138] sm:$0xff]  ;;  %v23_v22 = vld [vmem:[%s9021_s0 + $0x40] sm:$0xff] }
   0x8   :  { %v55_v23 = vld [vmem:[%s9021_s0 + $0x140] sm:$0xff] }
   0x9   :  { %7000 = vmatpush3.bf16.msra.mxu0 %v6997_v7 }
   0xa   :  { %7004 = vmatpush3.bf16.msra.mxu1 %v6997_v7 }
   0xc   :  { %6898 = vmatmul.mubr.msk.f32.vlgmr.msra.gmra.mrb[0].mxu0 %vm83_vm0, %v16_v8 }
   0xd   :  { %6946 = vmatmul.mubr.msk.f32.vlgmr.msra.gmra.mrb[0].mxu1 %vm83_vm0, %v48_v9  ;;  %6900 = vmatprep.mubr.msk.f32.mxu0 %vm83_vm0, %v17_v10 }
   0xe   :  { %6948 = vmatprep.mubr.msk.f32.mxu1 %vm83_vm0, %v49_v11 }
  0x10   :  { %6901 = vmatmul.mubr.msk.f32.gmra.mrb[2].mxu0 %vm83_vm0, %v18_v12 }
  0x11   :  { %6949 = vmatmul.mubr.msk.f32.gmra.mrb[2].mxu1 %vm83_vm0, %v50_v13  ;;  %6903 = vmatprep.mubr.msk.f32.mxu0 %vm83_vm0, %v19_v14 }
  0x12   :  { %6951 = vmatprep.mubr.msk.f32.mxu1 %vm83_vm0, %v51_v15 }
  0x14   :  { %6904 = vmatmul.mubr.msk.f32.gmra.mrb[4].mxu0 %vm83_vm0, %v20_v16 }
  0x15   :  { %6952 = vmatmul.mubr.msk.f32.gmra.mrb[4].mxu1 %vm83_vm0, %v52_v17  ;;  %6906 = vmatprep.mubr.msk.f32.mxu0 %vm83_vm0, %v21_v18 }
  0x16   :  { %6954 = vmatprep.mubr.msk.f32.mxu1 %vm83_vm0, %v53_v19 }
  0x17   :  { %8 = vsyncpa [#allocation3], 0  ;;  %v24_v24 = vld [vmem:[%s9021_s0 + $0x48] sm:$0xff]  ;;  %v25_v26 = vld [vmem:[%s9021_s0 + $0x50] sm:$0xff]  ;;  %vm796_vm1 = vcmask 523264   ;;  %vm6376_vm2 = vcmask 130112  }
  0x18   :  { %6907 = vmatmul.mubr.msk.f32.gmra.mrb[6].mxu0 %vm83_vm0, %v22_v20  ;;  %v56_v25 = vld [vmem:[%s9021_s0 + $0x148] sm:$0xff]  ;;  %v57_v27 = vld [vmem:[%s9021_s0 + $0x150] sm:$0xff]  ;;  %v26_v28 = vld [vmem:[%s9021_s0 + $0x58] sm:$0xff]  ;;  %vm6383_vm3 = vcmask 195712   ;;  %vm6390_vm4 = vcmask 261312   ;;  %vm6397_vm5 = vcmask 326912  }
  0x19   :  { %6955 = vmatmul.mubr.msk.f32.gmra.mrb[6].mxu1 %vm83_vm0, %v54_v21  ;;  %6909 = vmatprep.mubr.msk.f32.mxu0 %vm83_vm0, %v23_v22  ;;  %v58_v29 = vld [vmem:[%s9021_s0 + $0x158] sm:$0xff]  ;;  %v27_v30 = vld [vmem:[%s9021_s0 + $0x60] sm:$0xff]  ;;  %v28_v32 = vld [vmem:[%s9021_s0 + $0x68] sm:$0xff]  ;;  %vm6404_vm6 = vcmask 392512   ;;  %vm6411_vm7 = vcmask 458112   ;;  %vm6418_vm8 = vcmask 523712  }
  0x1a   :  { %6957 = vmatprep.mubr.msk.f32.mxu1 %vm83_vm0, %v55_v23  ;;  %v59_v31 = vld [vmem:[%s9021_s0 + $0x160] sm:$0xff]  ;;  %v60_v33 = vld [vmem:[%s9021_s0 + $0x168] sm:$0xff]  ;;  %v29_v34 = vld [vmem:[%s9021_s0 + $0x70] sm:$0xff]  ;;  %vm6425_vm9 = vcmask 589312   ;;  %vm6432_vm10 = vcmask 654912   ;;  %vm6439_vm11 = vcmask 720512  }
  0x1b   :  { %v61_v35 = vld [vmem:[%s9021_s0 + $0x170] sm:$0xff]  ;;  %v30_v36 = vld [vmem:[%s9021_s0 + $0x78] sm:$0xff]  ;;  %v31_v38 = vld [vmem:[%s9021_s0 + $0x80] sm:$0xff]  ;;  %vm6446_vm12 = vcmask 786112   ;;  %vm6453_vm13 = vcmask 851712   ;;  %vm6460_vm14 = vcmask 917312  }
  0x1c   :  { %6910 = vmatmul.mubr.msk.f32.gmra.mrb[8].mxu0 %vm83_vm0, %v24_v24  ;;  %v62_v37 = vld [vmem:[%s9021_s0 + $0x178] sm:$0xff]  ;;  %v63_v39 = vld [vmem:[%s9021_s0 + $0x180] sm:$0xff]  ;;  %v32_v40 = vld [vmem:[%s9021_s0 + $0x88] sm:$0xff]  ;;  %vm6467_vm15 = vcmask 982912  }
  0x1d   :  { %6958 = vmatmul.mubr.msk.f32.gmra.mrb[8].mxu1 %vm83_vm0, %v56_v25  ;;  %6912 = vmatprep.mubr.msk.f32.mxu0 %vm83_vm0, %v25_v26  ;;  %v64_v41 = vld [vmem:[%s9021_s0 + $0x188] sm:$0xff]  ;;  %v33_v42 = vld [vmem:[%s9021_s0 + $0x90] sm:$0xff]  ;;  %v34_v44 = vld [vmem:[%s9021_s0 + $0x98] sm:$0xff] }
  0x1e   :  { %6960 = vmatprep.mubr.msk.f32.mxu1 %vm83_vm0, %v57_v27  ;;  %v65_v43 = vld [vmem:[%s9021_s0 + $0x190] sm:$0xff]  ;;  %v66_v45 = vld [vmem:[%s9021_s0 + $0x198] sm:$0xff]  ;;  %v35_v46 = vld [vmem:[%s9021_s0 + $0xa0] sm:$0xff] }
  0x1f   :  { %v67_v47 = vld [vmem:[%s9021_s0 + $0x1a0] sm:$0xff]  ;;  %v36_v48 = vld [vmem:[%s9021_s0 + $0xa8] sm:$0xff]  ;;  %v37_v50 = vld [vmem:[%s9021_s0 + $0xb0] sm:$0xff] }
  0x20   :  { %6913 = vmatmul.mubr.msk.f32.gmra.mrb[10].mxu0 %vm83_vm0, %v26_v28  ;;  %v68_v49 = vld [vmem:[%s9021_s0 + $0x1a8] sm:$0xff]  ;;  %v69_v51 = vld [vmem:[%s9021_s0 + $0x1b0] sm:$0xff]  ;;  %v38_v52 = vld [vmem:[%s9021_s0 + $0xb8] sm:$0xff] }
  0x21   :  { %6961 = vmatmul.mubr.msk.f32.gmra.mrb[10].mxu1 %vm83_vm0, %v58_v29  ;;  %6915 = vmatprep.mubr.msk.f32.mxu0 %vm83_vm0, %v27_v30  ;;  %v70_v53 = vld [vmem:[%s9021_s0 + $0x1b8] sm:$0xff]  ;;  %v39_v54 = vld [vmem:[%s9021_s0 + $0xc0] sm:$0xff]  ;;  %v40_v56 = vld [vmem:[%s9021_s0 + $0xc8] sm:$0xff] }
  0x22   :  { %6963 = vmatprep.mubr.msk.f32.mxu1 %vm83_vm0, %v59_v31  ;;  %v71_v55 = vld [vmem:[%s9021_s0 + $0x1c0] sm:$0xff]  ;;  %v72_v57 = vld [vmem:[%s9021_s0 + $0x1c8] sm:$0xff]  ;;  %v41_v58 = vld [vmem:[%s9021_s0 + $0xd0] sm:$0xff] }
  0x23   :  { %v73_v59 = vld [vmem:[%s9021_s0 + $0x1d0] sm:$0xff]  ;;  %v42_v60 = vld [vmem:[%s9021_s0 + $0xd8] sm:$0xff]  ;;  %v43_v62 = vld [vmem:[%s9021_s0 + $0xe0] sm:$0xff] }
  0x24   :  { %6916 = vmatmul.mubr.msk.f32.gmra.mrb[12].mxu0 %vm83_vm0, %v28_v32  ;;  %v74_v61 = vld [vmem:[%s9021_s0 + $0x1d8] sm:$0xff]  ;;  %v75_v63 = vld [vmem:[%s9021_s0 + $0x1e0] sm:$0xff]  ;;  %v44_v0 = vld [vmem:[%s9021_s0 + $0xe8] sm:$0xff] }
  0x25   :  { %6964 = vmatmul.mubr.msk.f32.gmra.mrb[12].mxu1 %vm83_vm0, %v60_v33  ;;  %6918 = vmatprep.mubr.msk.f32.mxu0 %vm83_vm0, %v29_v34  ;;  %v76_v1 = vld [vmem:[%s9021_s0 + $0x1e8] sm:$0xff]  ;;  %v45_v2 = vld [vmem:[%s9021_s0 + $0xf0] sm:$0xff]  ;;  %v46_v4 = vld [vmem:[%s9021_s0 + $0xf8] sm:$0xff] }
  0x26   :  { %6966 = vmatprep.mubr.msk.f32.mxu1 %vm83_vm0, %v61_v35  ;;  %v77_v3 = vld [vmem:[%s9021_s0 + $0x1f0] sm:$0xff]  ;;  %v78_v5 = vld [vmem:[%s9021_s0 + $0x1f8] sm:$0xff]  ;;  %v7328_v8 = vld [vmem:[%s9023_s2] ss:$0 sm:$0xff]  ;;  %s7036_s0 = smov [#allocation2]  }
  0x27   :  { %s6748_s2 = sshll.u32 %s7036_s0, 4  ;;  %s6749_s2 = int_to_ptr.vmem [resolvable:$true] %s6748_s2 }
  0x28   :  { %6919 = vmatmul.mubr.msk.f32.gmra.mrb[14].mxu0 %vm83_vm0, %v30_v36  ;;  %s7010_s10 = scalar_lea.vmem %s6749_s2, 64  ;;  %p7015_p1 = scmp.lt.s32.totalorder %s6749_s2, %s6749_s2 }
  0x29   :  { %6967 = vmatmul.mubr.msk.f32.gmra.mrb[14].mxu1 %vm83_vm0, %v62_v37  ;;  %6921 = vmatprep.mubr.msk.f32.mxu0 %vm83_vm0, %v31_v38  ;;  %p7011_p0 = scmp.ne.s32.totalorder %s6749_s2, %s7010_s10  ;;  %p7016_p2 = scmp.lt.s32.totalorder %s7010_s10, %s7010_s10 }
  0x2a   :  { %6969 = vmatprep.mubr.msk.f32.mxu1 %vm83_vm0, %v63_v39 }
  0x2b   :  { %p7017_p3 = por %p7016_p2, %p7015_p1 }
  0x2c   :  { %6922 = vmatmul.mubr.msk.f32.gmra.mrb[16].mxu0 %vm83_vm0, %v32_v40 }
  0x2d   :  { %6970 = vmatmul.mubr.msk.f32.gmra.mrb[16].mxu1 %vm83_vm0, %v64_v41  ;;  %6924 = vmatprep.mubr.msk.f32.mxu0 %vm83_vm0, %v33_v42  ;;  %p7018_p4 = pnand %p7017_p3, %p7011_p0 }
  0x2e   :  { %6972 = vmatprep.mubr.msk.f32.mxu1 %vm83_vm0, %v65_v43 }
  0x30   :  { %6925 = vmatmul.mubr.msk.f32.gmra.mrb[18].mxu0 %vm83_vm0, %v34_v44 }
  0x31   :  { %6973 = vmatmul.mubr.msk.f32.gmra.mrb[18].mxu1 %vm83_vm0, %v66_v45  ;;  %6927 = vmatprep.mubr.msk.f32.mxu0 %vm83_vm0, %v35_v46 }
  0x32   :  { %6975 = vmatprep.mubr.msk.f32.mxu1 %vm83_vm0, %v67_v47 }
  0x34   :  { %6928 = vmatmul.mubr.msk.f32.gmra.mrb[20].mxu0 %vm83_vm0, %v36_v48 }
  0x35   :  { %6976 = vmatmul.mubr.msk.f32.gmra.mrb[20].mxu1 %vm83_vm0, %v68_v49  ;;  %6930 = vmatprep.mubr.msk.f32.mxu0 %vm83_vm0, %v37_v50 }
  0x36   :  { %6978 = vmatprep.mubr.msk.f32.mxu1 %vm83_vm0, %v69_v51 }
  0x38   :  { %6931 = vmatmul.mubr.msk.f32.gmra.mrb[22].mxu0 %vm83_vm0, %v38_v52 }
  0x39   :  { %6979 = vmatmul.mubr.msk.f32.gmra.mrb[22].mxu1 %vm83_vm0, %v70_v53  ;;  %6933 = vmatprep.mubr.msk.f32.mxu0 %vm83_vm0, %v39_v54 }
  0x3a   :  { %6981 = vmatprep.mubr.msk.f32.mxu1 %vm83_vm0, %v71_v55 }
  0x3c   :  { %6934 = vmatmul.mubr.msk.f32.gmra.mrb[24].mxu0 %vm83_vm0, %v40_v56 }
  0x3d   :  { %6982 = vmatmul.mubr.msk.f32.gmra.mrb[24].mxu1 %vm83_vm0, %v72_v57  ;;  %6936 = vmatprep.mubr.msk.f32.mxu0 %vm83_vm0, %v41_v58 }
  0x3e   :  { %6984 = vmatprep.mubr.msk.f32.mxu1 %vm83_vm0, %v73_v59 }
  0x40   :  { %6937 = vmatmul.mubr.msk.f32.gmra.mrb[26].mxu0 %vm83_vm0, %v42_v60 }
  0x41   :  { %6985 = vmatmul.mubr.msk.f32.gmra.mrb[26].mxu1 %vm83_vm0, %v74_v61  ;;  %6939 = vmatprep.mubr.msk.f32.mxu0 %vm83_vm0, %v43_v62 }
  0x42   :  { %6987 = vmatprep.mubr.msk.f32.mxu1 %vm83_vm0, %v75_v63 }
  0x44   :  { %6940 = vmatmul.mubr.msk.f32.gmra.mrb[28].mxu0 %vm83_vm0, %v44_v0 }
  0x45   :  { %6988 = vmatmul.mubr.msk.f32.gmra.mrb[28].mxu1 %vm83_vm0, %v76_v1  ;;  %6942 = vmatprep.mubr.msk.f32.mxu0 %vm83_vm0, %v45_v2 }
  0x46   :  { %6990 = vmatprep.mubr.msk.f32.mxu1 %vm83_vm0, %v77_v3 }
  0x48   :  { %6943 = vmatmul.mubr.msk.f32.gmra.mrb[30].mxu0 %vm83_vm0, %v46_v4 }
  0x49   :  { %6991 = vmatmul.mubr.msk.f32.gmra.mrb[30].mxu1 %vm83_vm0, %v78_v5  ;;  %vm6474_vm0 = vcmask 1048512  }
  0xdf   :  { %v6899_v6 = vpop.f32.mrb[0].mxu0 }
  0xe0   :  { %v6947_v7 = vpop.f32.mrb[0].mxu1  ;;  %v663_v9 = vmul.f32 2.0, %v6899_v6  ;;  %v342_v11 = vpop.f32.mrb[1].mxu0 }
  0xe1   :  { %v695_v10 = vmul.f32 2.0, %v6947_v7  ;;  %v502_v12 = vpop.f32.mrb[1].mxu1  ;;  %v662_v13 = vmul.f32 2.0, %v342_v11 }
  0xe2   :  { %v733_v15 = vsub.f32 %v7328_v8, %v663_v9  ;;  %v694_v17 = vmul.f32 2.0, %v502_v12 }
  0xe3   :  { %v765_v14 = vsub.f32 %v7328_v8, %v695_v10  ;;  %v6902_v16 = vpop.f32.mrb[2].mxu0  ;;  %v732_v19 = vsub.f32 %v7328_v8, %v662_v13 }
  0xe4   :  { %v6950_v18 = vpop.f32.mrb[2].mxu1  ;;  %v665_v20 = vmul.f32 2.0, %v6902_v16  ;;  %v800_v22 = vsel %vm796_vm1, %v733_v15, inf  ;;  %v352_v23 = vpop.f32.mrb[3].mxu0  ;;  %v764_v34 = vsub.f32 %v7328_v8, %v694_v17 }
  0xe5   :  { %v896_v21 = vsel %vm796_vm1, %v765_v14, inf  ;;  %v697_v24 = vmul.f32 2.0, %v6950_v18  ;;  %v512_v25 = vpop.f32.mrb[3].mxu1  ;;  %801 = vmin.index.xlane.f32.xlu0 %v800_v22  ;;  %v664_v31 = vmul.f32 2.0, %v352_v23  ;;  %v797_v32 = vsel %vm796_vm1, %v732_v19, inf }
  0xe6   :  { %897 = vmin.index.xlane.f32.xlu1 %v896_v21  ;;  %v735_v26 = vsub.f32 %v7328_v8, %v665_v20  ;;  %v696_v27 = vmul.f32 2.0, %v512_v25  ;;  %v893_v43 = vsel %vm796_vm1, %v764_v34, inf }
  0xe7   :  { %v767_v28 = vsub.f32 %v7328_v8, %v697_v24  ;;  %v6905_v29 = vpop.f32.mrb[4].mxu0  ;;  %v734_v44 = vsub.f32 %v7328_v8, %v664_v31 }
  0xe8   :  { %v6953_v30 = vpop.f32.mrb[4].mxu1  ;;  %v806_v33 = vsel %vm796_vm1, %v735_v26, inf  ;;  %v362_v35 = vpop.f32.mrb[5].mxu0  ;;  %v667_v38 = vmul.f32 2.0, %v6905_v29  ;;  %v766_v39 = vsub.f32 %v7328_v8, %v696_v27 }
  0xe9   :  { %v522_v36 = vpop.f32.mrb[5].mxu1  ;;  %798 = vmin.index.xlane.f32.xlu0 %v797_v32  ;;  %v902_v37 = vsel %vm796_vm1, %v767_v28, inf  ;;  %v666_v40 = vmul.f32 2.0, %v362_v35  ;;  %v699_v47 = vmul.f32 2.0, %v6953_v30  ;;  %v803_v54 = vsel %vm796_vm1, %v734_v44, inf }
  0xea   :  { %807 = vmin.index.xlane.f32.xlu1 %v806_v33  ;;  %v698_v48 = vmul.f32 2.0, %v522_v36  ;;  %v899_v49 = vsel %vm796_vm1, %v766_v39, inf  ;;  %v737_v50 = vsub.f32 %v7328_v8, %v667_v38  ;;  %v7034_v28 = vmov 0  }
  0xeb   :  { %v6908_v41 = vpop.f32.mrb[6].mxu0  ;;  %v736_v51 = vsub.f32 %v7328_v8, %v666_v40  ;;  %v769_v57 = vsub.f32 %v7328_v8, %v699_v47  ;;  %7009 = vset.pattern.permute.xlu0 %v7034_v28  ;;  %7008 = vset.pattern.permute.xlu1 %v7034_v28 }
  0xec   :  { %v6956_v42 = vpop.f32.mrb[6].mxu1  ;;  %v372_v45 = vpop.f32.mrb[7].mxu0  ;;  %v768_v58 = vsub.f32 %v7328_v8, %v698_v48  ;;  %v812_v59 = vsel %vm796_vm1, %v737_v50, inf  ;;  %v669_v60 = vmul.f32 2.0, %v6908_v41 }
  0xed   :  { %v532_v46 = vpop.f32.mrb[7].mxu1  ;;  %894 = vmin.index.xlane.f32.xlu0 %v893_v43  ;;  %v809_v61 = vsel %vm796_vm1, %v736_v51, inf  ;;  %v668_v62 = vmul.f32 2.0, %v372_v45  ;;  %v701_v3 = vmul.f32 2.0, %v6956_v42  ;;  %v908_v5 = vsel %vm796_vm1, %v769_v57, inf }
  0xee   :  { %903 = vmin.index.xlane.f32.xlu1 %v902_v37  ;;  %v700_v4 = vmul.f32 2.0, %v532_v46  ;;  %v905_v6 = vsel %vm796_vm1, %v768_v58, inf  ;;  %v739_v7 = vsub.f32 %v7328_v8, %v669_v60 }
  0xef   :  { %v6911_v52 = vpop.f32.mrb[8].mxu0  ;;  %v738_v9 = vsub.f32 %v7328_v8, %v668_v62  ;;  %v771_v18 = vsub.f32 %v7328_v8, %v701_v3 }
  0xf0   :  { %v6959_v53 = vpop.f32.mrb[8].mxu1  ;;  %v382_v55 = vpop.f32.mrb[9].mxu0  ;;  %v671_v10 = vmul.f32 2.0, %v6911_v52  ;;  %v770_v19 = vsub.f32 %v7328_v8, %v700_v4  ;;  %v818_v20 = vsel %vm796_vm1, %v739_v7, inf }
  0xf1   :  { %v542_v56 = vpop.f32.mrb[9].mxu1  ;;  %900 = vmin.index.xlane.f32.xlu0 %v899_v49  ;;  %v703_v11 = vmul.f32 2.0, %v6959_v53  ;;  %v670_v14 = vmul.f32 2.0, %v382_v55  ;;  %v815_v21 = vsel %vm796_vm1, %v738_v9, inf  ;;  %v914_v35 = vsel %vm796_vm1, %v771_v18, inf }
  0xf2   :  { %804 = vmin.index.xlane.f32.xlu1 %v803_v54  ;;  %v702_v15 = vmul.f32 2.0, %v542_v56  ;;  %v741_v23 = vsub.f32 %v7328_v8, %v671_v10  ;;  %v911_v36 = vsel %vm796_vm1, %v770_v19, inf }
  0xf3   :  { %v6914_v63 = vpop.f32.mrb[10].mxu0  ;;  %v773_v24 = vsub.f32 %v7328_v8, %v703_v11  ;;  %v740_v29 = vsub.f32 %v7328_v8, %v670_v14 }
  0xf4   :  { %v6962_v0 = vpop.f32.mrb[10].mxu1  ;;  %v392_v1 = vpop.f32.mrb[11].mxu0  ;;  %v673_v22 = vmul.f32 2.0, %v6914_v63  ;;  %v772_v30 = vsub.f32 %v7328_v8, %v702_v15  ;;  %v824_v38 = vsel %vm796_vm1, %v741_v23, inf }
  0xf5   :  { %v552_v2 = vpop.f32.mrb[11].mxu1  ;;  %810 = vmin.index.xlane.f32.xlu0 %v809_v61  ;;  %v705_v25 = vmul.f32 2.0, %v6962_v0  ;;  %v672_v33 = vmul.f32 2.0, %v392_v1  ;;  %v920_v39 = vsel %vm796_vm1, %v773_v24, inf  ;;  %v821_v43 = vsel %vm796_vm1, %v740_v29, inf }
  0xf6   :  { %813 = vmin.index.xlane.f32.xlu1 %v812_v59  ;;  %v704_v34 = vmul.f32 2.0, %v552_v2  ;;  %v743_v37 = vsub.f32 %v7328_v8, %v673_v22  ;;  %v917_v44 = vsel %vm796_vm1, %v772_v30, inf }
  0xf7   :  { %v6917_v12 = vpop.f32.mrb[12].mxu0  ;;  %v775_v40 = vsub.f32 %v7328_v8, %v705_v25  ;;  %v742_v49 = vsub.f32 %v7328_v8, %v672_v33 }
  0xf8   :  { %v6965_v13 = vpop.f32.mrb[12].mxu1  ;;  %v7356_v16 = vpop.f32.mrb[13].mxu0  ;;  %v774_v50 = vsub.f32 %v7328_v8, %v704_v34  ;;  %v830_v53 = vsel %vm796_vm1, %v743_v37, inf  ;;  %v7387_v54 = vmul.f32 2.0, %v6917_v12 }
  0xf9   :  { %v7358_v17 = vpop.f32.mrb[13].mxu1  ;;  %906 = vmin.index.xlane.f32.xlu0 %v905_v6  ;;  %v7392_v57 = vsel %vm796_vm1, %v775_v40, inf  ;;  %v7394_v58 = vmul.f32 2.0, %v6965_v13  ;;  %v827_v10 = vsel %vm796_vm1, %v742_v49, inf  ;;  %v7412_v11 = vmul.f32 2.0, %v7356_v16 }
  0xfa   :  { %909 = vmin.index.xlane.f32.xlu1 %v908_v5  ;;  %v923_v14 = vsel %vm796_vm1, %v774_v50, inf  ;;  %v7418_v15 = vmul.f32 2.0, %v7358_v17  ;;  %v745_v34 = vsub.f32 %v7328_v8, %v7387_v54 }
  0xfb   :  { %v7366_v26 = vpop.f32.mrb[14].mxu0 }
  0xfc   :  { %v7368_v27 = vpop.f32.mrb[14].mxu1  ;;  %v7372_v31 = vpop.f32.mrb[15].mxu0 }
  0xfd   :  { %v7374_v32 = vpop.f32.mrb[15].mxu1  ;;  %816 = vmin.index.xlane.f32.xlu0 %v815_v21 }
  0xfe   :  { %819 = vmin.index.xlane.f32.xlu1 %v818_v20 }
  0xff   :  { %v6923_v41 = vpop.f32.mrb[16].mxu0 }
 0x100   :  { %v6971_v42 = vpop.f32.mrb[16].mxu1  ;;  %v679_v45 = vmul.f32 2.0, %v6923_v41  ;;  %v422_v46 = vpop.f32.mrb[17].mxu0 }
 0x101   :  { %v711_v47 = vmul.f32 2.0, %v6971_v42  ;;  %v582_v48 = vpop.f32.mrb[17].mxu1  ;;  %912 = vmin.index.xlane.f32.xlu0 %v911_v36  ;;  %v678_v51 = vmul.f32 2.0, %v422_v46 }
 0x102   :  { %915 = vmin.index.xlane.f32.xlu1 %v914_v35  ;;  %v710_v52 = vmul.f32 2.0, %v582_v48  ;;  %v749_v55 = vsub.f32 %v7328_v8, %v679_v45  ;;  %v777_v35 = vsub.f32 %v7328_v8, %v7394_v58 }
 0x103   :  { %v781_v56 = vsub.f32 %v7328_v8, %v711_v47  ;;  %v6926_v59 = vpop.f32.mrb[18].mxu0  ;;  %v748_v60 = vsub.f32 %v7328_v8, %v678_v51 }
 0x104   :  { %v6974_v61 = vpop.f32.mrb[18].mxu1  ;;  %v780_v62 = vsub.f32 %v7328_v8, %v710_v52  ;;  %v7399_v63 = vsel %vm796_vm1, %v749_v55, inf  ;;  %v681_v0 = vmul.f32 2.0, %v6926_v59  ;;  %v432_v2 = vpop.f32.mrb[19].mxu0  ;;  %v836_v55 = vsel %vm796_vm1, %v745_v34, inf }
 0x105   :  { %v7402_v1 = vsel %vm796_vm1, %v781_v56, inf  ;;  %v713_v3 = vmul.f32 2.0, %v6974_v61  ;;  %v592_v4 = vpop.f32.mrb[19].mxu1  ;;  %822 = vmin.index.xlane.f32.xlu0 %v821_v43  ;;  %v7405_v5 = vsel %vm796_vm1, %v748_v60, inf  ;;  %v680_v6 = vmul.f32 2.0, %v432_v2 }
 0x106   :  { %825 = vmin.index.xlane.f32.xlu1 %v824_v38  ;;  %v7408_v7 = vsel %vm796_vm1, %v780_v62, inf  ;;  %v712_v9 = vmul.f32 2.0, %v592_v4  ;;  %v751_v12 = vsub.f32 %v7328_v8, %v681_v0  ;;  %v744_v38 = vsub.f32 %v7328_v8, %v7412_v11 }
 0x107   :  { %v783_v13 = vsub.f32 %v7328_v8, %v713_v3  ;;  %v6929_v18 = vpop.f32.mrb[20].mxu0  ;;  %v750_v19 = vsub.f32 %v7328_v8, %v680_v6  ;;  %v7460_v56 = vmul.f32 2.0, %v7366_v26  ;;  %v7466_v60 = vmul.f32 2.0, %v7368_v27 }
 0x108   :  { %v6977_v20 = vpop.f32.mrb[20].mxu1  ;;  %v782_v21 = vsub.f32 %v7328_v8, %v712_v9  ;;  %v7423_v22 = vsel %vm796_vm1, %v751_v12, inf  ;;  %v683_v16 = vmul.f32 2.0, %v6929_v18  ;;  %v442_v24 = vpop.f32.mrb[21].mxu0  ;;  %v676_v18 = vmul.f32 2.0, %v7372_v31 }
 0x109   :  { %v7426_v23 = vsel %vm796_vm1, %v783_v13, inf  ;;  %v715_v25 = vmul.f32 2.0, %v6977_v20  ;;  %v602_v28 = vpop.f32.mrb[21].mxu1  ;;  %918 = vmin.index.xlane.f32.xlu0 %v917_v44  ;;  %v7429_v17 = vsel %vm796_vm1, %v750_v19, inf  ;;  %v682_v29 = vmul.f32 2.0, %v442_v24 }
 0x10a   :  { %921 = vmin.index.xlane.f32.xlu1 %v920_v39  ;;  %v7432_v30 = vsel %vm796_vm1, %v782_v21, inf  ;;  %v714_v33 = vmul.f32 2.0, %v602_v28  ;;  %v753_v36 = vsub.f32 %v7328_v8, %v683_v16  ;;  %v776_v39 = vsub.f32 %v7328_v8, %v7418_v15 }
 0x10b   :  { %v785_v37 = vsub.f32 %v7328_v8, %v715_v25  ;;  %v6932_v40 = vpop.f32.mrb[22].mxu0  ;;  %v752_v41 = vsub.f32 %v7328_v8, %v682_v29  ;;  %v833_v15 = vsel %vm796_vm1, %v744_v38, inf }
 0x10c   :  { %v6980_v42 = vpop.f32.mrb[22].mxu1  ;;  %v784_v43 = vsub.f32 %v7328_v8, %v714_v33  ;;  %v7447_v44 = vsel %vm796_vm1, %v753_v36, inf  ;;  %v685_v45 = vmul.f32 2.0, %v6932_v40  ;;  %v452_v47 = vpop.f32.mrb[23].mxu0  ;;  %v929_v21 = vsel %vm796_vm1, %v776_v39, inf }
 0x10d   :  { %v7450_v46 = vsel %vm796_vm1, %v785_v37, inf  ;;  %v717_v48 = vmul.f32 2.0, %v6980_v42  ;;  %v612_v49 = vpop.f32.mrb[23].mxu1  ;;  %828 = vmin.index.xlane.f32.xlu0 %v827_v10  ;;  %v7453_v50 = vsel %vm796_vm1, %v752_v41, inf  ;;  %v684_v51 = vmul.f32 2.0, %v452_v47 }
 0x10e   :  { %831 = vmin.index.xlane.f32.xlu1 %v830_v53  ;;  %v7456_v52 = vsel %vm796_vm1, %v784_v43, inf  ;;  %v716_v54 = vmul.f32 2.0, %v612_v49  ;;  %v755_v58 = vsub.f32 %v7328_v8, %v685_v45  ;;  %v932_v53 = vsel %vm796_vm1, %v777_v35, inf }
 0x10f   :  { %v787_v59 = vsub.f32 %v7328_v8, %v717_v48  ;;  %v6935_v61 = vpop.f32.mrb[24].mxu0  ;;  %v754_v62 = vsub.f32 %v7328_v8, %v684_v51  ;;  %v747_v39 = vsub.f32 %v7328_v8, %v7460_v56  ;;  %v746_v40 = vsub.f32 %v7328_v8, %v676_v18 }
 0x110   :  { %v6983_v0 = vpop.f32.mrb[24].mxu1  ;;  %v786_v2 = vsub.f32 %v7328_v8, %v716_v54  ;;  %v7471_v3 = vsel %vm796_vm1, %v755_v58, inf  ;;  %v687_v26 = vmul.f32 2.0, %v6935_v61  ;;  %v462_v6 = vpop.f32.mrb[25].mxu0  ;;  %v779_v43 = vsub.f32 %v7328_v8, %v7466_v60 }
 0x111   :  { %v7474_v4 = vsel %vm796_vm1, %v787_v59, inf  ;;  %v719_v9 = vmul.f32 2.0, %v6983_v0  ;;  %v622_v10 = vpop.f32.mrb[25].mxu1  ;;  %924 = vmin.index.xlane.f32.xlu0 %v923_v14  ;;  %v7478_v27 = vsel %vm796_vm1, %v754_v62, inf  ;;  %v686_v11 = vmul.f32 2.0, %v462_v6 }
 0x112   :  { %927 = vmin.index.xlane.f32.xlu1 %v7392_v57  ;;  %v7481_v12 = vsel %vm796_vm1, %v786_v2, inf  ;;  %v718_v13 = vmul.f32 2.0, %v622_v10  ;;  %v757_v19 = vsub.f32 %v7328_v8, %v687_v26  ;;  %v708_v57 = vmul.f32 2.0, %v7374_v32 }
 0x113   :  { %v789_v20 = vsub.f32 %v7328_v8, %v719_v9  ;;  %v6938_v14 = vpop.f32.mrb[26].mxu0  ;;  %v756_v16 = vsub.f32 %v7328_v8, %v686_v11  ;;  %v842_v26 = vsel %vm796_vm1, %v747_v39, inf  ;;  %v839_v6 = vsel %vm796_vm1, %v746_v40, inf }
 0x114   :  { %v6986_v24 = vpop.f32.mrb[26].mxu1  ;;  %v788_v25 = vsub.f32 %v7328_v8, %v718_v13  ;;  %v7492_v28 = vsel %vm796_vm1, %v757_v19, inf  ;;  %v689_v29 = vmul.f32 2.0, %v6938_v14  ;;  %v472_v33 = vpop.f32.mrb[27].mxu0  ;;  %v778_v45 = vsub.f32 %v7328_v8, %v708_v57 }
 0x115   :  { %v7495_v31 = vsel %vm796_vm1, %v789_v20, inf  ;;  %v721_v34 = vmul.f32 2.0, %v6986_v24  ;;  %v632_v35 = vpop.f32.mrb[27].mxu1  ;;  %834 = vmin.index.xlane.f32.xlu0 %v833_v15  ;;  %v7498_v32 = vsel %vm796_vm1, %v756_v16, inf  ;;  %v688_v36 = vmul.f32 2.0, %v472_v33 }
 0x116   :  { %837 = vmin.index.xlane.f32.xlu1 %v836_v55  ;;  %v7501_v37 = vsel %vm796_vm1, %v788_v25, inf  ;;  %v720_v38 = vmul.f32 2.0, %v632_v35  ;;  %v759_v41 = vsub.f32 %v7328_v8, %v689_v29  ;;  %v938_v33 = vsel %vm796_vm1, %v779_v43, inf }
 0x117   :  { %v791_v42 = vsub.f32 %v7328_v8, %v721_v34  ;;  %v758_v47 = vsub.f32 %v7328_v8, %v688_v36  ;;  %v6941_v48 = vpop.f32.mrb[28].mxu0  ;;  %v935_v34 = vsel %vm796_vm1, %v778_v45, inf }
 0x118   :  { %v790_v49 = vsub.f32 %v7328_v8, %v720_v38  ;;  %v6989_v51 = vpop.f32.mrb[28].mxu1  ;;  %v7514_v54 = vsel %vm796_vm1, %v759_v41, inf  ;;  %v691_v56 = vmul.f32 2.0, %v6941_v48  ;;  %v482_v58 = vpop.f32.mrb[29].mxu0 }
 0x119   :  { %v7517_v55 = vsel %vm796_vm1, %v791_v42, inf  ;;  %v723_v59 = vmul.f32 2.0, %v6989_v51  ;;  %v642_v61 = vpop.f32.mrb[29].mxu1  ;;  %930 = vmin.index.xlane.f32.xlu0 %v929_v21  ;;  %v875_v60 = vsel %vm796_vm1, %v758_v47, inf  ;;  %v690_v0 = vmul.f32 2.0, %v482_v58 }
 0x11a   :  { %933 = vmin.index.xlane.f32.xlu1 %v932_v53  ;;  %v971_v62 = vsel %vm796_vm1, %v790_v49, inf  ;;  %v722_v2 = vmul.f32 2.0, %v642_v61  ;;  %v761_v9 = vsub.f32 %v7328_v8, %v691_v56 }
 0x11b   :  { %v793_v10 = vsub.f32 %v7328_v8, %v723_v59  ;;  %v760_v11 = vsub.f32 %v7328_v8, %v690_v0  ;;  %v6944_v13 = vpop.f32.mrb[30].mxu0 }
 0x11c   :  { %v792_v53 = vsub.f32 %v7328_v8, %v722_v2  ;;  %v6992_v15 = vpop.f32.mrb[30].mxu1  ;;  %v884_v18 = vsel %vm796_vm1, %v761_v9, inf  ;;  %v693_v20 = vmul.f32 2.0, %v6944_v13  ;;  %v492_v21 = vpop.f32.mrb[31].mxu0 }
 0x11d   :  { %v980_v19 = vsel %vm796_vm1, %v793_v10, inf  ;;  %v725_v57 = vmul.f32 2.0, %v6992_v15  ;;  %v652_v14 = vpop.f32.mrb[31].mxu1  ;;  %840 = vmin.index.xlane.f32.xlu0 %v839_v6  ;;  %v881_v16 = vsel %vm796_vm1, %v760_v11, inf  ;;  %v692_v24 = vmul.f32 2.0, %v492_v21 }
 0x11e   :  { %843 = vmin.index.xlane.f32.xlu1 %v842_v26  ;;  %v977_v25 = vsel %vm796_vm1, %v792_v53, inf  ;;  %v724_v29 = vmul.f32 2.0, %v652_v14  ;;  %v763_v35 = vsub.f32 %v7328_v8, %v693_v20 }
 0x11f   :  { %v795_v36 = vsub.f32 %v7328_v8, %v725_v57  ;;  %v762_v38 = vsub.f32 %v7328_v8, %v692_v24 }
 0x120   :  { %v794_v39 = vsub.f32 %v7328_v8, %v724_v29  ;;  %v890_v40 = vsel %vm796_vm1, %v763_v35, inf  ;;  %v9025_v8 = vlaneseq }
 0x121   :  { %v986_v41 = vsel %vm796_vm1, %v795_v36, inf  ;;  %936 = vmin.index.xlane.f32.xlu0 %v935_v34  ;;  %v887_v42 = vsel %vm796_vm1, %v762_v38, inf }
 0x122   :  { %939 = vmin.index.xlane.f32.xlu1 %v938_v33  ;;  %v983_v43 = vsel %vm796_vm1, %v794_v39, inf }
 0x125   :  { %846 = vmin.index.xlane.f32.xlu0 %v7405_v5  ;;  %v7564_v5 = vshrl.u32 %v9025_v8, 7 }
 0x126   :  { %849 = vmin.index.xlane.f32.xlu1 %v7399_v63  ;;  %v7035_v63 = vmov 1966171168  }
 0x129   :  { %942 = vmin.index.xlane.f32.xlu0 %v7408_v7 }
 0x12a   :  { %945 = vmin.index.xlane.f32.xlu1 %v7402_v1  ;;  %v3042_v1 = vunpack.c.l.s4 %v7035_v63 }
 0x12c   :  { %v3043_v7 = vunpack.c.0.s8 %v3042_v1 }
 0x12d   :  { %852 = vmin.index.xlane.f32.xlu0 %v7429_v17  ;;  %v7573_v17 = vsub.s32 2, %v7564_v5 }
 0x12e   :  { %855 = vmin.index.xlane.f32.xlu1 %v7423_v22  ;;  %v7567_v22 = vsub.s32 0, %v7564_v5 }
 0x131   :  { %948 = vmin.index.xlane.f32.xlu0 %v7432_v30  ;;  %v7576_v30 = vsub.s32 3, %v7564_v5 }
 0x132   :  { %951 = vmin.index.xlane.f32.xlu1 %v7426_v23  ;;  %v7570_v23 = vsub.s32 1, %v7564_v5 }
 0x135   :  { %858 = vmin.index.xlane.f32.xlu0 %v7453_v50  ;;  %v7585_v50 = vsub.s32 6, %v7564_v5 }
 0x136   :  { %861 = vmin.index.xlane.f32.xlu1 %v7447_v44  ;;  %v7579_v44 = vsub.s32 4, %v7564_v5 }
 0x139   :  { %954 = vmin.index.xlane.f32.xlu0 %v7456_v52  ;;  %v7588_v52 = vsub.s32 7, %v7564_v5 }
 0x13a   :  { %957 = vmin.index.xlane.f32.xlu1 %v7450_v46  ;;  %v7582_v46 = vsub.s32 5, %v7564_v5 }
 0x13d   :  { %864 = vmin.index.xlane.f32.xlu0 %v7478_v27  ;;  %v7591_v27 = vsub.s32 %v3043_v7, %v7564_v5 }
 0x13e   :  { %867 = vmin.index.xlane.f32.xlu1 %v7471_v3 }
 0x13f   :  { %9028 = vst [vmem:[#allocation5_spill] sm:$0xff] %v7591_v27 }
 0x141   :  { %960 = vmin.index.xlane.f32.xlu0 %v7481_v12 }
 0x142   :  { %963 = vmin.index.xlane.f32.xlu1 %v7474_v4 }
 0x145   :  { %870 = vmin.index.xlane.f32.xlu0 %v7498_v32 }
 0x146   :  { %873 = vmin.index.xlane.f32.xlu1 %v7492_v28 }
 0x149   :  { %966 = vmin.index.xlane.f32.xlu0 %v7501_v37 }
 0x14a   :  { %969 = vmin.index.xlane.f32.xlu1 %v7495_v31 }
 0x14d   :  { %876 = vmin.index.xlane.f32.xlu0 %v875_v60 }
 0x14e   :  { %879 = vmin.index.xlane.f32.xlu1 %v7514_v54 }
 0x151   :  { %972 = vmin.index.xlane.f32.xlu0 %v971_v62 }
 0x152   :  { %975 = vmin.index.xlane.f32.xlu1 %v7517_v55 }
 0x155   :  { %882 = vmin.index.xlane.f32.xlu0 %v881_v16 }
 0x156   :  { %885 = vmin.index.xlane.f32.xlu1 %v884_v18 }
 0x159   :  { %978 = vmin.index.xlane.f32.xlu0 %v977_v25 }
 0x15a   :  { %981 = vmin.index.xlane.f32.xlu1 %v980_v19 }
 0x15d   :  { %888 = vmin.index.xlane.f32.xlu0 %v887_v42 }
 0x15e   :  { %891 = vmin.index.xlane.f32.xlu1 %v890_v40 }
 0x161   :  { %984 = vmin.index.xlane.f32.xlu0 %v983_v43 }
 0x162   :  { %987 = vmin.index.xlane.f32.xlu1 %v986_v41 }
 0x172   :  { %v802_v4 = vpop.xlane.xlu0 %801 }
 0x173   :  { %v898_v3 = vpop.xlane.xlu1 %897  ;;  %v1024_v12 = vrot.slane %v802_v4, %v7567_v22  ;;  %v1028_v28 = vrot.slane %v802_v4, %v7570_v23  ;;  %v1032_v31 = vrot.slane %v802_v4, %v7573_v17  ;;  %v1036_v32 = vrot.slane %v802_v4, %v7576_v30 }
 0x174   :  { %v1040_v37 = vrot.slane %v802_v4, %v7579_v44  ;;  %v1044_v45 = vrot.slane %v802_v4, %v7582_v46  ;;  %v1048_v47 = vrot.slane %v802_v4, %v7585_v50  ;;  %v1052_v48 = vrot.slane %v802_v4, %v7588_v52 }
 0x175   :  { %v3086_v49 = vcombine.low %v1024_v12, %v1028_v28  ;;  %v3087_v51 = vcombine.low %v1032_v31, %v1036_v32  ;;  %v2048_v54 = vrot.slane %v898_v3, %v7567_v22  ;;  %v2052_v55 = vrot.slane %v898_v3, %v7570_v23 }
 0x176   :  { %v799_v56 = vpop.xlane.xlu0 %798  ;;  %v3088_v58 = vcombine.low %v1040_v37, %v1044_v45  ;;  %v3089_v59 = vcombine.low %v1048_v47, %v1052_v48  ;;  %v2056_v61 = vrot.slane %v898_v3, %v7573_v17  ;;  %v2060_v60 = vrot.slane %v898_v3, %v7576_v30 }
 0x177   :  { %v3096_v62 = vrot.slane %v3086_v49, %v7591_v27  ;;  %v3103_v0 = vrot.slane %v3087_v51, %v7591_v27  ;;  %v2064_v2 = vrot.slane %v898_v3, %v7579_v44  ;;  %v2068_v26 = vrot.slane %v898_v3, %v7582_v46  ;;  %v808_v28 = vpop.xlane.xlu1 %807 }
 0x178   :  { %v3110_v6 = vrot.slane %v3088_v58, %v7591_v27  ;;  %v3117_v9 = vrot.slane %v3089_v59, %v7591_v27  ;;  %v2072_v10 = vrot.slane %v898_v3, %v7585_v50  ;;  %v2076_v11 = vrot.slane %v898_v3, %v7588_v52 }
 0x179   :  { %v3118_v13 = vcombine.low %v3096_v62, %v3103_v0  ;;  %v4654_v53 = vcombine.low %v2048_v54, %v2052_v55  ;;  %v4655_v15 = vcombine.low %v2056_v61, %v2060_v60  ;;  %v4656_v18 = vcombine.low %v2064_v2, %v2068_v26 }
 0x17a   :  { %v3119_v19 = vcombine.low %v3110_v6, %v3117_v9  ;;  %v4657_v20 = vcombine.low %v2072_v10, %v2076_v11  ;;  %v992_v21 = vrot.slane %v799_v56, %v7567_v22  ;;  %v996_v57 = vrot.slane %v799_v56, %v7570_v23  ;;  %v895_v29 = vpop.xlane.xlu0 %894 }
 0x17b   :  { %v3126_v14 = vrot.slane %v3118_v13, %v7591_v27  ;;  %v4664_v16 = vrot.slane %v4654_v53, %v7591_v27  ;;  %v4671_v24 = vrot.slane %v4655_v15, %v7591_v27  ;;  %v4678_v25 = vrot.slane %v4656_v18, %v7591_v27  ;;  %v904_v53 = vpop.xlane.xlu1 %903 }
 0x17c   :  { %v3133_v33 = vrot.slane %v3119_v19, %v7591_v27  ;;  %v4685_v34 = vrot.slane %v4657_v20, %v7591_v27  ;;  %v1000_v35 = vrot.slane %v799_v56, %v7573_v17  ;;  %v1004_v36 = vrot.slane %v799_v56, %v7576_v30 }
 0x17d   :  { %v4686_v38 = vcombine.low %v4664_v16, %v4671_v24  ;;  %v1008_v39 = vrot.slane %v799_v56, %v7579_v44  ;;  %v1012_v40 = vrot.slane %v799_v56, %v7582_v46  ;;  %v1016_v41 = vrot.slane %v799_v56, %v7585_v50 }
 0x17e   :  { %v3134_v42 = vcombine.low %v3126_v14, %v3133_v33  ;;  %v4687_v43 = vcombine.low %v4678_v25, %v4685_v34  ;;  %v1020_v63 = vrot.slane %v799_v56, %v7588_v52  ;;  %v3037_v1 = vcombine.low %v992_v21, %v996_v57 }
 0x17f   :  { %v4694_v7 = vrot.slane %v4686_v38, %v7591_v27  ;;  %v3038_v3 = vcombine.low %v1000_v35, %v1004_v36  ;;  %v3039_v4 = vcombine.low %v1008_v39, %v1012_v40  ;;  %v2016_v12 = vrot.slane %v895_v29, %v7567_v22 }
 0x180   :  { %6177 = vperm.xlu1 %7008, %v3134_v42   ;;  %v4701_v31 = vrot.slane %v4687_v43, %v7591_v27  ;;  %v3040_v32 = vcombine.low %v1016_v41, %v1020_v63  ;;  %v3047_v37 = vrot.slane %v3037_v1, %v7591_v27  ;;  %v2020_v45 = vrot.slane %v895_v29, %v7570_v23 }
 0x181   :  { %v3054_v47 = vrot.slane %v3038_v3, %v7591_v27  ;;  %v3061_v48 = vrot.slane %v3039_v4, %v7591_v27  ;;  %v2024_v49 = vrot.slane %v895_v29, %v7573_v17  ;;  %v2028_v51 = vrot.slane %v895_v29, %v7576_v30  ;;  %v805_v3 = vpop.xlane.xlu1 %804 }
 0x182   :  { %v4702_v54 = vcombine.low %v4694_v7, %v4701_v31  ;;  %v3068_v55 = vrot.slane %v3040_v32, %v7591_v27  ;;  %v2032_v56 = vrot.slane %v895_v29, %v7579_v44  ;;  %v2036_v58 = vrot.slane %v895_v29, %v7582_v46 }
 0x183   :  { %v3069_v59 = vcombine.low %v3047_v37, %v3054_v47  ;;  %v2040_v61 = vrot.slane %v895_v29, %v7585_v50  ;;  %v2044_v60 = vrot.slane %v895_v29, %v7588_v52  ;;  %v4605_v62 = vcombine.low %v2016_v12, %v2020_v45 }
 0x184   :  { %6273 = vperm.xlu0 %7009, %v4702_v54   ;;  %v3070_v0 = vcombine.low %v3061_v48, %v3068_v55  ;;  %v4606_v2 = vcombine.low %v2024_v49, %v2028_v51  ;;  %v4607_v26 = vcombine.low %v2032_v56, %v2036_v58  ;;  %v1088_v6 = vrot.slane %v808_v28, %v7567_v22 }
 0x185   :  { %v3077_v9 = vrot.slane %v3069_v59, %v7591_v27  ;;  %v4608_v10 = vcombine.low %v2040_v61, %v2044_v60  ;;  %v4615_v11 = vrot.slane %v4605_v62, %v7591_v27  ;;  %v1092_v13 = vrot.slane %v808_v28, %v7570_v23 }
 0x186   :  { %v3084_v15 = vrot.slane %v3070_v0, %v7591_v27  ;;  %v4622_v18 = vrot.slane %v4606_v2, %v7591_v27  ;;  %v4629_v19 = vrot.slane %v4607_v26, %v7591_v27  ;;  %v1096_v20 = vrot.slane %v808_v28, %v7573_v17  ;;  %v901_v2 = vpop.xlane.xlu0 %900 }
 0x187   :  { %v4636_v21 = vrot.slane %v4608_v10, %v7591_v27  ;;  %v1100_v57 = vrot.slane %v808_v28, %v7576_v30  ;;  %v1104_v14 = vrot.slane %v808_v28, %v7579_v44  ;;  %v1108_v16 = vrot.slane %v808_v28, %v7582_v46 }
 0x188   :  { %v3085_v24 = vcombine.low %v3077_v9, %v3084_v15  ;;  %v4637_v25 = vcombine.low %v4615_v11, %v4622_v18  ;;  %v1112_v29 = vrot.slane %v808_v28, %v7585_v50  ;;  %v1116_v33 = vrot.slane %v808_v28, %v7588_v52 }
 0x189   :  { %v4638_v34 = vcombine.low %v4629_v19, %v4636_v21  ;;  %v3184_v35 = vcombine.low %v1088_v6, %v1092_v13  ;;  %v3185_v36 = vcombine.low %v1096_v20, %v1100_v57  ;;  %v3186_v38 = vcombine.low %v1104_v14, %v1108_v16  ;;  %v814_v57 = vpop.xlane.xlu1 %813 }
 0x18a   :  { %6174 = vperm.xlu0 %7009, %v3085_v24   ;;  %v4645_v39 = vrot.slane %v4637_v25, %v7591_v27  ;;  %v3187_v40 = vcombine.low %v1112_v29, %v1116_v33  ;;  %v2112_v41 = vrot.slane %v904_v53, %v7567_v22  ;;  %v2116_v42 = vrot.slane %v904_v53, %v7570_v23 }
 0x18b   :  { %v4652_v43 = vrot.slane %v4638_v34, %v7591_v27  ;;  %v3194_v63 = vrot.slane %v3184_v35, %v7591_v27  ;;  %v3201_v1 = vrot.slane %v3185_v36, %v7591_v27  ;;  %v3208_v7 = vrot.slane %v3186_v38, %v7591_v27 }
 0x18c   :  { %v3215_v4 = vrot.slane %v3187_v40, %v7591_v27  ;;  %v2120_v12 = vrot.slane %v904_v53, %v7573_v17  ;;  %v2124_v28 = vrot.slane %v904_v53, %v7576_v30  ;;  %v2128_v31 = vrot.slane %v904_v53, %v7579_v44 }
 0x18d   :  { %v4653_v32 = vcombine.low %v4645_v39, %v4652_v43  ;;  %v3216_v37 = vcombine.low %v3194_v63, %v3201_v1  ;;  %v2132_v45 = vrot.slane %v904_v53, %v7582_v46  ;;  %v2136_v47 = vrot.slane %v904_v53, %v7585_v50 }
 0x18e   :  { %v3217_v48 = vcombine.low %v3208_v7, %v3215_v4  ;;  %v2140_v49 = vrot.slane %v904_v53, %v7588_v52  ;;  %v4752_v51 = vcombine.low %v2112_v41, %v2116_v42  ;;  %v4753_v54 = vcombine.low %v2120_v12, %v2124_v28 }
 0x18f   :  { %6270 = vperm.xlu1 %7008, %v4653_v32   ;;  %v3224_v55 = vrot.slane %v3216_v37, %v7591_v27  ;;  %v4754_v56 = vcombine.low %v2128_v31, %v2132_v45  ;;  %v1056_v58 = vrot.slane %v805_v3, %v7567_v22  ;;  %v1060_v59 = vrot.slane %v805_v3, %v7570_v23  ;;  %v910_v37 = vpop.xlane.xlu1 %909 }
 0x190   :  { %v3231_v61 = vrot.slane %v3217_v48, %v7591_v27  ;;  %v4755_v60 = vcombine.low %v2136_v47, %v2140_v49  ;;  %v4762_v62 = vrot.slane %v4752_v51, %v7591_v27  ;;  %v4769_v0 = vrot.slane %v4753_v54, %v7591_v27 }
 0x191   :  { %v4776_v26 = vrot.slane %v4754_v56, %v7591_v27  ;;  %v1064_v6 = vrot.slane %v805_v3, %v7573_v17  ;;  %v1068_v9 = vrot.slane %v805_v3, %v7576_v30  ;;  %v1072_v10 = vrot.slane %v805_v3, %v7579_v44 }
 0x192   :  { %v3232_v11 = vcombine.low %v3224_v55, %v3231_v61  ;;  %v4783_v13 = vrot.slane %v4755_v60, %v7591_v27  ;;  %v4784_v53 = vcombine.low %v4762_v62, %v4769_v0  ;;  %v1076_v15 = vrot.slane %v805_v3, %v7582_v46 }
 0x193   :  { %v1080_v18 = vrot.slane %v805_v3, %v7585_v50  ;;  %v1084_v19 = vrot.slane %v805_v3, %v7588_v52  ;;  %v3135_v20 = vcombine.low %v1056_v58, %v1060_v59  ;;  %v3136_v21 = vcombine.low %v1064_v6, %v1068_v9 }
 0x194   :  { %6183 = vperm.xlu1 %7008, %v3232_v11   ;;  %v4785_v14 = vcombine.low %v4776_v26, %v4783_v13  ;;  %v4792_v16 = vrot.slane %v4784_v53, %v7591_v27  ;;  %v3137_v24 = vcombine.low %v1072_v10, %v1076_v15  ;;  %v2080_v25 = vrot.slane %v901_v2, %v7567_v22 }
 0x195   :  { %v3138_v29 = vcombine.low %v1080_v18, %v1084_v19  ;;  %v3145_v33 = vrot.slane %v3135_v20, %v7591_v27  ;;  %v3152_v34 = vrot.slane %v3136_v21, %v7591_v27  ;;  %v2084_v35 = vrot.slane %v901_v2, %v7570_v23  ;;  %v7714_v19 = vpop.xlane.xlu1 %819 }
 0x196   :  { %v4799_v36 = vrot.slane %v4785_v14, %v7591_v27  ;;  %v3159_v38 = vrot.slane %v3137_v24, %v7591_v27  ;;  %v2088_v39 = vrot.slane %v901_v2, %v7573_v17  ;;  %v2092_v40 = vrot.slane %v901_v2, %v7576_v30 }
 0x197   :  { %v3166_v41 = vrot.slane %v3138_v29, %v7591_v27  ;;  %v3167_v42 = vcombine.low %v3145_v33, %v3152_v34  ;;  %v2096_v43 = vrot.slane %v901_v2, %v7579_v44  ;;  %v2100_v63 = vrot.slane %v901_v2, %v7582_v46 }
 0x198   :  { %v4800_v1 = vcombine.low %v4792_v16, %v4799_v36  ;;  %v2104_v7 = vrot.slane %v901_v2, %v7585_v50  ;;  %v2108_v3 = vrot.slane %v901_v2, %v7588_v52  ;;  %v4703_v4 = vcombine.low %v2080_v25, %v2084_v35  ;;  %v811_v16 = vpop.xlane.xlu0 %810 }
 0x199   :  { %v3168_v12 = vcombine.low %v3159_v38, %v3166_v41  ;;  %v3175_v28 = vrot.slane %v3167_v42, %v7591_v27  ;;  %v4704_v31 = vcombine.low %v2088_v39, %v2092_v40  ;;  %v4705_v32 = vcombine.low %v2096_v43, %v2100_v63 }
 0x19a   :  { %6279 = vperm.xlu0 %7009, %v4800_v1   ;;  %v4706_v45 = vcombine.low %v2104_v7, %v2108_v3  ;;  %v4713_v47 = vrot.slane %v4703_v4, %v7591_v27  ;;  %v1152_v48 = vrot.slane %v814_v57, %v7567_v22  ;;  %v1156_v49 = vrot.slane %v814_v57, %v7570_v23 }
 0x19b   :  { %v3182_v51 = vrot.slane %v3168_v12, %v7591_v27  ;;  %v4720_v54 = vrot.slane %v4704_v31, %v7591_v27  ;;  %v4727_v55 = vrot.slane %v4705_v32, %v7591_v27  ;;  %v1160_v56 = vrot.slane %v814_v57, %v7573_v17  ;;  %v916_v31 = vpop.xlane.xlu1 %915 }
 0x19c   :  { %v4734_v58 = vrot.slane %v4706_v45, %v7591_v27  ;;  %v1164_v59 = vrot.slane %v814_v57, %v7576_v30  ;;  %v1168_v61 = vrot.slane %v814_v57, %v7579_v44  ;;  %v1172_v60 = vrot.slane %v814_v57, %v7582_v46 }
 0x19d   :  { %v3183_v62 = vcombine.low %v3175_v28, %v3182_v51  ;;  %v4735_v0 = vcombine.low %v4713_v47, %v4720_v54  ;;  %v1176_v2 = vrot.slane %v814_v57, %v7585_v50  ;;  %v1180_v26 = vrot.slane %v814_v57, %v7588_v52 }
 0x19e   :  { %v4736_v6 = vcombine.low %v4727_v55, %v4734_v58  ;;  %v3282_v9 = vcombine.low %v1152_v48, %v1156_v49  ;;  %v3283_v10 = vcombine.low %v1160_v56, %v1164_v59  ;;  %v3284_v11 = vcombine.low %v1168_v61, %v1172_v60 }
 0x19f   :  { %6180 = vperm.xlu1 %7008, %v3183_v62   ;;  %v4743_v13 = vrot.slane %v4735_v0, %v7591_v27  ;;  %v3285_v53 = vcombine.low %v1176_v2, %v1180_v26  ;;  %v2176_v15 = vrot.slane %v910_v37, %v7567_v22  ;;  %v2180_v18 = vrot.slane %v910_v37, %v7570_v23 }
 0x1a0   :  { %v4750_v20 = vrot.slane %v4736_v6, %v7591_v27  ;;  %v3292_v21 = vrot.slane %v3282_v9, %v7591_v27  ;;  %v3299_v57 = vrot.slane %v3283_v10, %v7591_v27  ;;  %v3306_v14 = vrot.slane %v3284_v11, %v7591_v27 }
 0x1a1   :  { %v3313_v24 = vrot.slane %v3285_v53, %v7591_v27  ;;  %v2184_v25 = vrot.slane %v910_v37, %v7573_v17  ;;  %v2188_v29 = vrot.slane %v910_v37, %v7576_v30  ;;  %v2192_v33 = vrot.slane %v910_v37, %v7579_v44 }
 0x1a2   :  { %v4751_v34 = vcombine.low %v4743_v13, %v4750_v20  ;;  %v3314_v35 = vcombine.low %v3292_v21, %v3299_v57  ;;  %v2196_v36 = vrot.slane %v910_v37, %v7582_v46  ;;  %v2200_v38 = vrot.slane %v910_v37, %v7585_v50 }
 0x1a3   :  { %v3315_v39 = vcombine.low %v3306_v14, %v3313_v24  ;;  %v2204_v40 = vrot.slane %v910_v37, %v7588_v52  ;;  %v4850_v41 = vcombine.low %v2176_v15, %v2180_v18  ;;  %v4851_v42 = vcombine.low %v2184_v25, %v2188_v29  ;;  %v907_v15 = vpop.xlane.xlu0 %906 }
 0x1a4   :  { %6276 = vperm.xlu1 %7008, %v4751_v34   ;;  %v3322_v43 = vrot.slane %v3314_v35, %v7591_v27  ;;  %v4852_v63 = vcombine.low %v2192_v33, %v2196_v36  ;;  %v1120_v1 = vrot.slane %v811_v16, %v7567_v22  ;;  %v1124_v7 = vrot.slane %v811_v16, %v7570_v23 }
 0x1a5   :  { %v3329_v3 = vrot.slane %v3315_v39, %v7591_v27  ;;  %v4853_v4 = vcombine.low %v2200_v38, %v2204_v40  ;;  %v4860_v12 = vrot.slane %v4850_v41, %v7591_v27  ;;  %v4867_v28 = vrot.slane %v4851_v42, %v7591_v27 }
 0x1a6   :  { %v4874_v32 = vrot.slane %v4852_v63, %v7591_v27  ;;  %v1128_v37 = vrot.slane %v811_v16, %v7573_v17  ;;  %v1132_v45 = vrot.slane %v811_v16, %v7576_v30  ;;  %v1136_v47 = vrot.slane %v811_v16, %v7579_v44 }
 0x1a7   :  { %v3330_v48 = vcombine.low %v3322_v43, %v3329_v3  ;;  %v4881_v49 = vrot.slane %v4853_v4, %v7591_v27  ;;  %v4882_v51 = vcombine.low %v4860_v12, %v4867_v28  ;;  %v1140_v54 = vrot.slane %v811_v16, %v7582_v46 }
 0x1a8   :  { %v1144_v55 = vrot.slane %v811_v16, %v7585_v50  ;;  %v1148_v56 = vrot.slane %v811_v16, %v7588_v52  ;;  %v3233_v58 = vcombine.low %v1120_v1, %v1124_v7  ;;  %v3234_v59 = vcombine.low %v1128_v37, %v1132_v45  ;;  %v826_v1 = vpop.xlane.xlu1 %825 }
 0x1a9   :  { %6189 = vperm.xlu1 %7008, %v3330_v48   ;;  %v4883_v61 = vcombine.low %v4874_v32, %v4881_v49  ;;  %v4890_v60 = vrot.slane %v4882_v51, %v7591_v27  ;;  %v3235_v62 = vcombine.low %v1136_v47, %v1140_v54  ;;  %v2240_v0 = vrot.slane %v916_v31, %v7567_v22 }
 0x1aa   :  { %v3236_v2 = vcombine.low %v1144_v55, %v1148_v56  ;;  %v3243_v26 = vrot.slane %v3233_v58, %v7591_v27  ;;  %v3250_v6 = vrot.slane %v3234_v59, %v7591_v27  ;;  %v2244_v9 = vrot.slane %v916_v31, %v7570_v23 }
 0x1ab   :  { %v4897_v10 = vrot.slane %v4883_v61, %v7591_v27  ;;  %v3257_v11 = vrot.slane %v3235_v62, %v7591_v27  ;;  %v2248_v13 = vrot.slane %v916_v31, %v7573_v17  ;;  %v2252_v53 = vrot.slane %v916_v31, %v7576_v30 }
 0x1ac   :  { %v3264_v18 = vrot.slane %v3236_v2, %v7591_v27  ;;  %v3265_v20 = vcombine.low %v3243_v26, %v3250_v6  ;;  %v2256_v21 = vrot.slane %v916_v31, %v7579_v44  ;;  %v2260_v57 = vrot.slane %v916_v31, %v7582_v46 }
 0x1ad   :  { %v4898_v14 = vcombine.low %v4890_v60, %v4897_v10  ;;  %v2264_v16 = vrot.slane %v916_v31, %v7585_v50  ;;  %v2268_v24 = vrot.slane %v916_v31, %v7588_v52  ;;  %v4948_v25 = vcombine.low %v2240_v0, %v2244_v9 }
 0x1ae   :  { %v3266_v29 = vcombine.low %v3257_v11, %v3264_v18  ;;  %v3273_v33 = vrot.slane %v3265_v20, %v7591_v27  ;;  %v4949_v34 = vcombine.low %v2248_v13, %v2252_v53  ;;  %v4950_v35 = vcombine.low %v2256_v21, %v2260_v57 }
 0x1af   :  { %6285 = vperm.xlu0 %7009, %v4898_v14   ;;  %v4951_v36 = vcombine.low %v2264_v16, %v2268_v24  ;;  %v4958_v38 = vrot.slane %v4948_v25, %v7591_v27  ;;  %v2144_v39 = vrot.slane %v907_v15, %v7567_v22  ;;  %v2148_v40 = vrot.slane %v907_v15, %v7570_v23 }
 0x1b0   :  { %v3280_v41 = vrot.slane %v3266_v29, %v7591_v27  ;;  %v4965_v42 = vrot.slane %v4949_v34, %v7591_v27  ;;  %v4972_v43 = vrot.slane %v4950_v35, %v7591_v27  ;;  %v2152_v63 = vrot.slane %v907_v15, %v7573_v17 }
 0x1b1   :  { %v4979_v7 = vrot.slane %v4951_v36, %v7591_v27  ;;  %v2156_v3 = vrot.slane %v907_v15, %v7576_v30  ;;  %v2160_v4 = vrot.slane %v907_v15, %v7579_v44  ;;  %v2164_v12 = vrot.slane %v907_v15, %v7582_v46 }
 0x1b2   :  { %v3281_v28 = vcombine.low %v3273_v33, %v3280_v41  ;;  %v4980_v31 = vcombine.low %v4958_v38, %v4965_v42  ;;  %v2168_v32 = vrot.slane %v907_v15, %v7585_v50  ;;  %v2172_v37 = vrot.slane %v907_v15, %v7588_v52  ;;  %v922_v33 = vpop.xlane.xlu1 %921 }
 0x1b3   :  { %v4981_v45 = vcombine.low %v4972_v43, %v4979_v7  ;;  %v4801_v47 = vcombine.low %v2144_v39, %v2148_v40  ;;  %v4802_v48 = vcombine.low %v2152_v63, %v2156_v3  ;;  %v4803_v49 = vcombine.low %v2160_v4, %v2164_v12 }
 0x1b4   :  { %6186 = vperm.xlu1 %7008, %v3281_v28   ;;  %v4988_v51 = vrot.slane %v4980_v31, %v7591_v27  ;;  %v4804_v54 = vcombine.low %v2168_v32, %v2172_v37  ;;  %v1280_v55 = vrot.slane %v826_v1, %v7567_v22  ;;  %v1284_v56 = vrot.slane %v826_v1, %v7570_v23 }
 0x1b5   :  { %v4995_v58 = vrot.slane %v4981_v45, %v7591_v27  ;;  %v4811_v59 = vrot.slane %v4801_v47, %v7591_v27  ;;  %v4818_v61 = vrot.slane %v4802_v48, %v7591_v27  ;;  %v4825_v60 = vrot.slane %v4803_v49, %v7591_v27 }
 0x1b6   :  { %v4832_v62 = vrot.slane %v4804_v54, %v7591_v27  ;;  %v1288_v0 = vrot.slane %v826_v1, %v7573_v17  ;;  %v1292_v2 = vrot.slane %v826_v1, %v7576_v30  ;;  %v1296_v26 = vrot.slane %v826_v1, %v7579_v44 }
 0x1b7   :  { %v4996_v6 = vcombine.low %v4988_v51, %v4995_v58  ;;  %v4833_v9 = vcombine.low %v4811_v59, %v4818_v61  ;;  %v1300_v10 = vrot.slane %v826_v1, %v7582_v46  ;;  %v1304_v11 = vrot.slane %v826_v1, %v7585_v50  ;;  %v817_v51 = vpop.xlane.xlu0 %816 }
 0x1b8   :  { %v4834_v13 = vcombine.low %v4825_v60, %v4832_v62  ;;  %v1308_v53 = vrot.slane %v826_v1, %v7588_v52  ;;  %v3478_v15 = vcombine.low %v1280_v55, %v1284_v56  ;;  %v3479_v18 = vcombine.low %v1288_v0, %v1292_v2 }
 0x1b9   :  { %6291 = vperm.xlu0 %7009, %v4996_v6   ;;  %v4841_v20 = vrot.slane %v4833_v9, %v7591_v27  ;;  %v3480_v21 = vcombine.low %v1296_v26, %v1300_v10  ;;  %v1216_v57 = vrot.slane %v7714_v19, %v7567_v22  ;;  %v1220_v14 = vrot.slane %v7714_v19, %v7570_v23 }
 0x1ba   :  { %v4848_v16 = vrot.slane %v4834_v13, %v7591_v27  ;;  %v3481_v24 = vcombine.low %v1304_v11, %v1308_v53  ;;  %v3488_v25 = vrot.slane %v3478_v15, %v7591_v27  ;;  %v3495_v29 = vrot.slane %v3479_v18, %v7591_v27 }
 0x1bb   :  { %v3502_v34 = vrot.slane %v3480_v21, %v7591_v27  ;;  %v1224_v35 = vrot.slane %v7714_v19, %v7573_v17  ;;  %v1228_v36 = vrot.slane %v7714_v19, %v7576_v30  ;;  %v1232_v38 = vrot.slane %v7714_v19, %v7579_v44  ;;  %v832_v21 = vpop.xlane.xlu1 %831 }
 0x1bc   :  { %v4849_v39 = vcombine.low %v4841_v20, %v4848_v16  ;;  %v3509_v40 = vrot.slane %v3481_v24, %v7591_v27  ;;  %v3510_v41 = vcombine.low %v3488_v25, %v3495_v29  ;;  %v1236_v42 = vrot.slane %v7714_v19, %v7582_v46 }
 0x1bd   :  { %v1240_v43 = vrot.slane %v7714_v19, %v7585_v50  ;;  %v1244_v63 = vrot.slane %v7714_v19, %v7588_v52  ;;  %v3380_v1 = vcombine.low %v1216_v57, %v1220_v14  ;;  %v3381_v7 = vcombine.low %v1224_v35, %v1228_v36 }
 0x1be   :  { %6282 = vperm.xlu1 %7008, %v4849_v39   ;;  %v3511_v3 = vcombine.low %v3502_v34, %v3509_v40  ;;  %v3518_v4 = vrot.slane %v3510_v41, %v7591_v27  ;;  %v3382_v12 = vcombine.low %v1232_v38, %v1236_v42  ;;  %v2304_v28 = vrot.slane %v922_v33, %v7567_v22 }
 0x1bf   :  { %v3383_v31 = vcombine.low %v1240_v43, %v1244_v63  ;;  %v3390_v32 = vrot.slane %v3380_v1, %v7591_v27  ;;  %v3397_v37 = vrot.slane %v3381_v7, %v7591_v27  ;;  %v2308_v45 = vrot.slane %v922_v33, %v7570_v23  ;;  %v913_v63 = vpop.xlane.xlu0 %912 }
 0x1c0   :  { %v3525_v47 = vrot.slane %v3511_v3, %v7591_v27  ;;  %v3404_v19 = vrot.slane %v3382_v12, %v7591_v27  ;;  %v2312_v48 = vrot.slane %v922_v33, %v7573_v17  ;;  %v2316_v49 = vrot.slane %v922_v33, %v7576_v30 }
 0x1c1   :  { %v3411_v54 = vrot.slane %v3383_v31, %v7591_v27  ;;  %v3412_v55 = vcombine.low %v3390_v32, %v3397_v37  ;;  %v2320_v56 = vrot.slane %v922_v33, %v7579_v44  ;;  %v2324_v58 = vrot.slane %v922_v33, %v7582_v46 }
 0x1c2   :  { %v3526_v59 = vcombine.low %v3518_v4, %v3525_v47  ;;  %v2328_v61 = vrot.slane %v922_v33, %v7585_v50  ;;  %v2332_v60 = vrot.slane %v922_v33, %v7588_v52  ;;  %v5046_v62 = vcombine.low %v2304_v28, %v2308_v45 }
 0x1c3   :  { %v3413_v0 = vcombine.low %v3404_v19, %v3411_v54  ;;  %v3420_v2 = vrot.slane %v3412_v55, %v7591_v27  ;;  %v5047_v26 = vcombine.low %v2312_v48, %v2316_v49  ;;  %v5048_v6 = vcombine.low %v2320_v56, %v2324_v58 }
 0x1c4   :  { %6201 = vperm.xlu0 %7009, %v3526_v59   ;;  %v5049_v9 = vcombine.low %v2328_v61, %v2332_v60  ;;  %v5056_v10 = vrot.slane %v5046_v62, %v7591_v27  ;;  %v1184_v11 = vrot.slane %v817_v51, %v7567_v22  ;;  %v1188_v13 = vrot.slane %v817_v51, %v7570_v23 }
 0x1c5   :  { %v3427_v53 = vrot.slane %v3413_v0, %v7591_v27  ;;  %v5063_v15 = vrot.slane %v5047_v26, %v7591_v27  ;;  %v5070_v18 = vrot.slane %v5048_v6, %v7591_v27  ;;  %v1192_v20 = vrot.slane %v817_v51, %v7573_v17  ;;  %v7853_v26 = vpop.xlane.xlu1 %927 }
 0x1c6   :  { %v5077_v57 = vrot.slane %v5049_v9, %v7591_v27  ;;  %v1196_v14 = vrot.slane %v817_v51, %v7576_v30  ;;  %v1200_v16 = vrot.slane %v817_v51, %v7579_v44  ;;  %v1204_v24 = vrot.slane %v817_v51, %v7582_v46 }
 0x1c7   :  { %v3428_v25 = vcombine.low %v3420_v2, %v3427_v53  ;;  %v5078_v29 = vcombine.low %v5056_v10, %v5063_v15  ;;  %v1208_v33 = vrot.slane %v817_v51, %v7585_v50  ;;  %v1212_v34 = vrot.slane %v817_v51, %v7588_v52  ;;  %v823_v2 = vpop.xlane.xlu0 %822 }
 0x1c8   :  { %v5079_v35 = vcombine.low %v5070_v18, %v5077_v57  ;;  %v3331_v36 = vcombine.low %v1184_v11, %v1188_v13  ;;  %v3332_v38 = vcombine.low %v1192_v20, %v1196_v14  ;;  %v3333_v39 = vcombine.low %v1200_v16, %v1204_v24 }
 0x1c9   :  { %6195 = vperm.xlu1 %7008, %v3428_v25   ;;  %v5086_v40 = vrot.slane %v5078_v29, %v7591_v27  ;;  %v3334_v41 = vcombine.low %v1208_v33, %v1212_v34  ;;  %v1344_v42 = vrot.slane %v832_v21, %v7567_v22  ;;  %v1348_v43 = vrot.slane %v832_v21, %v7570_v23 }
 0x1ca   :  { %v5093_v1 = vrot.slane %v5079_v35, %v7591_v27  ;;  %v3341_v7 = vrot.slane %v3331_v36, %v7591_v27  ;;  %v3348_v3 = vrot.slane %v3332_v38, %v7591_v27  ;;  %v3355_v4 = vrot.slane %v3333_v39, %v7591_v27 }
 0x1cb   :  { %v3362_v12 = vrot.slane %v3334_v41, %v7591_v27  ;;  %v1352_v28 = vrot.slane %v832_v21, %v7573_v17  ;;  %v1356_v31 = vrot.slane %v832_v21, %v7576_v30  ;;  %v1360_v32 = vrot.slane %v832_v21, %v7579_v44 }
 0x1cc   :  { %v5094_v37 = vcombine.low %v5086_v40, %v5093_v1  ;;  %v3363_v45 = vcombine.low %v3341_v7, %v3348_v3  ;;  %v1364_v47 = vrot.slane %v832_v21, %v7582_v46  ;;  %v1368_v19 = vrot.slane %v832_v21, %v7585_v50 }
 0x1cd   :  { %v3364_v48 = vcombine.low %v3355_v4, %v3362_v12  ;;  %v1372_v49 = vrot.slane %v832_v21, %v7588_v52  ;;  %v3576_v51 = vcombine.low %v1344_v42, %v1348_v43  ;;  %v3577_v54 = vcombine.low %v1352_v28, %v1356_v31  ;;  %v838_v42 = vpop.xlane.xlu1 %837 }
 0x1ce   :  { %6297 = vperm.xlu0 %7009, %v5094_v37   ;;  %v3371_v55 = vrot.slane %v3363_v45, %v7591_v27  ;;  %v3578_v56 = vcombine.low %v1360_v32, %v1364_v47  ;;  %v2208_v58 = vrot.slane %v913_v63, %v7567_v22  ;;  %v2212_v59 = vrot.slane %v913_v63, %v7570_v23 }
 0x1cf   :  { %v3378_v61 = vrot.slane %v3364_v48, %v7591_v27  ;;  %v3579_v60 = vcombine.low %v1368_v19, %v1372_v49  ;;  %v3586_v62 = vrot.slane %v3576_v51, %v7591_v27  ;;  %v3593_v0 = vrot.slane %v3577_v54, %v7591_v27 }
 0x1d0   :  { %v3600_v6 = vrot.slane %v3578_v56, %v7591_v27  ;;  %v2216_v9 = vrot.slane %v913_v63, %v7573_v17  ;;  %v2220_v10 = vrot.slane %v913_v63, %v7576_v30  ;;  %v2224_v11 = vrot.slane %v913_v63, %v7579_v44 }
 0x1d1   :  { %v3379_v13 = vcombine.low %v3371_v55, %v3378_v61  ;;  %v3607_v53 = vrot.slane %v3579_v60, %v7591_v27  ;;  %v3608_v15 = vcombine.low %v3586_v62, %v3593_v0  ;;  %v2228_v18 = vrot.slane %v913_v63, %v7582_v46 }
 0x1d2   :  { %v2232_v20 = vrot.slane %v913_v63, %v7585_v50  ;;  %v2236_v21 = vrot.slane %v913_v63, %v7588_v52  ;;  %v4899_v57 = vcombine.low %v2208_v58, %v2212_v59  ;;  %v4900_v14 = vcombine.low %v2216_v9, %v2220_v10  ;;  %v919_v58 = vpop.xlane.xlu0 %918 }
 0x1d3   :  { %6192 = vperm.xlu1 %7008, %v3379_v13   ;;  %v3609_v16 = vcombine.low %v3600_v6, %v3607_v53  ;;  %v3616_v24 = vrot.slane %v3608_v15, %v7591_v27  ;;  %v4901_v25 = vcombine.low %v2224_v11, %v2228_v18  ;;  %v1248_v29 = vrot.slane %v823_v2, %v7567_v22 }
 0x1d4   :  { %v4902_v33 = vcombine.low %v2232_v20, %v2236_v21  ;;  %v4909_v34 = vrot.slane %v4899_v57, %v7591_v27  ;;  %v4916_v35 = vrot.slane %v4900_v14, %v7591_v27  ;;  %v1252_v36 = vrot.slane %v823_v2, %v7570_v23  ;;  %v7894_v57 = vpop.xlane.xlu1 %933 }
 0x1d5   :  { %v3623_v38 = vrot.slane %v3609_v16, %v7591_v27  ;;  %v4923_v39 = vrot.slane %v4901_v25, %v7591_v27  ;;  %v1256_v40 = vrot.slane %v823_v2, %v7573_v17  ;;  %v1260_v41 = vrot.slane %v823_v2, %v7576_v30 }
 0x1d6   :  { %v4930_v43 = vrot.slane %v4902_v33, %v7591_v27  ;;  %v4931_v63 = vcombine.low %v4909_v34, %v4916_v35  ;;  %v1264_v1 = vrot.slane %v823_v2, %v7579_v44  ;;  %v1268_v7 = vrot.slane %v823_v2, %v7582_v46 }
 0x1d7   :  { %v3624_v3 = vcombine.low %v3616_v24, %v3623_v38  ;;  %v1272_v4 = vrot.slane %v823_v2, %v7585_v50  ;;  %v1276_v12 = vrot.slane %v823_v2, %v7588_v52  ;;  %v3429_v28 = vcombine.low %v1248_v29, %v1252_v36 }
 0x1d8   :  { %v4932_v31 = vcombine.low %v4923_v39, %v4930_v43  ;;  %v4939_v32 = vrot.slane %v4931_v63, %v7591_v27  ;;  %v3430_v37 = vcombine.low %v1256_v40, %v1260_v41  ;;  %v3431_v45 = vcombine.low %v1264_v1, %v1268_v7 }
 0x1d9   :  { %6207 = vperm.xlu0 %7009, %v3624_v3   ;;  %v3432_v47 = vcombine.low %v1272_v4, %v1276_v12  ;;  %v3439_v19 = vrot.slane %v3429_v28, %v7591_v27  ;;  %v1408_v48 = vrot.slane %v838_v42, %v7567_v22  ;;  %v1412_v49 = vrot.slane %v838_v42, %v7570_v23 }
 0x1da   :  { %v4946_v51 = vrot.slane %v4932_v31, %v7591_v27  ;;  %v3446_v54 = vrot.slane %v3430_v37, %v7591_v27  ;;  %v3453_v55 = vrot.slane %v3431_v45, %v7591_v27  ;;  %v1416_v56 = vrot.slane %v838_v42, %v7573_v17  ;;  %v844_v37 = vpop.xlane.xlu1 %843 }
 0x1db   :  { %v3460_v59 = vrot.slane %v3432_v47, %v7591_v27  ;;  %v1420_v61 = vrot.slane %v838_v42, %v7576_v30  ;;  %v1424_v60 = vrot.slane %v838_v42, %v7579_v44  ;;  %v1428_v62 = vrot.slane %v838_v42, %v7582_v46 }
 0x1dc   :  { %v4947_v0 = vcombine.low %v4939_v32, %v4946_v51  ;;  %v3461_v2 = vcombine.low %v3439_v19, %v3446_v54  ;;  %v1432_v6 = vrot.slane %v838_v42, %v7585_v50  ;;  %v1436_v9 = vrot.slane %v838_v42, %v7588_v52 }
 0x1dd   :  { %v3462_v10 = vcombine.low %v3453_v55, %v3460_v59  ;;  %v3674_v11 = vcombine.low %v1408_v48, %v1412_v49  ;;  %v3675_v13 = vcombine.low %v1416_v56, %v1420_v61  ;;  %v3676_v53 = vcombine.low %v1424_v60, %v1428_v62 }
 0x1de   :  { %6288 = vperm.xlu1 %7008, %v4947_v0   ;;  %v3469_v15 = vrot.slane %v3461_v2, %v7591_v27  ;;  %v3677_v18 = vcombine.low %v1432_v6, %v1436_v9  ;;  %v2272_v20 = vrot.slane %v919_v58, %v7567_v22  ;;  %v2276_v21 = vrot.slane %v919_v58, %v7570_v23 }
 0x1df   :  { %v3476_v14 = vrot.slane %v3462_v10, %v7591_v27  ;;  %v3684_v16 = vrot.slane %v3674_v11, %v7591_v27  ;;  %v3691_v24 = vrot.slane %v3675_v13, %v7591_v27  ;;  %v3698_v25 = vrot.slane %v3676_v53, %v7591_v27  ;;  %v829_v13 = vpop.xlane.xlu0 %828 }
 0x1e0   :  { %v3705_v29 = vrot.slane %v3677_v18, %v7591_v27  ;;  %v2280_v33 = vrot.slane %v919_v58, %v7573_v17  ;;  %v2284_v34 = vrot.slane %v919_v58, %v7576_v30  ;;  %v2288_v35 = vrot.slane %v919_v58, %v7579_v44 }
 0x1e1   :  { %v3477_v36 = vcombine.low %v3469_v15, %v3476_v14  ;;  %v3706_v38 = vcombine.low %v3684_v16, %v3691_v24  ;;  %v2292_v39 = vrot.slane %v919_v58, %v7582_v46  ;;  %v2296_v40 = vrot.slane %v919_v58, %v7585_v50 }
 0x1e2   :  { %v3707_v41 = vcombine.low %v3698_v25, %v3705_v29  ;;  %v2300_v42 = vrot.slane %v919_v58, %v7588_v52  ;;  %v4997_v43 = vcombine.low %v2272_v20, %v2276_v21  ;;  %v4998_v63 = vcombine.low %v2280_v33, %v2284_v34 }
 0x1e3   :  { %6198 = vperm.xlu1 %7008, %v3477_v36   ;;  %v3714_v1 = vrot.slane %v3706_v38, %v7591_v27  ;;  %v4999_v7 = vcombine.low %v2288_v35, %v2292_v39  ;;  %v2368_v3 = vrot.slane %v7853_v26, %v7567_v22  ;;  %v2372_v4 = vrot.slane %v7853_v26, %v7570_v23 }
 0x1e4   :  { %v3721_v12 = vrot.slane %v3707_v41, %v7591_v27  ;;  %v5000_v28 = vcombine.low %v2296_v40, %v2300_v42  ;;  %v5007_v31 = vrot.slane %v4997_v43, %v7591_v27  ;;  %v5014_v32 = vrot.slane %v4998_v63, %v7591_v27  ;;  %v7947_v43 = vpop.xlane.xlu1 %939 }
 0x1e5   :  { %v5021_v45 = vrot.slane %v4999_v7, %v7591_v27  ;;  %v2376_v47 = vrot.slane %v7853_v26, %v7573_v17  ;;  %v2380_v19 = vrot.slane %v7853_v26, %v7576_v30  ;;  %v2384_v48 = vrot.slane %v7853_v26, %v7579_v44 }
 0x1e6   :  { %v3722_v49 = vcombine.low %v3714_v1, %v3721_v12  ;;  %v5028_v51 = vrot.slane %v5000_v28, %v7591_v27  ;;  %v5029_v54 = vcombine.low %v5007_v31, %v5014_v32  ;;  %v2388_v55 = vrot.slane %v7853_v26, %v7582_v46 }
 0x1e7   :  { %v2392_v56 = vrot.slane %v7853_v26, %v7585_v50  ;;  %v2396_v58 = vrot.slane %v7853_v26, %v7588_v52  ;;  %v5144_v59 = vcombine.low %v2368_v3, %v2372_v4  ;;  %v5145_v61 = vcombine.low %v2376_v47, %v2380_v19  ;;  %v925_v4 = vpop.xlane.xlu0 %924 }
 0x1e8   :  { %6213 = vperm.xlu0 %7009, %v3722_v49   ;;  %v5030_v60 = vcombine.low %v5021_v45, %v5028_v51  ;;  %v5037_v62 = vrot.slane %v5029_v54, %v7591_v27  ;;  %v5146_v0 = vcombine.low %v2384_v48, %v2388_v55  ;;  %v1472_v2 = vrot.slane %v844_v37, %v7567_v22 }
 0x1e9   :  { %v5147_v6 = vcombine.low %v2392_v56, %v2396_v58  ;;  %v5154_v9 = vrot.slane %v5144_v59, %v7591_v27  ;;  %v5161_v10 = vrot.slane %v5145_v61, %v7591_v27  ;;  %v1476_v11 = vrot.slane %v844_v37, %v7570_v23 }
 0x1ea   :  { %v5044_v53 = vrot.slane %v5030_v60, %v7591_v27  ;;  %v5168_v26 = vrot.slane %v5146_v0, %v7591_v27  ;;  %v1480_v15 = vrot.slane %v844_v37, %v7573_v17  ;;  %v1484_v18 = vrot.slane %v844_v37, %v7576_v30 }
 0x1eb   :  { %v5175_v20 = vrot.slane %v5147_v6, %v7591_v27  ;;  %v5176_v21 = vcombine.low %v5154_v9, %v5161_v10  ;;  %v1488_v14 = vrot.slane %v844_v37, %v7579_v44  ;;  %v1492_v16 = vrot.slane %v844_v37, %v7582_v46 }
 0x1ec   :  { %v5045_v24 = vcombine.low %v5037_v62, %v5044_v53  ;;  %v1496_v25 = vrot.slane %v844_v37, %v7585_v50  ;;  %v1500_v29 = vrot.slane %v844_v37, %v7588_v52  ;;  %v3772_v33 = vcombine.low %v1472_v2, %v1476_v11  ;;  %v850_v2 = vpop.xlane.xlu1 %849 }
 0x1ed   :  { %v5177_v34 = vcombine.low %v5168_v26, %v5175_v20  ;;  %v5184_v35 = vrot.slane %v5176_v21, %v7591_v27  ;;  %v3773_v36 = vcombine.low %v1480_v15, %v1484_v18  ;;  %v3774_v38 = vcombine.low %v1488_v14, %v1492_v16 }
 0x1ee   :  { %6294 = vperm.xlu1 %7008, %v5045_v24   ;;  %v3775_v39 = vcombine.low %v1496_v25, %v1500_v29  ;;  %v3782_v40 = vrot.slane %v3772_v33, %v7591_v27  ;;  %v1312_v41 = vrot.slane %v829_v13, %v7567_v22  ;;  %v1316_v42 = vrot.slane %v829_v13, %v7570_v23 }
 0x1ef   :  { %v5191_v63 = vrot.slane %v5177_v34, %v7591_v27  ;;  %v3789_v1 = vrot.slane %v3773_v36, %v7591_v27  ;;  %v3796_v7 = vrot.slane %v3774_v38, %v7591_v27  ;;  %v1320_v3 = vrot.slane %v829_v13, %v7573_v17 }
 0x1f0   :  { %v3803_v12 = vrot.slane %v3775_v39, %v7591_v27  ;;  %v1324_v28 = vrot.slane %v829_v13, %v7576_v30  ;;  %v1328_v31 = vrot.slane %v829_v13, %v7579_v44  ;;  %v1332_v32 = vrot.slane %v829_v13, %v7582_v46 }
 0x1f1   :  { %v5192_v37 = vcombine.low %v5184_v35, %v5191_v63  ;;  %v3804_v45 = vcombine.low %v3782_v40, %v3789_v1  ;;  %v1336_v47 = vrot.slane %v829_v13, %v7585_v50  ;;  %v1340_v19 = vrot.slane %v829_v13, %v7588_v52 }
 0x1f2   :  { %v3805_v48 = vcombine.low %v3796_v7, %v3803_v12  ;;  %v3527_v49 = vcombine.low %v1312_v41, %v1316_v42  ;;  %v3528_v51 = vcombine.low %v1320_v3, %v1324_v28  ;;  %v3529_v54 = vcombine.low %v1328_v31, %v1332_v32 }
 0x1f3   :  { %6303 = vperm.xlu1 %7008, %v5192_v37   ;;  %v3812_v55 = vrot.slane %v3804_v45, %v7591_v27  ;;  %v3530_v56 = vcombine.low %v1336_v47, %v1340_v19  ;;  %v2336_v58 = vrot.slane %v925_v4, %v7567_v22  ;;  %v2340_v59 = vrot.slane %v925_v4, %v7570_v23 }
 0x1f4   :  { %v3819_v61 = vrot.slane %v3805_v48, %v7591_v27  ;;  %v3537_v60 = vrot.slane %v3527_v49, %v7591_v27  ;;  %v3544_v62 = vrot.slane %v3528_v51, %v7591_v27  ;;  %v3551_v0 = vrot.slane %v3529_v54, %v7591_v27 }
 0x1f5   :  { %v3558_v6 = vrot.slane %v3530_v56, %v7591_v27  ;;  %v2344_v9 = vrot.slane %v925_v4, %v7573_v17  ;;  %v2348_v10 = vrot.slane %v925_v4, %v7576_v30  ;;  %v2352_v11 = vrot.slane %v925_v4, %v7579_v44 }
 0x1f6   :  { %v3820_v13 = vcombine.low %v3812_v55, %v3819_v61  ;;  %v3559_v53 = vcombine.low %v3537_v60, %v3544_v62  ;;  %v2356_v26 = vrot.slane %v925_v4, %v7582_v46  ;;  %v2360_v15 = vrot.slane %v925_v4, %v7585_v50 }
 0x1f7   :  { %v3560_v18 = vcombine.low %v3551_v0, %v3558_v6  ;;  %v2364_v20 = vrot.slane %v925_v4, %v7588_v52  ;;  %v5095_v21 = vcombine.low %v2336_v58, %v2340_v59  ;;  %v5096_v14 = vcombine.low %v2344_v9, %v2348_v10  ;;  %v946_v58 = vpop.xlane.xlu1 %945 }
 0x1f8   :  { %6219 = vperm.xlu0 %7009, %v3820_v13   ;;  %v3567_v16 = vrot.slane %v3559_v53, %v7591_v27  ;;  %v5097_v24 = vcombine.low %v2352_v11, %v2356_v26  ;;  %v1536_v25 = vrot.slane %v850_v2, %v7567_v22  ;;  %v1540_v29 = vrot.slane %v850_v2, %v7570_v23 }
 0x1f9   :  { %v3574_v33 = vrot.slane %v3560_v18, %v7591_v27  ;;  %v5098_v34 = vcombine.low %v2360_v15, %v2364_v20  ;;  %v5105_v35 = vrot.slane %v5095_v21, %v7591_v27  ;;  %v5112_v36 = vrot.slane %v5096_v14, %v7591_v27 }
 0x1fa   :  { %v5119_v38 = vrot.slane %v5097_v24, %v7591_v27  ;;  %v1544_v39 = vrot.slane %v850_v2, %v7573_v17  ;;  %v1548_v40 = vrot.slane %v850_v2, %v7576_v30  ;;  %v1552_v41 = vrot.slane %v850_v2, %v7579_v44  ;;  %v835_v24 = vpop.xlane.xlu0 %834 }
 0x1fb   :  { %v3575_v42 = vcombine.low %v3567_v16, %v3574_v33  ;;  %v5126_v63 = vrot.slane %v5098_v34, %v7591_v27  ;;  %v5127_v1 = vcombine.low %v5105_v35, %v5112_v36  ;;  %v1556_v7 = vrot.slane %v850_v2, %v7582_v46 }
 0x1fc   :  { %v1560_v3 = vrot.slane %v850_v2, %v7585_v50  ;;  %v1564_v4 = vrot.slane %v850_v2, %v7588_v52  ;;  %v3870_v12 = vcombine.low %v1536_v25, %v1540_v29  ;;  %v3871_v28 = vcombine.low %v1544_v39, %v1548_v40 }
 0x1fd   :  { %6204 = vperm.xlu1 %7008, %v3575_v42   ;;  %v5128_v31 = vcombine.low %v5119_v38, %v5126_v63  ;;  %v5135_v32 = vrot.slane %v5127_v1, %v7591_v27  ;;  %v3872_v37 = vcombine.low %v1552_v41, %v1556_v7  ;;  %v2432_v45 = vrot.slane %v7894_v57, %v7567_v22 }
 0x1fe   :  { %v3873_v47 = vcombine.low %v1560_v3, %v1564_v4  ;;  %v3880_v19 = vrot.slane %v3870_v12, %v7591_v27  ;;  %v3887_v48 = vrot.slane %v3871_v28, %v7591_v27  ;;  %v2436_v49 = vrot.slane %v7894_v57, %v7570_v23 }
 0x1ff   :  { %v5142_v51 = vrot.slane %v5128_v31, %v7591_v27  ;;  %v3894_v54 = vrot.slane %v3872_v37, %v7591_v27  ;;  %v2440_v55 = vrot.slane %v7894_v57, %v7573_v17  ;;  %v2444_v56 = vrot.slane %v7894_v57, %v7576_v30  ;;  %v856_v37 = vpop.xlane.xlu1 %855 }
 0x200   :  { %v3901_v59 = vrot.slane %v3873_v47, %v7591_v27  ;;  %v3902_v61 = vcombine.low %v3880_v19, %v3887_v48  ;;  %v2448_v60 = vrot.slane %v7894_v57, %v7579_v44  ;;  %v2452_v62 = vrot.slane %v7894_v57, %v7582_v46 }
 0x201   :  { %v5143_v0 = vcombine.low %v5135_v32, %v5142_v51  ;;  %v2456_v2 = vrot.slane %v7894_v57, %v7585_v50  ;;  %v2460_v6 = vrot.slane %v7894_v57, %v7588_v52  ;;  %v5242_v9 = vcombine.low %v2432_v45, %v2436_v49 }
 0x202   :  { %v3903_v10 = vcombine.low %v3894_v54, %v3901_v59  ;;  %v3910_v11 = vrot.slane %v3902_v61, %v7591_v27  ;;  %v5243_v13 = vcombine.low %v2440_v55, %v2444_v56  ;;  %v5244_v53 = vcombine.low %v2448_v60, %v2452_v62 }
 0x203   :  { %6300 = vperm.xlu1 %7008, %v5143_v0   ;;  %v5245_v26 = vcombine.low %v2456_v2, %v2460_v6  ;;  %v5252_v15 = vrot.slane %v5242_v9, %v7591_v27  ;;  %v2560_v18 = vrot.slane %v946_v58, %v7567_v22  ;;  %v2564_v20 = vrot.slane %v946_v58, %v7570_v23 }
 0x204   :  { %v3917_v21 = vrot.slane %v3903_v10, %v7591_v27  ;;  %v5259_v14 = vrot.slane %v5243_v13, %v7591_v27  ;;  %v5266_v57 = vrot.slane %v5244_v53, %v7591_v27  ;;  %v2568_v16 = vrot.slane %v946_v58, %v7573_v17  ;;  %v931_v13 = vpop.xlane.xlu0 %930 }
 0x205   :  { %v5273_v25 = vrot.slane %v5245_v26, %v7591_v27  ;;  %v2572_v29 = vrot.slane %v946_v58, %v7576_v30  ;;  %v2576_v33 = vrot.slane %v946_v58, %v7579_v44  ;;  %v2580_v34 = vrot.slane %v946_v58, %v7582_v46 }
 0x206   :  { %v3918_v35 = vcombine.low %v3910_v11, %v3917_v21  ;;  %v5274_v36 = vcombine.low %v5252_v15, %v5259_v14  ;;  %v2584_v38 = vrot.slane %v946_v58, %v7585_v50  ;;  %v2588_v39 = vrot.slane %v946_v58, %v7588_v52 }
 0x207   :  { %v5275_v40 = vcombine.low %v5266_v57, %v5273_v25  ;;  %v5438_v41 = vcombine.low %v2560_v18, %v2564_v20  ;;  %v5439_v42 = vcombine.low %v2568_v16, %v2572_v29  ;;  %v5440_v63 = vcombine.low %v2576_v33, %v2580_v34 }
 0x208   :  { %6225 = vperm.xlu0 %7009, %v3918_v35   ;;  %v5282_v1 = vrot.slane %v5274_v36, %v7591_v27  ;;  %v5441_v7 = vcombine.low %v2584_v38, %v2588_v39  ;;  %v1376_v3 = vrot.slane %v835_v24, %v7567_v22  ;;  %v1380_v4 = vrot.slane %v835_v24, %v7570_v23 }
 0x209   :  { %v5289_v12 = vrot.slane %v5275_v40, %v7591_v27  ;;  %v5448_v28 = vrot.slane %v5438_v41, %v7591_v27  ;;  %v5455_v31 = vrot.slane %v5439_v42, %v7591_v27  ;;  %v5462_v32 = vrot.slane %v5440_v63, %v7591_v27 }
 0x20a   :  { %v5469_v45 = vrot.slane %v5441_v7, %v7591_v27  ;;  %v1384_v47 = vrot.slane %v835_v24, %v7573_v17  ;;  %v1388_v19 = vrot.slane %v835_v24, %v7576_v30  ;;  %v1392_v48 = vrot.slane %v835_v24, %v7579_v44 }
 0x20b   :  { %v5290_v49 = vcombine.low %v5282_v1, %v5289_v12  ;;  %v5470_v51 = vcombine.low %v5448_v28, %v5455_v31  ;;  %v1396_v54 = vrot.slane %v835_v24, %v7582_v46  ;;  %v1400_v55 = vrot.slane %v835_v24, %v7585_v50 }
 0x20c   :  { %v5471_v56 = vcombine.low %v5462_v32, %v5469_v45  ;;  %v1404_v58 = vrot.slane %v835_v24, %v7588_v52  ;;  %v3625_v59 = vcombine.low %v1376_v3, %v1380_v4  ;;  %v3626_v61 = vcombine.low %v1384_v47, %v1388_v19  ;;  %v952_v3 = vpop.xlane.xlu1 %951 }
 0x20d   :  { %6309 = vperm.xlu1 %7008, %v5290_v49   ;;  %v5478_v60 = vrot.slane %v5470_v51, %v7591_v27  ;;  %v3627_v62 = vcombine.low %v1392_v48, %v1396_v54  ;;  %v1600_v0 = vrot.slane %v856_v37, %v7567_v22  ;;  %v1604_v2 = vrot.slane %v856_v37, %v7570_v23 }
 0x20e   :  { %v5485_v6 = vrot.slane %v5471_v56, %v7591_v27  ;;  %v3628_v9 = vcombine.low %v1400_v55, %v1404_v58  ;;  %v3635_v10 = vrot.slane %v3625_v59, %v7591_v27  ;;  %v3642_v11 = vrot.slane %v3626_v61, %v7591_v27 }
 0x20f   :  { %v3649_v53 = vrot.slane %v3627_v62, %v7591_v27  ;;  %v1608_v26 = vrot.slane %v856_v37, %v7573_v17  ;;  %v1612_v15 = vrot.slane %v856_v37, %v7576_v30  ;;  %v1616_v18 = vrot.slane %v856_v37, %v7579_v44 }
 0x210   :  { %v5486_v20 = vcombine.low %v5478_v60, %v5485_v6  ;;  %v3656_v21 = vrot.slane %v3628_v9, %v7591_v27  ;;  %v3657_v14 = vcombine.low %v3635_v10, %v3642_v11  ;;  %v1620_v57 = vrot.slane %v856_v37, %v7582_v46 }
 0x211   :  { %v1624_v16 = vrot.slane %v856_v37, %v7585_v50  ;;  %v1628_v24 = vrot.slane %v856_v37, %v7588_v52  ;;  %v3968_v25 = vcombine.low %v1600_v0, %v1604_v2  ;;  %v3969_v29 = vcombine.low %v1608_v26, %v1612_v15  ;;  %v841_v0 = vpop.xlane.xlu0 %840 }
 0x212   :  { %6321 = vperm.xlu0 %7009, %v5486_v20   ;;  %v3658_v33 = vcombine.low %v3649_v53, %v3656_v21  ;;  %v3665_v34 = vrot.slane %v3657_v14, %v7591_v27  ;;  %v3970_v35 = vcombine.low %v1616_v18, %v1620_v57  ;;  %v2400_v36 = vrot.slane %v931_v13, %v7567_v22 }
 0x213   :  { %v3971_v38 = vcombine.low %v1624_v16, %v1628_v24  ;;  %v3978_v39 = vrot.slane %v3968_v25, %v7591_v27  ;;  %v3985_v40 = vrot.slane %v3969_v29, %v7591_v27  ;;  %v2404_v41 = vrot.slane %v931_v13, %v7570_v23 }
 0x214   :  { %v3672_v42 = vrot.slane %v3658_v33, %v7591_v27  ;;  %v3992_v63 = vrot.slane %v3970_v35, %v7591_v27  ;;  %v2408_v1 = vrot.slane %v931_v13, %v7573_v17  ;;  %v2412_v7 = vrot.slane %v931_v13, %v7576_v30  ;;  %v862_v35 = vpop.xlane.xlu1 %861 }
 0x215   :  { %v3999_v4 = vrot.slane %v3971_v38, %v7591_v27  ;;  %v4000_v12 = vcombine.low %v3978_v39, %v3985_v40  ;;  %v2416_v28 = vrot.slane %v931_v13, %v7579_v44  ;;  %v2420_v31 = vrot.slane %v931_v13, %v7582_v46 }
 0x216   :  { %v3673_v32 = vcombine.low %v3665_v34, %v3672_v42  ;;  %v2424_v37 = vrot.slane %v931_v13, %v7585_v50  ;;  %v2428_v45 = vrot.slane %v931_v13, %v7588_v52  ;;  %v5193_v47 = vcombine.low %v2400_v36, %v2404_v41 }
 0x217   :  { %v4001_v19 = vcombine.low %v3992_v63, %v3999_v4  ;;  %v4008_v48 = vrot.slane %v4000_v12, %v7591_v27  ;;  %v5194_v49 = vcombine.low %v2408_v1, %v2412_v7  ;;  %v5195_v51 = vcombine.low %v2416_v28, %v2420_v31 }
 0x218   :  { %6210 = vperm.xlu1 %7008, %v3673_v32   ;;  %v5196_v54 = vcombine.low %v2424_v37, %v2428_v45  ;;  %v5203_v55 = vrot.slane %v5193_v47, %v7591_v27  ;;  %v2624_v56 = vrot.slane %v952_v3, %v7567_v22  ;;  %v2628_v58 = vrot.slane %v952_v3, %v7570_v23 }
 0x219   :  { %v4015_v59 = vrot.slane %v4001_v19, %v7591_v27  ;;  %v5210_v61 = vrot.slane %v5194_v49, %v7591_v27  ;;  %v5217_v60 = vrot.slane %v5195_v51, %v7591_v27  ;;  %v2632_v62 = vrot.slane %v952_v3, %v7573_v17  ;;  %v937_v49 = vpop.xlane.xlu0 %936 }
 0x21a   :  { %v5224_v2 = vrot.slane %v5196_v54, %v7591_v27  ;;  %v2636_v6 = vrot.slane %v952_v3, %v7576_v30  ;;  %v2640_v9 = vrot.slane %v952_v3, %v7579_v44  ;;  %v2644_v10 = vrot.slane %v952_v3, %v7582_v46 }
 0x21b   :  { %v4016_v11 = vcombine.low %v4008_v48, %v4015_v59  ;;  %v5225_v13 = vcombine.low %v5203_v55, %v5210_v61  ;;  %v2648_v53 = vrot.slane %v952_v3, %v7585_v50  ;;  %v2652_v26 = vrot.slane %v952_v3, %v7588_v52 }
 0x21c   :  { %v5226_v15 = vcombine.low %v5217_v60, %v5224_v2  ;;  %v5536_v18 = vcombine.low %v2624_v56, %v2628_v58  ;;  %v5537_v20 = vcombine.low %v2632_v62, %v2636_v6  ;;  %v5538_v21 = vcombine.low %v2640_v9, %v2644_v10 }
 0x21d   :  { %6231 = vperm.xlu0 %7009, %v4016_v11   ;;  %v5233_v14 = vrot.slane %v5225_v13, %v7591_v27  ;;  %v5539_v57 = vcombine.low %v2648_v53, %v2652_v26  ;;  %v1440_v16 = vrot.slane %v841_v0, %v7567_v22  ;;  %v1444_v24 = vrot.slane %v841_v0, %v7570_v23 }
 0x21e   :  { %v5240_v25 = vrot.slane %v5226_v15, %v7591_v27  ;;  %v5546_v29 = vrot.slane %v5536_v18, %v7591_v27  ;;  %v5553_v33 = vrot.slane %v5537_v20, %v7591_v27  ;;  %v5560_v34 = vrot.slane %v5538_v21, %v7591_v27 }
 0x21f   :  { %v5567_v36 = vrot.slane %v5539_v57, %v7591_v27  ;;  %v1448_v38 = vrot.slane %v841_v0, %v7573_v17  ;;  %v1452_v39 = vrot.slane %v841_v0, %v7576_v30  ;;  %v1456_v40 = vrot.slane %v841_v0, %v7579_v44 }
 0x220   :  { %v5241_v41 = vcombine.low %v5233_v14, %v5240_v25  ;;  %v5568_v42 = vcombine.low %v5546_v29, %v5553_v33  ;;  %v1460_v63 = vrot.slane %v841_v0, %v7582_v46  ;;  %v1464_v1 = vrot.slane %v841_v0, %v7585_v50 }
 0x221   :  { %v5569_v7 = vcombine.low %v5560_v34, %v5567_v36  ;;  %v1468_v3 = vrot.slane %v841_v0, %v7588_v52  ;;  %v3723_v4 = vcombine.low %v1440_v16, %v1444_v24  ;;  %v3724_v12 = vcombine.low %v1448_v38, %v1452_v39  ;;  %v958_v16 = vpop.xlane.xlu1 %957 }
 0x222   :  { %6306 = vperm.xlu1 %7008, %v5241_v41   ;;  %v5576_v28 = vrot.slane %v5568_v42, %v7591_v27  ;;  %v3725_v31 = vcombine.low %v1456_v40, %v1460_v63  ;;  %v1664_v32 = vrot.slane %v862_v35, %v7567_v22  ;;  %v1668_v37 = vrot.slane %v862_v35, %v7570_v23 }
 0x223   :  { %v5583_v45 = vrot.slane %v5569_v7, %v7591_v27  ;;  %v3726_v47 = vcombine.low %v1464_v1, %v1468_v3  ;;  %v3733_v19 = vrot.slane %v3723_v4, %v7591_v27  ;;  %v3740_v48 = vrot.slane %v3724_v12, %v7591_v27 }
 0x224   :  { %v3747_v51 = vrot.slane %v3725_v31, %v7591_v27  ;;  %v1672_v54 = vrot.slane %v862_v35, %v7573_v17  ;;  %v1676_v55 = vrot.slane %v862_v35, %v7576_v30  ;;  %v1680_v56 = vrot.slane %v862_v35, %v7579_v44 }
 0x225   :  { %v5584_v58 = vcombine.low %v5576_v28, %v5583_v45  ;;  %v3754_v59 = vrot.slane %v3726_v47, %v7591_v27  ;;  %v3755_v61 = vcombine.low %v3733_v19, %v3740_v48  ;;  %v1684_v60 = vrot.slane %v862_v35, %v7582_v46 }
 0x226   :  { %v1688_v62 = vrot.slane %v862_v35, %v7585_v50  ;;  %v1692_v0 = vrot.slane %v862_v35, %v7588_v52  ;;  %v4066_v2 = vcombine.low %v1664_v32, %v1668_v37  ;;  %v4067_v6 = vcombine.low %v1672_v54, %v1676_v55  ;;  %v847_v32 = vpop.xlane.xlu0 %846 }
 0x227   :  { %6327 = vperm.xlu0 %7009, %v5584_v58   ;;  %v3756_v9 = vcombine.low %v3747_v51, %v3754_v59  ;;  %v3763_v10 = vrot.slane %v3755_v61, %v7591_v27  ;;  %v4068_v11 = vcombine.low %v1680_v56, %v1684_v60  ;;  %v2464_v13 = vrot.slane %v937_v49, %v7567_v22 }
 0x228   :  { %v4069_v53 = vcombine.low %v1688_v62, %v1692_v0  ;;  %v4076_v26 = vrot.slane %v4066_v2, %v7591_v27  ;;  %v4083_v15 = vrot.slane %v4067_v6, %v7591_v27  ;;  %v2468_v18 = vrot.slane %v937_v49, %v7570_v23 }
 0x229   :  { %v3770_v20 = vrot.slane %v3756_v9, %v7591_v27  ;;  %v4090_v21 = vrot.slane %v4068_v11, %v7591_v27  ;;  %v2472_v14 = vrot.slane %v937_v49, %v7573_v17  ;;  %v2476_v57 = vrot.slane %v937_v49, %v7576_v30  ;;  %v868_v11 = vpop.xlane.xlu1 %867 }
 0x22a   :  { %v4097_v24 = vrot.slane %v4069_v53, %v7591_v27  ;;  %v4098_v25 = vcombine.low %v4076_v26, %v4083_v15  ;;  %v2480_v29 = vrot.slane %v937_v49, %v7579_v44  ;;  %v2484_v33 = vrot.slane %v937_v49, %v7582_v46 }
 0x22b   :  { %v3771_v34 = vcombine.low %v3763_v10, %v3770_v20  ;;  %v2488_v35 = vrot.slane %v937_v49, %v7585_v50  ;;  %v2492_v36 = vrot.slane %v937_v49, %v7588_v52  ;;  %v5291_v38 = vcombine.low %v2464_v13, %v2468_v18 }
 0x22c   :  { %v4099_v39 = vcombine.low %v4090_v21, %v4097_v24  ;;  %v4106_v40 = vrot.slane %v4098_v25, %v7591_v27  ;;  %v5292_v41 = vcombine.low %v2472_v14, %v2476_v57  ;;  %v5293_v42 = vcombine.low %v2480_v29, %v2484_v33  ;;  %v943_v29 = vpop.xlane.xlu0 %942 }
 0x22d   :  { %6216 = vperm.xlu1 %7008, %v3771_v34   ;;  %v5294_v63 = vcombine.low %v2488_v35, %v2492_v36  ;;  %v5301_v1 = vrot.slane %v5291_v38, %v7591_v27  ;;  %v2688_v7 = vrot.slane %v958_v16, %v7567_v22  ;;  %v2692_v3 = vrot.slane %v958_v16, %v7570_v23 }
 0x22e   :  { %v4113_v4 = vrot.slane %v4099_v39, %v7591_v27  ;;  %v5308_v12 = vrot.slane %v5292_v41, %v7591_v27  ;;  %v5315_v28 = vrot.slane %v5293_v42, %v7591_v27  ;;  %v2696_v31 = vrot.slane %v958_v16, %v7573_v17 }
 0x22f   :  { %v5322_v37 = vrot.slane %v5294_v63, %v7591_v27  ;;  %v2700_v45 = vrot.slane %v958_v16, %v7576_v30  ;;  %v2704_v47 = vrot.slane %v958_v16, %v7579_v44  ;;  %v2708_v19 = vrot.slane %v958_v16, %v7582_v46 }
 0x230   :  { %v4114_v48 = vcombine.low %v4106_v40, %v4113_v4  ;;  %v5323_v49 = vcombine.low %v5301_v1, %v5308_v12  ;;  %v2712_v51 = vrot.slane %v958_v16, %v7585_v50  ;;  %v2716_v54 = vrot.slane %v958_v16, %v7588_v52 }
 0x231   :  { %v5324_v55 = vcombine.low %v5315_v28, %v5322_v37  ;;  %v5634_v56 = vcombine.low %v2688_v7, %v2692_v3  ;;  %v5635_v58 = vcombine.low %v2696_v31, %v2700_v45  ;;  %v5636_v59 = vcombine.low %v2704_v47, %v2708_v19 }
 0x232   :  { %6237 = vperm.xlu0 %7009, %v4114_v48   ;;  %v5331_v61 = vrot.slane %v5323_v49, %v7591_v27  ;;  %v5637_v60 = vcombine.low %v2712_v51, %v2716_v54  ;;  %v1504_v62 = vrot.slane %v847_v32, %v7567_v22  ;;  %v1508_v0 = vrot.slane %v847_v32, %v7570_v23  ;;  %v8165_v51 = vpop.xlane.xlu0 %852 }
 0x233   :  { %v5338_v2 = vrot.slane %v5324_v55, %v7591_v27  ;;  %v5644_v6 = vrot.slane %v5634_v56, %v7591_v27  ;;  %v5651_v9 = vrot.slane %v5635_v58, %v7591_v27  ;;  %v5658_v10 = vrot.slane %v5636_v59, %v7591_v27 }
 0x234   :  { %v5665_v13 = vrot.slane %v5637_v60, %v7591_v27  ;;  %v1512_v53 = vrot.slane %v847_v32, %v7573_v17  ;;  %v1516_v26 = vrot.slane %v847_v32, %v7576_v30  ;;  %v1520_v15 = vrot.slane %v847_v32, %v7579_v44 }
 0x235   :  { %v5339_v18 = vcombine.low %v5331_v61, %v5338_v2  ;;  %v5666_v20 = vcombine.low %v5644_v6, %v5651_v9  ;;  %v1524_v21 = vrot.slane %v847_v32, %v7582_v46  ;;  %v1528_v14 = vrot.slane %v847_v32, %v7585_v50 }
 0x236   :  { %v5667_v57 = vcombine.low %v5658_v10, %v5665_v13  ;;  %v1532_v16 = vrot.slane %v847_v32, %v7588_v52  ;;  %v3821_v24 = vcombine.low %v1504_v62, %v1508_v0  ;;  %v3822_v25 = vcombine.low %v1512_v53, %v1516_v26  ;;  %v964_v0 = vpop.xlane.xlu1 %963 }
 0x237   :  { %6312 = vperm.xlu1 %7008, %v5339_v18   ;;  %v5674_v33 = vrot.slane %v5666_v20, %v7591_v27  ;;  %v3823_v34 = vcombine.low %v1520_v15, %v1524_v21  ;;  %v1728_v35 = vrot.slane %v868_v11, %v7567_v22  ;;  %v1732_v36 = vrot.slane %v868_v11, %v7570_v23 }
 0x238   :  { %v5681_v38 = vrot.slane %v5667_v57, %v7591_v27  ;;  %v3824_v39 = vcombine.low %v1528_v14, %v1532_v16  ;;  %v3831_v40 = vrot.slane %v3821_v24, %v7591_v27  ;;  %v3838_v41 = vrot.slane %v3822_v25, %v7591_v27  ;;  %v8183_v25 = vpop.xlane.xlu0 %948 }
 0x239   :  { %v3845_v42 = vrot.slane %v3823_v34, %v7591_v27  ;;  %v1736_v63 = vrot.slane %v868_v11, %v7573_v17  ;;  %v1740_v1 = vrot.slane %v868_v11, %v7576_v30  ;;  %v1744_v7 = vrot.slane %v868_v11, %v7579_v44 }
 0x23a   :  { %v5682_v3 = vcombine.low %v5674_v33, %v5681_v38  ;;  %v3852_v4 = vrot.slane %v3824_v39, %v7591_v27  ;;  %v3853_v12 = vcombine.low %v3831_v40, %v3838_v41  ;;  %v1748_v28 = vrot.slane %v868_v11, %v7582_v46 }
 0x23b   :  { %v1752_v31 = vrot.slane %v868_v11, %v7585_v50  ;;  %v1756_v32 = vrot.slane %v868_v11, %v7588_v52  ;;  %v4164_v37 = vcombine.low %v1728_v35, %v1732_v36  ;;  %v4165_v45 = vcombine.low %v1736_v63, %v1740_v1 }
 0x23c   :  { %6333 = vperm.xlu0 %7009, %v5682_v3   ;;  %v3854_v47 = vcombine.low %v3845_v42, %v3852_v4  ;;  %v3861_v19 = vrot.slane %v3853_v12, %v7591_v27  ;;  %v4166_v48 = vcombine.low %v1744_v7, %v1748_v28  ;;  %v2528_v49 = vrot.slane %v943_v29, %v7567_v22 }
 0x23d   :  { %v4167_v54 = vcombine.low %v1752_v31, %v1756_v32  ;;  %v4174_v55 = vrot.slane %v4164_v37, %v7591_v27  ;;  %v4181_v56 = vrot.slane %v4165_v45, %v7591_v27  ;;  %v2532_v58 = vrot.slane %v943_v29, %v7570_v23 }
 0x23e   :  { %v3868_v59 = vrot.slane %v3854_v47, %v7591_v27  ;;  %v4188_v61 = vrot.slane %v4166_v48, %v7591_v27  ;;  %v2536_v60 = vrot.slane %v943_v29, %v7573_v17  ;;  %v2540_v62 = vrot.slane %v943_v29, %v7576_v30 }
 0x23f   :  { %v4195_v2 = vrot.slane %v4167_v54, %v7591_v27  ;;  %v4196_v6 = vcombine.low %v4174_v55, %v4181_v56  ;;  %v2544_v9 = vrot.slane %v943_v29, %v7579_v44  ;;  %v2548_v10 = vrot.slane %v943_v29, %v7582_v46  ;;  %v874_v54 = vpop.xlane.xlu1 %873 }
 0x240   :  { %v3869_v11 = vcombine.low %v3861_v19, %v3868_v59  ;;  %v2552_v13 = vrot.slane %v943_v29, %v7585_v50  ;;  %v2556_v53 = vrot.slane %v943_v29, %v7588_v52  ;;  %v5389_v26 = vcombine.low %v2528_v49, %v2532_v58  ;;  %v8204_v49 = vpop.xlane.xlu0 %858 }
 0x241   :  { %v4197_v15 = vcombine.low %v4188_v61, %v4195_v2  ;;  %v4204_v18 = vrot.slane %v4196_v6, %v7591_v27  ;;  %v5390_v20 = vcombine.low %v2536_v60, %v2540_v62  ;;  %v5391_v21 = vcombine.low %v2544_v9, %v2548_v10 }
 0x242   :  { %6222 = vperm.xlu1 %7008, %v3869_v11   ;;  %v5392_v14 = vcombine.low %v2552_v13, %v2556_v53  ;;  %v5399_v57 = vrot.slane %v5389_v26, %v7591_v27  ;;  %v2752_v16 = vrot.slane %v964_v0, %v7567_v22  ;;  %v2756_v24 = vrot.slane %v964_v0, %v7570_v23 }
 0x243   :  { %v4211_v33 = vrot.slane %v4197_v15, %v7591_v27  ;;  %v5406_v29 = vrot.slane %v5390_v20, %v7591_v27  ;;  %v5413_v34 = vrot.slane %v5391_v21, %v7591_v27  ;;  %v2760_v35 = vrot.slane %v964_v0, %v7573_v17 }
 0x244   :  { %v5420_v36 = vrot.slane %v5392_v14, %v7591_v27  ;;  %v2764_v38 = vrot.slane %v964_v0, %v7576_v30  ;;  %v2768_v39 = vrot.slane %v964_v0, %v7579_v44  ;;  %v2772_v40 = vrot.slane %v964_v0, %v7582_v46 }
 0x245   :  { %v4212_v41 = vcombine.low %v4204_v18, %v4211_v33  ;;  %v5421_v42 = vcombine.low %v5399_v57, %v5406_v29  ;;  %v2776_v63 = vrot.slane %v964_v0, %v7585_v50  ;;  %v2780_v1 = vrot.slane %v964_v0, %v7588_v52 }
 0x246   :  { %v5422_v7 = vcombine.low %v5413_v34, %v5420_v36  ;;  %v5732_v3 = vcombine.low %v2752_v16, %v2756_v24  ;;  %v5733_v4 = vcombine.low %v2760_v35, %v2764_v38  ;;  %v5734_v12 = vcombine.low %v2768_v39, %v2772_v40  ;;  %v8229_v24 = vpop.xlane.xlu0 %954 }
 0x247   :  { %6243 = vperm.xlu0 %7009, %v4212_v41   ;;  %v5429_v28 = vrot.slane %v5421_v42, %v7591_v27  ;;  %v5735_v31 = vcombine.low %v2776_v63, %v2780_v1  ;;  %v1568_v32 = vrot.slane %v8165_v51, %v7567_v22  ;;  %v1572_v37 = vrot.slane %v8165_v51, %v7570_v23 }
 0x248   :  { %v5436_v45 = vrot.slane %v5422_v7, %v7591_v27  ;;  %v5742_v47 = vrot.slane %v5732_v3, %v7591_v27  ;;  %v5749_v19 = vrot.slane %v5733_v4, %v7591_v27  ;;  %v5756_v48 = vrot.slane %v5734_v12, %v7591_v27 }
 0x249   :  { %v5763_v55 = vrot.slane %v5735_v31, %v7591_v27  ;;  %v1576_v56 = vrot.slane %v8165_v51, %v7573_v17  ;;  %v1580_v58 = vrot.slane %v8165_v51, %v7576_v30  ;;  %v1584_v59 = vrot.slane %v8165_v51, %v7579_v44 }
 0x24a   :  { %v5437_v61 = vcombine.low %v5429_v28, %v5436_v45  ;;  %v5764_v60 = vcombine.low %v5742_v47, %v5749_v19  ;;  %v1588_v62 = vrot.slane %v8165_v51, %v7582_v46  ;;  %v1592_v0 = vrot.slane %v8165_v51, %v7585_v50  ;;  %v970_v45 = vpop.xlane.xlu1 %969 }
 0x24b   :  { %v5765_v2 = vcombine.low %v5756_v48, %v5763_v55  ;;  %v1596_v6 = vrot.slane %v8165_v51, %v7588_v52  ;;  %v3919_v9 = vcombine.low %v1568_v32, %v1572_v37  ;;  %v3920_v10 = vcombine.low %v1576_v56, %v1580_v58  ;;  %v8253_v55 = vpop.xlane.xlu0 %864 }
 0x24c   :  { %6318 = vperm.xlu1 %7008, %v5437_v61   ;;  %v5772_v11 = vrot.slane %v5764_v60, %v7591_v27  ;;  %v3921_v13 = vcombine.low %v1584_v59, %v1588_v62  ;;  %v1792_v53 = vrot.slane %v874_v54, %v7567_v22  ;;  %v1796_v26 = vrot.slane %v874_v54, %v7570_v23 }
 0x24d   :  { %v5779_v15 = vrot.slane %v5765_v2, %v7591_v27  ;;  %v3922_v18 = vcombine.low %v1592_v0, %v1596_v6  ;;  %v3929_v20 = vrot.slane %v3919_v9, %v7591_v27  ;;  %v3936_v21 = vrot.slane %v3920_v10, %v7591_v27 }
 0x24e   :  { %v3943_v14 = vrot.slane %v3921_v13, %v7591_v27  ;;  %v1800_v51 = vrot.slane %v874_v54, %v7573_v17  ;;  %v1804_v57 = vrot.slane %v874_v54, %v7576_v30  ;;  %v1808_v16 = vrot.slane %v874_v54, %v7579_v44 }
 0x24f   :  { %v5780_v33 = vcombine.low %v5772_v11, %v5779_v15  ;;  %v3950_v29 = vrot.slane %v3922_v18, %v7591_v27  ;;  %v3951_v34 = vcombine.low %v3929_v20, %v3936_v21  ;;  %v1812_v35 = vrot.slane %v874_v54, %v7582_v46 }
 0x250   :  { %v1816_v36 = vrot.slane %v874_v54, %v7585_v50  ;;  %v1820_v38 = vrot.slane %v874_v54, %v7588_v52  ;;  %v4262_v39 = vcombine.low %v1792_v53, %v1796_v26  ;;  %v4263_v40 = vcombine.low %v1800_v51, %v1804_v57 }
 0x251   :  { %6339 = vperm.xlu0 %7009, %v5780_v33   ;;  %v3952_v41 = vcombine.low %v3943_v14, %v3950_v29  ;;  %v3959_v42 = vrot.slane %v3951_v34, %v7591_v27  ;;  %v4264_v63 = vcombine.low %v1808_v16, %v1812_v35  ;;  %v2592_v1 = vrot.slane %v8183_v25, %v7567_v22  ;;  %v8273_v33 = vpop.xlane.xlu0 %960 }
 0x252   :  { %v4265_v7 = vcombine.low %v1816_v36, %v1820_v38  ;;  %v4272_v3 = vrot.slane %v4262_v39, %v7591_v27  ;;  %v4279_v4 = vrot.slane %v4263_v40, %v7591_v27  ;;  %v2596_v12 = vrot.slane %v8183_v25, %v7570_v23 }
 0x253   :  { %v3966_v28 = vrot.slane %v3952_v41, %v7591_v27  ;;  %v4286_v31 = vrot.slane %v4264_v63, %v7591_v27  ;;  %v2600_v32 = vrot.slane %v8183_v25, %v7573_v17  ;;  %v2604_v37 = vrot.slane %v8183_v25, %v7576_v30 }
 0x254   :  { %v4293_v47 = vrot.slane %v4265_v7, %v7591_v27  ;;  %v4294_v19 = vcombine.low %v4272_v3, %v4279_v4  ;;  %v2608_v48 = vrot.slane %v8183_v25, %v7579_v44  ;;  %v2612_v54 = vrot.slane %v8183_v25, %v7582_v46  ;;  %v880_v3 = vpop.xlane.xlu1 %879 }
 0x255   :  { %v3967_v56 = vcombine.low %v3959_v42, %v3966_v28  ;;  %v2616_v58 = vrot.slane %v8183_v25, %v7585_v50  ;;  %v2620_v59 = vrot.slane %v8183_v25, %v7588_v52  ;;  %v5487_v61 = vcombine.low %v2592_v1, %v2596_v12 }
 0x256   :  { %v4295_v60 = vcombine.low %v4286_v31, %v4293_v47  ;;  %v4302_v62 = vrot.slane %v4294_v19, %v7591_v27  ;;  %v5488_v0 = vcombine.low %v2600_v32, %v2604_v37  ;;  %v5489_v2 = vcombine.low %v2608_v48, %v2612_v54 }
 0x257   :  { %6228 = vperm.xlu1 %7008, %v3967_v56   ;;  %v5490_v6 = vcombine.low %v2616_v58, %v2620_v59  ;;  %v5497_v9 = vrot.slane %v5487_v61, %v7591_v27  ;;  %v2816_v10 = vrot.slane %v970_v45, %v7567_v22  ;;  %v2820_v11 = vrot.slane %v970_v45, %v7570_v23  ;;  %v8297_v58 = vpop.xlane.xlu0 %870 }
 0x258   :  { %v4309_v13 = vrot.slane %v4295_v60, %v7591_v27  ;;  %v5504_v53 = vrot.slane %v5488_v0, %v7591_v27  ;;  %v5511_v25 = vrot.slane %v5489_v2, %v7591_v27  ;;  %v2824_v26 = vrot.slane %v970_v45, %v7573_v17 }
 0x259   :  { %v5518_v15 = vrot.slane %v5490_v6, %v7591_v27  ;;  %v2828_v18 = vrot.slane %v970_v45, %v7576_v30  ;;  %v2832_v20 = vrot.slane %v970_v45, %v7579_v44  ;;  %v2836_v21 = vrot.slane %v970_v45, %v7582_v46 }
 0x25a   :  { %v4310_v14 = vcombine.low %v4302_v62, %v4309_v13  ;;  %v5519_v51 = vcombine.low %v5497_v9, %v5504_v53  ;;  %v2840_v57 = vrot.slane %v970_v45, %v7585_v50  ;;  %v2844_v16 = vrot.slane %v970_v45, %v7588_v52 }
 0x25b   :  { %v5520_v29 = vcombine.low %v5511_v25, %v5518_v15  ;;  %v5830_v34 = vcombine.low %v2816_v10, %v2820_v11  ;;  %v5831_v35 = vcombine.low %v2824_v26, %v2828_v18  ;;  %v5832_v36 = vcombine.low %v2832_v20, %v2836_v21 }
 0x25c   :  { %6249 = vperm.xlu0 %7009, %v4310_v14   ;;  %v5527_v38 = vrot.slane %v5519_v51, %v7591_v27  ;;  %v5833_v39 = vcombine.low %v2840_v57, %v2844_v16  ;;  %v1632_v40 = vrot.slane %v8204_v49, %v7567_v22  ;;  %v1636_v41 = vrot.slane %v8204_v49, %v7570_v23  ;;  %v976_v51 = vpop.xlane.xlu1 %975 }
 0x25d   :  { %v5534_v42 = vrot.slane %v5520_v29, %v7591_v27  ;;  %v5840_v63 = vrot.slane %v5830_v34, %v7591_v27  ;;  %v5847_v1 = vrot.slane %v5831_v35, %v7591_v27  ;;  %v5854_v7 = vrot.slane %v5832_v36, %v7591_v27  ;;  %v8316_v35 = vpop.xlane.xlu0 %966 }
 0x25e   :  { %v5861_v4 = vrot.slane %v5833_v39, %v7591_v27  ;;  %v1640_v12 = vrot.slane %v8204_v49, %v7573_v17  ;;  %v1644_v28 = vrot.slane %v8204_v49, %v7576_v30  ;;  %v1648_v31 = vrot.slane %v8204_v49, %v7579_v44 }
 0x25f   :  { %v5535_v32 = vcombine.low %v5527_v38, %v5534_v42  ;;  %v5862_v37 = vcombine.low %v5840_v63, %v5847_v1  ;;  %v1652_v45 = vrot.slane %v8204_v49, %v7582_v46  ;;  %v1656_v47 = vrot.slane %v8204_v49, %v7585_v50 }
 0x260   :  { %v5863_v19 = vcombine.low %v5854_v7, %v5861_v4  ;;  %v1660_v48 = vrot.slane %v8204_v49, %v7588_v52  ;;  %v4017_v54 = vcombine.low %v1632_v40, %v1636_v41  ;;  %v4018_v56 = vcombine.low %v1640_v12, %v1644_v28  ;;  %v8333_v28 = vpop.xlane.xlu1 %885 }
 0x261   :  { %6324 = vperm.xlu1 %7008, %v5535_v32   ;;  %v5870_v59 = vrot.slane %v5862_v37, %v7591_v27  ;;  %v4019_v61 = vcombine.low %v1648_v31, %v1652_v45  ;;  %v1856_v60 = vrot.slane %v880_v3, %v7567_v22  ;;  %v1860_v62 = vrot.slane %v880_v3, %v7570_v23 }
 0x262   :  { %v5877_v0 = vrot.slane %v5863_v19, %v7591_v27  ;;  %v4020_v2 = vcombine.low %v1656_v47, %v1660_v48  ;;  %v4027_v6 = vrot.slane %v4017_v54, %v7591_v27  ;;  %v4034_v9 = vrot.slane %v4018_v56, %v7591_v27 }
 0x263   :  { %v4041_v49 = vrot.slane %v4019_v61, %v7591_v27  ;;  %v1864_v10 = vrot.slane %v880_v3, %v7573_v17  ;;  %v1868_v11 = vrot.slane %v880_v3, %v7576_v30  ;;  %v1872_v13 = vrot.slane %v880_v3, %v7579_v44 }
 0x264   :  { %v5878_v53 = vcombine.low %v5870_v59, %v5877_v0  ;;  %v4048_v25 = vrot.slane %v4020_v2, %v7591_v27  ;;  %v4049_v26 = vcombine.low %v4027_v6, %v4034_v9  ;;  %v1876_v15 = vrot.slane %v880_v3, %v7582_v46 }
 0x265   :  { %v1880_v18 = vrot.slane %v880_v3, %v7585_v50  ;;  %v1884_v20 = vrot.slane %v880_v3, %v7588_v52  ;;  %v4360_v21 = vcombine.low %v1856_v60, %v1860_v62  ;;  %v4361_v14 = vcombine.low %v1864_v10, %v1868_v11  ;;  %v8343_v62 = vpop.xlane.xlu0 %876 }
 0x266   :  { %6345 = vperm.xlu0 %7009, %v5878_v53   ;;  %v4050_v57 = vcombine.low %v4041_v49, %v4048_v25  ;;  %v4057_v16 = vrot.slane %v4049_v26, %v7591_v27  ;;  %v4362_v29 = vcombine.low %v1872_v13, %v1876_v15  ;;  %v2656_v34 = vrot.slane %v8229_v24, %v7567_v22  ;;  %v8355_v15 = vpop.xlane.xlu1 %981 }
 0x267   :  { %v4363_v36 = vcombine.low %v1880_v18, %v1884_v20  ;;  %v4370_v38 = vrot.slane %v4360_v21, %v7591_v27  ;;  %v4377_v39 = vrot.slane %v4361_v14, %v7591_v27  ;;  %v2660_v40 = vrot.slane %v8229_v24, %v7570_v23 }
 0x268   :  { %v4064_v41 = vrot.slane %v4050_v57, %v7591_v27  ;;  %v4384_v42 = vrot.slane %v4362_v29, %v7591_v27  ;;  %v2664_v63 = vrot.slane %v8229_v24, %v7573_v17  ;;  %v2668_v1 = vrot.slane %v8229_v24, %v7576_v30 }
 0x269   :  { %v4391_v7 = vrot.slane %v4363_v36, %v7591_v27  ;;  %v4392_v3 = vcombine.low %v4370_v38, %v4377_v39  ;;  %v2672_v4 = vrot.slane %v8229_v24, %v7579_v44  ;;  %v2676_v12 = vrot.slane %v8229_v24, %v7582_v46 }
 0x26a   :  { %v4065_v31 = vcombine.low %v4057_v16, %v4064_v41  ;;  %v2680_v32 = vrot.slane %v8229_v24, %v7585_v50  ;;  %v2684_v37 = vrot.slane %v8229_v24, %v7588_v52  ;;  %v5585_v45 = vcombine.low %v2656_v34, %v2660_v40  ;;  %v973_v40 = vpop.xlane.xlu0 %972 }
 0x26b   :  { %v4393_v47 = vcombine.low %v4384_v42, %v4391_v7  ;;  %v4400_v19 = vrot.slane %v4392_v3, %v7591_v27  ;;  %v5586_v48 = vcombine.low %v2664_v63, %v2668_v1  ;;  %v5587_v54 = vcombine.low %v2672_v4, %v2676_v12 }
 0x26c   :  { %6234 = vperm.xlu1 %7008, %v4065_v31   ;;  %v5588_v56 = vcombine.low %v2680_v32, %v2684_v37  ;;  %v5595_v59 = vrot.slane %v5585_v45, %v7591_v27  ;;  %v2880_v61 = vrot.slane %v976_v51, %v7567_v22  ;;  %v2884_v60 = vrot.slane %v976_v51, %v7570_v23  ;;  %v8377_v31 = vpop.xlane.xlu1 %891 }
 0x26d   :  { %v4407_v0 = vrot.slane %v4393_v47, %v7591_v27  ;;  %v5602_v24 = vrot.slane %v5586_v48, %v7591_v27  ;;  %v5609_v2 = vrot.slane %v5587_v54, %v7591_v27  ;;  %v2888_v6 = vrot.slane %v976_v51, %v7573_v17 }
 0x26e   :  { %v5616_v9 = vrot.slane %v5588_v56, %v7591_v27  ;;  %v2892_v49 = vrot.slane %v976_v51, %v7576_v30  ;;  %v2896_v10 = vrot.slane %v976_v51, %v7579_v44  ;;  %v2900_v11 = vrot.slane %v976_v51, %v7582_v46 }
 0x26f   :  { %v4408_v13 = vcombine.low %v4400_v19, %v4407_v0  ;;  %v5617_v53 = vcombine.low %v5595_v59, %v5602_v24  ;;  %v2904_v25 = vrot.slane %v976_v51, %v7585_v50  ;;  %v2908_v26 = vrot.slane %v976_v51, %v7588_v52 }
 0x270   :  { %v5618_v18 = vcombine.low %v5609_v2, %v5616_v9  ;;  %v5928_v20 = vcombine.low %v2880_v61, %v2884_v60  ;;  %v5929_v21 = vcombine.low %v2888_v6, %v2892_v49  ;;  %v5930_v14 = vcombine.low %v2896_v10, %v2900_v11  ;;  %v8391_v9 = vpop.xlane.xlu1 %987 }
 0x271   :  { %6255 = vperm.xlu0 %7009, %v4408_v13   ;;  %v5625_v57 = vrot.slane %v5617_v53, %v7591_v27  ;;  %v5931_v16 = vcombine.low %v2904_v25, %v2908_v26  ;;  %v1696_v29 = vrot.slane %v8253_v55, %v7567_v22  ;;  %v1700_v34 = vrot.slane %v8253_v55, %v7570_v23 }
 0x272   :  { %v5632_v36 = vrot.slane %v5618_v18, %v7591_v27  ;;  %v5938_v51 = vrot.slane %v5928_v20, %v7591_v27  ;;  %v5945_v38 = vrot.slane %v5929_v21, %v7591_v27  ;;  %v5952_v39 = vrot.slane %v5930_v14, %v7591_v27 }
 0x273   :  { %v5959_v41 = vrot.slane %v5931_v16, %v7591_v27  ;;  %v1704_v42 = vrot.slane %v8253_v55, %v7573_v17  ;;  %v1708_v63 = vrot.slane %v8253_v55, %v7576_v30  ;;  %v1712_v1 = vrot.slane %v8253_v55, %v7579_v44 }
 0x274   :  { %v5633_v7 = vcombine.low %v5625_v57, %v5632_v36  ;;  %v5960_v3 = vcombine.low %v5938_v51, %v5945_v38  ;;  %v1716_v4 = vrot.slane %v8253_v55, %v7582_v46  ;;  %v1720_v12 = vrot.slane %v8253_v55, %v7585_v50 }
 0x275   :  { %v5961_v32 = vcombine.low %v5952_v39, %v5959_v41  ;;  %v1724_v37 = vrot.slane %v8253_v55, %v7588_v52  ;;  %v4115_v45 = vcombine.low %v1696_v29, %v1700_v34  ;;  %v4116_v47 = vcombine.low %v1704_v42, %v1708_v63 }
 0x276   :  { %6330 = vperm.xlu1 %7008, %v5633_v7   ;;  %v5968_v19 = vrot.slane %v5960_v3, %v7591_v27  ;;  %v4117_v48 = vcombine.low %v1712_v1, %v1716_v4  ;;  %v2848_v54 = vrot.slane %v973_v40, %v7567_v22  ;;  %v2852_v56 = vrot.slane %v973_v40, %v7570_v23  ;;  %v8415_v7 = vpop.permute.xlu1 %6177 }
 0x277   :  { %v5975_v59 = vrot.slane %v5961_v32, %v7591_v27  ;;  %v4118_v61 = vcombine.low %v1720_v12, %v1724_v37  ;;  %v4125_v60 = vrot.slane %v4115_v45, %v7591_v27  ;;  %v4132_v0 = vrot.slane %v4116_v47, %v7591_v27 }
 0x278   :  { %v4139_v24 = vrot.slane %v4117_v48, %v7591_v27  ;;  %v2856_v55 = vrot.slane %v973_v40, %v7573_v17  ;;  %v2860_v2 = vrot.slane %v973_v40, %v7576_v30  ;;  %v2864_v6 = vrot.slane %v973_v40, %v7579_v44 }
 0x279   :  { %v5976_v49 = vcombine.low %v5968_v19, %v5975_v59  ;;  %v4146_v10 = vrot.slane %v4118_v61, %v7591_v27  ;;  %v4147_v11 = vcombine.low %v4125_v60, %v4132_v0  ;;  %v2868_v13 = vrot.slane %v973_v40, %v7582_v46 }
 0x27a   :  { %v2872_v53 = vrot.slane %v973_v40, %v7585_v50  ;;  %v2876_v25 = vrot.slane %v973_v40, %v7588_v52  ;;  %v5879_v26 = vcombine.low %v2848_v54, %v2852_v56  ;;  %v5880_v18 = vcombine.low %v2856_v55, %v2860_v2 }
 0x27b   :  { %6351 = vperm.xlu0 %7009, %v5976_v49   ;;  %v4148_v20 = vcombine.low %v4139_v24, %v4146_v10  ;;  %v4155_v21 = vrot.slane %v4147_v11, %v7591_v27  ;;  %v5881_v14 = vcombine.low %v2864_v6, %v2868_v13  ;;  %v2720_v57 = vrot.slane %v8273_v33, %v7567_v22  ;;  %v8432_v24 = vpop.permute.xlu1 %6270 }
 0x27c   :  { %v5882_v16 = vcombine.low %v2872_v53, %v2876_v25  ;;  %v5889_v29 = vrot.slane %v5879_v26, %v7591_v27  ;;  %v5896_v34 = vrot.slane %v5880_v18, %v7591_v27  ;;  %v2724_v36 = vrot.slane %v8273_v33, %v7570_v23 }
 0x27d   :  { %v4162_v51 = vrot.slane %v4148_v20, %v7591_v27  ;;  %v5903_v38 = vrot.slane %v5881_v14, %v7591_v27  ;;  %v2728_v39 = vrot.slane %v8273_v33, %v7573_v17  ;;  %v2732_v40 = vrot.slane %v8273_v33, %v7576_v30 }
 0x27e   :  { %v5910_v41 = vrot.slane %v5882_v16, %v7591_v27  ;;  %v5911_v42 = vcombine.low %v5889_v29, %v5896_v34  ;;  %v2736_v63 = vrot.slane %v8273_v33, %v7579_v44  ;;  %v2740_v1 = vrot.slane %v8273_v33, %v7582_v46 }
 0x27f   :  { %v4163_v3 = vcombine.low %v4155_v21, %v4162_v51  ;;  %v2744_v4 = vrot.slane %v8273_v33, %v7585_v50  ;;  %v2748_v12 = vrot.slane %v8273_v33, %v7588_v52  ;;  %v5683_v32 = vcombine.low %v2720_v57, %v2724_v36 }
 0x280   :  { %v5912_v37 = vcombine.low %v5903_v38, %v5910_v41  ;;  %v5919_v45 = vrot.slane %v5911_v42, %v7591_v27  ;;  %v5684_v47 = vcombine.low %v2728_v39, %v2732_v40  ;;  %v5685_v19 = vcombine.low %v2736_v63, %v2740_v1  ;;  %v8461_v41 = vpop.permute.xlu1 %6183 }
 0x281   :  { %6240 = vperm.xlu1 %7008, %v4163_v3   ;;  %v5686_v48 = vcombine.low %v2744_v4, %v2748_v12  ;;  %v5693_v54 = vrot.slane %v5683_v32, %v7591_v27  ;;  %v1920_v56 = vrot.slane %v8333_v28, %v7567_v22  ;;  %v1924_v59 = vrot.slane %v8333_v28, %v7570_v23 }
 0x282   :  { %v5926_v61 = vrot.slane %v5912_v37, %v7591_v27  ;;  %v5700_v33 = vrot.slane %v5684_v47, %v7591_v27  ;;  %v5707_v60 = vrot.slane %v5685_v19, %v7591_v27  ;;  %v1928_v0 = vrot.slane %v8333_v28, %v7573_v17 }
 0x283   :  { %v5714_v55 = vrot.slane %v5686_v48, %v7591_v27  ;;  %v1932_v2 = vrot.slane %v8333_v28, %v7576_v30  ;;  %v1936_v6 = vrot.slane %v8333_v28, %v7579_v44  ;;  %v1940_v49 = vrot.slane %v8333_v28, %v7582_v46 }
 0x284   :  { %v5927_v10 = vcombine.low %v5919_v45, %v5926_v61  ;;  %v5715_v11 = vcombine.low %v5693_v54, %v5700_v33  ;;  %v1944_v13 = vrot.slane %v8333_v28, %v7585_v50  ;;  %v1948_v53 = vrot.slane %v8333_v28, %v7588_v52 }
 0x285   :  { %v5716_v25 = vcombine.low %v5707_v60, %v5714_v55  ;;  %v4458_v26 = vcombine.low %v1920_v56, %v1924_v59  ;;  %v4459_v18 = vcombine.low %v1928_v0, %v1932_v2  ;;  %v4460_v20 = vcombine.low %v1936_v6, %v1940_v49 }
 0x286   :  { %6348 = vperm.xlu0 %7009, %v5927_v10   ;;  %v5723_v21 = vrot.slane %v5715_v11, %v7591_v27  ;;  %v4461_v14 = vcombine.low %v1944_v13, %v1948_v53  ;;  %v1760_v57 = vrot.slane %v8297_v58, %v7567_v22  ;;  %v1764_v16 = vrot.slane %v8297_v58, %v7570_v23  ;;  %v8489_v11 = vpop.permute.xlu1 %6180 }
 0x287   :  { %v5730_v29 = vrot.slane %v5716_v25, %v7591_v27  ;;  %v4468_v34 = vrot.slane %v4458_v26, %v7591_v27  ;;  %v4475_v28 = vrot.slane %v4459_v18, %v7591_v27  ;;  %v4482_v36 = vrot.slane %v4460_v20, %v7591_v27 }
 0x288   :  { %v4489_v51 = vrot.slane %v4461_v14, %v7591_v27  ;;  %v1768_v38 = vrot.slane %v8297_v58, %v7573_v17  ;;  %v1772_v39 = vrot.slane %v8297_v58, %v7576_v30  ;;  %v1776_v40 = vrot.slane %v8297_v58, %v7579_v44 }
 0x289   :  { %v5731_v42 = vcombine.low %v5723_v21, %v5730_v29  ;;  %v4490_v63 = vcombine.low %v4468_v34, %v4475_v28  ;;  %v1780_v1 = vrot.slane %v8297_v58, %v7582_v46  ;;  %v1784_v3 = vrot.slane %v8297_v58, %v7585_v50 }
 0x28a   :  { %v4491_v4 = vcombine.low %v4482_v36, %v4489_v51  ;;  %v1788_v12 = vrot.slane %v8297_v58, %v7588_v52  ;;  %v4213_v32 = vcombine.low %v1760_v57, %v1764_v16  ;;  %v4214_v37 = vcombine.low %v1768_v38, %v1772_v39  ;;  %v8477_v58 = vpop.xlane.xlu0 %882 }
 0x28b   :  { %6336 = vperm.xlu1 %7008, %v5731_v42   ;;  %v4498_v45 = vrot.slane %v4490_v63, %v7591_v27  ;;  %v4215_v47 = vcombine.low %v1776_v40, %v1780_v1  ;;  %v2944_v19 = vrot.slane %v8355_v15, %v7567_v22  ;;  %v2948_v48 = vrot.slane %v8355_v15, %v7570_v23 }
 0x28c   :  { %v4505_v54 = vrot.slane %v4491_v4, %v7591_v27  ;;  %v4216_v56 = vcombine.low %v1784_v3, %v1788_v12  ;;  %v4223_v59 = vrot.slane %v4213_v32, %v7591_v27  ;;  %v4230_v61 = vrot.slane %v4214_v37, %v7591_v27  ;;  %v8517_v32 = vpop.permute.xlu1 %6276 }
 0x28d   :  { %v4237_v33 = vrot.slane %v4215_v47, %v7591_v27  ;;  %v2952_v60 = vrot.slane %v8355_v15, %v7573_v17  ;;  %v2956_v0 = vrot.slane %v8355_v15, %v7576_v30  ;;  %v2960_v55 = vrot.slane %v8355_v15, %v7579_v44 }
 0x28e   :  { %v4506_v2 = vcombine.low %v4498_v45, %v4505_v54  ;;  %v4244_v6 = vrot.slane %v4216_v56, %v7591_v27  ;;  %v4245_v49 = vcombine.low %v4223_v59, %v4230_v61  ;;  %v2964_v10 = vrot.slane %v8355_v15, %v7582_v46  ;;  %v979_v38 = vpop.xlane.xlu0 %978 }
 0x28f   :  { %v2968_v13 = vrot.slane %v8355_v15, %v7585_v50  ;;  %v2972_v53 = vrot.slane %v8355_v15, %v7588_v52  ;;  %v6026_v25 = vcombine.low %v2944_v19, %v2948_v48  ;;  %v6027_v26 = vcombine.low %v2952_v60, %v2956_v0 }
 0x290   :  { %6261 = vperm.xlu0 %7009, %v4506_v2   ;;  %v4246_v18 = vcombine.low %v4237_v33, %v4244_v6  ;;  %v4253_v20 = vrot.slane %v4245_v49, %v7591_v27  ;;  %v6028_v21 = vcombine.low %v2960_v55, %v2964_v10  ;;  %v2784_v14 = vrot.slane %v8316_v35, %v7567_v22 }
 0x291   :  { %v6029_v57 = vcombine.low %v2968_v13, %v2972_v53  ;;  %v6036_v16 = vrot.slane %v6026_v25, %v7591_v27  ;;  %v6043_v29 = vrot.slane %v6027_v26, %v7591_v27  ;;  %v2788_v34 = vrot.slane %v8316_v35, %v7570_v23 }
 0x292   :  { %v4260_v15 = vrot.slane %v4246_v18, %v7591_v27  ;;  %v6050_v28 = vrot.slane %v6028_v21, %v7591_v27  ;;  %v2792_v36 = vrot.slane %v8316_v35, %v7573_v17  ;;  %v2796_v51 = vrot.slane %v8316_v35, %v7576_v30  ;;  %v8533_v21 = vpop.permute.xlu1 %6189 }
 0x293   :  { %v6057_v39 = vrot.slane %v6029_v57, %v7591_v27  ;;  %v6058_v40 = vcombine.low %v6036_v16, %v6043_v29  ;;  %v2800_v42 = vrot.slane %v8316_v35, %v7579_v44  ;;  %v2804_v63 = vrot.slane %v8316_v35, %v7582_v46 }
 0x294   :  { %v4261_v1 = vcombine.low %v4253_v20, %v4260_v15  ;;  %v2808_v3 = vrot.slane %v8316_v35, %v7585_v50  ;;  %v2812_v4 = vrot.slane %v8316_v35, %v7588_v52  ;;  %v5781_v12 = vcombine.low %v2784_v14, %v2788_v34 }
 0x295   :  { %v6059_v37 = vcombine.low %v6050_v28, %v6057_v39  ;;  %v6066_v45 = vrot.slane %v6058_v40, %v7591_v27  ;;  %v5782_v47 = vcombine.low %v2792_v36, %v2796_v51  ;;  %v5783_v19 = vcombine.low %v2800_v42, %v2804_v63 }
 0x296   :  { %6246 = vperm.xlu1 %7008, %v4261_v1   ;;  %v5784_v48 = vcombine.low %v2808_v3, %v2812_v4  ;;  %v5791_v54 = vrot.slane %v5781_v12, %v7591_v27  ;;  %v2912_v56 = vrot.slane %v979_v38, %v7567_v22  ;;  %v2916_v59 = vrot.slane %v979_v38, %v7570_v23 }
 0x297   :  { %v6073_v61 = vrot.slane %v6059_v37, %v7591_v27  ;;  %v5798_v35 = vrot.slane %v5782_v47, %v7591_v27  ;;  %v5805_v33 = vrot.slane %v5783_v19, %v7591_v27  ;;  %v2920_v60 = vrot.slane %v979_v38, %v7573_v17  ;;  %v8558_v19 = vpop.permute.xlu1 %6186 }
 0x298   :  { %v5812_v0 = vrot.slane %v5784_v48, %v7591_v27  ;;  %v2924_v55 = vrot.slane %v979_v38, %v7576_v30  ;;  %v2928_v2 = vrot.slane %v979_v38, %v7579_v44  ;;  %v2932_v6 = vrot.slane %v979_v38, %v7582_v46  ;;  %v8560_v48 = vpop.xlane.xlu0 %888 }
 0x299   :  { %v6074_v49 = vcombine.low %v6066_v45, %v6073_v61  ;;  %v5813_v10 = vcombine.low %v5791_v54, %v5798_v35  ;;  %v2936_v13 = vrot.slane %v979_v38, %v7585_v50  ;;  %v2940_v53 = vrot.slane %v979_v38, %v7588_v52 }
 0x29a   :  { %v5814_v25 = vcombine.low %v5805_v33, %v5812_v0  ;;  %v5977_v26 = vcombine.low %v2912_v56, %v2916_v59  ;;  %v5978_v18 = vcombine.low %v2920_v60, %v2924_v55  ;;  %v5979_v20 = vcombine.low %v2928_v2, %v2932_v6 }
 0x29b   :  { %6357 = vperm.xlu0 %7009, %v6074_v49   ;;  %v5821_v14 = vrot.slane %v5813_v10, %v7591_v27  ;;  %v5980_v57 = vcombine.low %v2936_v13, %v2940_v53  ;;  %v1824_v16 = vrot.slane %v8343_v62, %v7567_v22  ;;  %v1828_v51 = vrot.slane %v8343_v62, %v7570_v23 }
 0x29c   :  { %v5828_v29 = vrot.slane %v5814_v25, %v7591_v27  ;;  %v5987_v34 = vrot.slane %v5977_v26, %v7591_v27  ;;  %v5994_v15 = vrot.slane %v5978_v18, %v7591_v27  ;;  %v6001_v28 = vrot.slane %v5979_v20, %v7591_v27 }
 0x29d   :  { %v6008_v36 = vrot.slane %v5980_v57, %v7591_v27  ;;  %v1832_v38 = vrot.slane %v8343_v62, %v7573_v17  ;;  %v1836_v42 = vrot.slane %v8343_v62, %v7576_v30  ;;  %v1840_v63 = vrot.slane %v8343_v62, %v7579_v44  ;;  %v8584_v57 = vpop.permute.xlu1 %6282 }
 0x29e   :  { %v5829_v39 = vcombine.low %v5821_v14, %v5828_v29  ;;  %v6009_v40 = vcombine.low %v5987_v34, %v5994_v15  ;;  %v1844_v3 = vrot.slane %v8343_v62, %v7582_v46  ;;  %v1848_v4 = vrot.slane %v8343_v62, %v7585_v50 }
 0x29f   :  { %v6010_v1 = vcombine.low %v6001_v28, %v6008_v36  ;;  %v1852_v37 = vrot.slane %v8343_v62, %v7588_v52  ;;  %v4311_v45 = vcombine.low %v1824_v16, %v1828_v51  ;;  %v4312_v47 = vcombine.low %v1832_v38, %v1836_v42  ;;  %v985_v16 = vpop.xlane.xlu0 %984 }
 0x2a0   :  { %6342 = vperm.xlu1 %7008, %v5829_v39   ;;  %v6017_v12 = vrot.slane %v6009_v40, %v7591_v27  ;;  %v4313_v56 = vcombine.low %v1840_v63, %v1844_v3  ;;  %v1984_v33 = vrot.slane %v8377_v31, %v7567_v22  ;;  %v1988_v0 = vrot.slane %v8377_v31, %v7570_v23 }
 0x2a1   :  { %v6024_v54 = vrot.slane %v6010_v1, %v7591_v27  ;;  %v4314_v59 = vcombine.low %v1848_v4, %v1852_v37  ;;  %v4321_v61 = vrot.slane %v4311_v45, %v7591_v27  ;;  %v4328_v35 = vrot.slane %v4312_v47, %v7591_v27 }
 0x2a2   :  { %v4335_v62 = vrot.slane %v4313_v56, %v7591_v27  ;;  %v1992_v55 = vrot.slane %v8377_v31, %v7573_v17  ;;  %v1996_v49 = vrot.slane %v8377_v31, %v7576_v30  ;;  %v2000_v10 = vrot.slane %v8377_v31, %v7579_v44 }
 0x2a3   :  { %v6025_v60 = vcombine.low %v6017_v12, %v6024_v54  ;;  %v4342_v2 = vrot.slane %v4314_v59, %v7591_v27  ;;  %v4343_v6 = vcombine.low %v4321_v61, %v4328_v35  ;;  %v2004_v13 = vrot.slane %v8377_v31, %v7582_v46  ;;  %v8599_v3 = vpop.permute.xlu0 %6273  ;;  %v8610_v61 = vpop.permute.xlu1 %6195 }
 0x2a4   :  { %v2008_v53 = vrot.slane %v8377_v31, %v7585_v50  ;;  %v2012_v25 = vrot.slane %v8377_v31, %v7588_v52  ;;  %v4556_v26 = vcombine.low %v1984_v33, %v1988_v0  ;;  %v4557_v14 = vcombine.low %v1992_v55, %v1996_v49 }
 0x2a5   :  { %6354 = vperm.xlu0 %7009, %v6025_v60   ;;  %v4344_v18 = vcombine.low %v4335_v62, %v4342_v2  ;;  %v4351_v20 = vrot.slane %v4343_v6, %v7591_v27  ;;  %v4558_v29 = vcombine.low %v2000_v10, %v2004_v13  ;;  %v1888_v51 = vrot.slane %v8477_v58, %v7567_v22 }
 0x2a6   :  { %v4559_v34 = vcombine.low %v2008_v53, %v2012_v25  ;;  %v4566_v15 = vrot.slane %v4556_v26, %v7591_v27  ;;  %v4573_v36 = vrot.slane %v4557_v14, %v7591_v27  ;;  %v1892_v39 = vrot.slane %v8477_v58, %v7570_v23 }
 0x2a7   :  { %v4358_v28 = vrot.slane %v4344_v18, %v7591_v27  ;;  %v4580_v31 = vrot.slane %v4558_v29, %v7591_v27  ;;  %v1896_v40 = vrot.slane %v8477_v58, %v7573_v17  ;;  %v1900_v1 = vrot.slane %v8477_v58, %v7576_v30 }
 0x2a8   :  { %v4587_v38 = vrot.slane %v4559_v34, %v7591_v27  ;;  %v4588_v63 = vcombine.low %v4566_v15, %v4573_v36  ;;  %v1904_v12 = vrot.slane %v8477_v58, %v7579_v44  ;;  %v1908_v37 = vrot.slane %v8477_v58, %v7582_v46 }
 0x2a9   :  { %v4359_v42 = vcombine.low %v4351_v20, %v4358_v28  ;;  %v1912_v45 = vrot.slane %v8477_v58, %v7585_v50  ;;  %v1916_v54 = vrot.slane %v8477_v58, %v7588_v52  ;;  %v4409_v56 = vcombine.low %v1888_v51, %v1892_v39  ;;  %v8624_v20 = vpop.permute.xlu0 %6174  ;;  %v8628_v51 = vpop.permute.xlu1 %6192 }
 0x2aa   :  { %v4589_v4 = vcombine.low %v4580_v31, %v4587_v38  ;;  %v4596_v47 = vrot.slane %v4588_v63, %v7591_v27  ;;  %v4410_v59 = vcombine.low %v1896_v40, %v1900_v1  ;;  %v4411_v33 = vcombine.low %v1904_v12, %v1908_v37 }
 0x2ab   :  { %6252 = vperm.xlu1 %7008, %v4359_v42   ;;  %v2976_v60 = vrot.slane %v985_v16, %v7567_v22  ;;  %v2980_v62 = vrot.slane %v985_v16, %v7570_v23  ;;  %v4412_v0 = vcombine.low %v1912_v45, %v1916_v54  ;;  %v4419_v55 = vrot.slane %v4409_v56, %v7591_v27 }
 0x2ac   :  { %v4603_v35 = vrot.slane %v4589_v4, %v7591_v27  ;;  %v4426_v2 = vrot.slane %v4410_v59, %v7591_v27  ;;  %v2984_v6 = vrot.slane %v985_v16, %v7573_v17  ;;  %v4433_v58 = vrot.slane %v4411_v33, %v7591_v27 }
 0x2ad   :  { %v2988_v10 = vrot.slane %v985_v16, %v7576_v30  ;;  %v2992_v13 = vrot.slane %v985_v16, %v7579_v44  ;;  %v4440_v53 = vrot.slane %v4412_v0, %v7591_v27  ;;  %v2996_v26 = vrot.slane %v985_v16, %v7582_v46 }
 0x2ae   :  { %v4604_v49 = vcombine.low %v4596_v47, %v4603_v35  ;;  %v4441_v25 = vcombine.low %v4419_v55, %v4426_v2  ;;  %v3000_v18 = vrot.slane %v985_v16, %v7585_v50  ;;  %v3004_v14 = vrot.slane %v985_v16, %v7588_v52  ;;  %v8645_v47 = vpop.permute.xlu0 %6279 }
 0x2af   :  { %v6075_v29 = vcombine.low %v2976_v60, %v2980_v62  ;;  %v6076_v34 = vcombine.low %v2984_v6, %v2988_v10  ;;  %v4442_v15 = vcombine.low %v4433_v58, %v4440_v53  ;;  %v6077_v36 = vcombine.low %v2992_v13, %v2996_v26  ;;  %v8658_v58 = vpop.permute.xlu1 %6288 }
 0x2b0   :  { %6267 = vperm.xlu0 %7009, %v4604_v49   ;;  %v4449_v28 = vrot.slane %v4441_v25, %v7591_v27  ;;  %v6078_v31 = vcombine.low %v3000_v18, %v3004_v14  ;;  %v1952_v40 = vrot.slane %v8560_v48, %v7567_v22  ;;  %v1956_v63 = vrot.slane %v8560_v48, %v7570_v23 }
 0x2b1   :  { %v6085_v38 = vrot.slane %v6075_v29, %v7591_v27  ;;  %v6092_v39 = vrot.slane %v6076_v34, %v7591_v27  ;;  %v4456_v42 = vrot.slane %v4442_v15, %v7591_v27  ;;  %v6099_v16 = vrot.slane %v6077_v36, %v7591_v27 }
 0x2b2   :  { %v1960_v1 = vrot.slane %v8560_v48, %v7573_v17  ;;  %v6106_v4 = vrot.slane %v6078_v31, %v7591_v27  ;;  %v1964_v37 = vrot.slane %v8560_v48, %v7576_v30  ;;  %v1968_v45 = vrot.slane %v8560_v48, %v7579_v44  ;;  %v8665_v25 = vpop.permute.xlu0 %6285 }
 0x2b3   :  { %v6107_v12 = vcombine.low %v6085_v38, %v6092_v39  ;;  %v4457_v54 = vcombine.low %v4449_v28, %v4456_v42  ;;  %v1972_v56 = vrot.slane %v8560_v48, %v7582_v46  ;;  %v1976_v59 = vrot.slane %v8560_v48, %v7585_v50 }
 0x2b4   :  { %v1980_v35 = vrot.slane %v8560_v48, %v7588_v52  ;;  %v6108_v33 = vcombine.low %v6099_v16, %v6106_v4  ;;  %v4507_v62 = vcombine.low %v1952_v40, %v1956_v63  ;;  %v4508_v0 = vcombine.low %v1960_v1, %v1964_v37  ;;  %v8683_v37 = vpop.permute.xlu1 %6198 }
 0x2b5   :  { %v6115_v60 = vrot.slane %v6107_v12, %v7591_v27  ;;  %6258 = vperm.xlu1 %7008, %v4457_v54   ;;  %v4509_v55 = vcombine.low %v1968_v45, %v1972_v56  ;;  %v3008_v6 = vrot.slane %v8391_v9, %v7567_v22  ;;  %v3012_v49 = vrot.slane %v8391_v9, %v7570_v23 }
 0x2b6   :  { %v4510_v2 = vcombine.low %v1976_v59, %v1980_v35  ;;  %v6122_v10 = vrot.slane %v6108_v33, %v7591_v27  ;;  %v4517_v48 = vrot.slane %v4507_v62, %v7591_v27  ;;  %v4524_v13 = vrot.slane %v4508_v0, %v7591_v27  ;;  %v8692_v59 = vpop.permute.xlu0 %6291 }
 0x2b7   :  { %v3016_v53 = vrot.slane %v8391_v9, %v7573_v17  ;;  %v4531_v26 = vrot.slane %v4509_v55, %v7591_v27  ;;  %v3020_v14 = vrot.slane %v8391_v9, %v7576_v30  ;;  %v3024_v29 = vrot.slane %v8391_v9, %v7579_v44 }
 0x2b8   :  { %v4538_v18 = vrot.slane %v4510_v2, %v7591_v27  ;;  %v6123_v34 = vcombine.low %v6115_v60, %v6122_v10  ;;  %v4539_v15 = vcombine.low %v4517_v48, %v4524_v13  ;;  %v3028_v28 = vrot.slane %v8391_v9, %v7582_v46 }
 0x2b9   :  { %v3032_v36 = vrot.slane %v8391_v9, %v7585_v50  ;;  %v3036_v38 = vrot.slane %v8391_v9, %v7588_v52  ;;  %v6124_v39 = vcombine.low %v3008_v6, %v3012_v49  ;;  %v6125_v40 = vcombine.low %v3016_v53, %v3020_v14 }
 0x2ba   :  { %v4540_v31 = vcombine.low %v4531_v26, %v4538_v18  ;;  %6360 = vperm.xlu0 %7009, %v6123_v34   ;;  %v4547_v42 = vrot.slane %v4539_v15, %v7591_v27  ;;  %v6126_v16 = vcombine.low %v3024_v29, %v3028_v28  ;;  %v2496_v9 = vrot.slane %v7947_v43, %v7567_v22  ;;  %v8712_v26 = vpop.permute.xlu0 %6201 }
 0x2bb   :  { %v6127_v1 = vcombine.low %v3032_v36, %v3036_v38  ;;  %v6134_v4 = vrot.slane %v6124_v39, %v7591_v27  ;;  %v6141_v12 = vrot.slane %v6125_v40, %v7591_v27  ;;  %v2500_v54 = vrot.slane %v7947_v43, %v7570_v23 }
 0x2bc   :  { %v4554_v63 = vrot.slane %v4540_v31, %v7591_v27  ;;  %v6148_v45 = vrot.slane %v6126_v16, %v7591_v27  ;;  %v2504_v56 = vrot.slane %v7947_v43, %v7573_v17  ;;  %v2508_v62 = vrot.slane %v7947_v43, %v7576_v30 }
 0x2bd   :  { %v6155_v33 = vrot.slane %v6127_v1, %v7591_v27  ;;  %v6156_v60 = vcombine.low %v6134_v4, %v6141_v12  ;;  %v2512_v0 = vrot.slane %v7947_v43, %v7579_v44  ;;  %v2516_v22 = vrot.slane %v7947_v43, %v7582_v46  ;;  %v8707_v44 = vpop.permute.xlu1 %6294 }
 0x2be   :  { %v4555_v35 = vcombine.low %v4547_v42, %v4554_v63  ;;  %v2520_v17 = vrot.slane %v7947_v43, %v7585_v50  ;;  %v2524_v2 = vrot.slane %v7947_v43, %v7588_v52  ;;  %v5340_v6 = vcombine.low %v2496_v9, %v2500_v54  ;;  %v8719_v15 = vpop.permute.xlu0 %6297 }
 0x2bf   :  { %v6157_v23 = vcombine.low %v6148_v45, %v6155_v33  ;;  %v6164_v55 = vrot.slane %v6156_v60, %v7591_v27  ;;  %v5341_v49 = vcombine.low %v2504_v56, %v2508_v62  ;;  %v5342_v10 = vcombine.low %v2512_v0, %v2516_v22 }
 0x2c0   :  { %6264 = vperm.xlu1 %7008, %v4555_v35   ;;  %v5343_v48 = vcombine.low %v2520_v17, %v2524_v2  ;;  %v5350_v46 = vrot.slane %v5340_v6, %v7591_v27 }
 0x2c1   :  { %v6171_v30 = vrot.slane %v6157_v23, %v7591_v27  ;;  %v5357_v13 = vrot.slane %v5341_v49, %v7591_v27  ;;  %v5364_v53 = vrot.slane %v5342_v10, %v7591_v27  ;;  %v8717_v34 = vpop.permute.xlu1 %6303  ;;  %v8774_v49 = vand.u32 127, %v9025_v8 }
 0x2c2   :  { %v5371_v18 = vrot.slane %v5343_v48, %v7591_v27  ;;  %v8723_v31 = vpop.permute.xlu0 %6207 }
 0x2c3   :  { %v6172_v50 = vcombine.low %v6164_v55, %v6171_v30  ;;  %v5372_v52 = vcombine.low %v5350_v46, %v5357_v13  ;;  %v6371_v30 = vadd.s32 4294967288, %v8774_v49  ;;  %v6378_v48 = vadd.s32 4294967280, %v8774_v49 }
 0x2c4   :  { %v5373_v43 = vcombine.low %v5364_v53, %v5371_v18  ;;  %v6385_v18 = vadd.s32 4294967272, %v8774_v49 }
 0x2c5   :  { %6363 = vperm.xlu0 %7009, %v6172_v50   ;;  %v5380_v14 = vrot.slane %v5372_v52, %v7591_v27  ;;  %v8721_v36 = vpop.permute.xlu1 %6204  ;;  %v8785_v53 = vsub.s32 %v6371_v30, %v7564_v5  ;;  %v6369_v50 = vsub.s32 %v8774_v49, %v7564_v5  ;;  %v8791_v52 = vsub.s32 %v6378_v48, %v7564_v5 }
 0x2c6   :  { %v5387_v29 = vrot.slane %v5373_v43, %v7591_v27  ;;  %v8725_v38 = vpop.permute.xlu0 %6213  ;;  %v6399_v43 = vadd.s32 4294967256, %v8774_v49  ;;  %v8806_v48 = vsub.s32 %v6385_v18, %v7564_v5  ;;  %v6413_v18 = vadd.s32 4294967240, %v8774_v49 }
 0x2c7   :  { %9029 = vst [vmem:[#allocation6_spill] sm:$0xff] %v8725_v38  ;;  %v6370_v30 = vrot.slane %v8624_v20, %v6369_v50  ;;  %v6558_v8 = vrot.slane %v8432_v24, %v6369_v50 }
 0x2c8   :  { %v5388_v28 = vcombine.low %v5380_v14, %v5387_v29  ;;  %v6392_v14 = vadd.s32 4294967264, %v8774_v49  ;;  %v8813_v20 = vsub.s32 %v6399_v43, %v7564_v5  ;;  %v6389_v38 = vrot.slane %v8461_v41, %v8806_v48 }
 0x2c9   :  { %v8727_v39 = vpop.permute.xlu1 %6300 }
 0x2ca   :  { %6315 = vperm.xlu1 %7008, %v5388_v28   ;;  %v8729_v40 = vpop.permute.xlu0 %6219  ;;  %v6375_v28 = vrot.slane %v8415_v7, %v8785_v53  ;;  %v6567_v7 = vrot.slane %v8517_v32, %v8791_v52  ;;  %v8816_v24 = vsub.s32 %v6392_v14, %v7564_v5  ;;  %v6582_v41 = vrot.slane %v8665_v25, %v8813_v20 }
 0x2cb   :  { %9030 = vst [vmem:[#allocation7_spill] sm:$0xff] %v8729_v40  ;;  %v6562_v40 = vrot.slane %v8599_v3, %v8785_v53 }
 0x2cd   :  { %v8731_v42 = vpop.permute.xlu1 %6309  ;;  %v6563_v3 = vsel %vm6376_vm2, %v6562_v40, %v6558_v8  ;;  %v6396_v8 = vrot.slane %v8558_v19, %v8816_v24  ;;  %v6427_v40 = vadd.s32 4294967224, %v8774_v49  ;;  %v6406_v19 = vadd.s32 4294967248, %v8774_v49 }
 0x2ce   :  { %9031 = vst [vmem:[#allocation8_spill] sm:$0xff] %v8731_v42  ;;  %v8733_v16 = vpop.permute.xlu0 %6225  ;;  %v6377_v42 = vsel %vm6376_vm2, %v6375_v28, %v6370_v30  ;;  %v6568_v14 = vsel %vm6383_vm3, %v6567_v7, %v6563_v3  ;;  %v6403_v28 = vrot.slane %v8533_v21, %v8813_v20  ;;  %v8843_v21 = vsub.s32 %v6413_v18, %v7564_v5 }
 0x2cf   :  { %v6483_v25 = vrot.slane %v8733_v16, %v8785_v53 }
 0x2d1   :  { %v8735_v63 = vpop.permute.xlu1 %6210 }
 0x2d2   :  { %v8737_v1 = vpop.permute.xlu0 %6321 }
 0x2d5   :  { %v8739_v4 = vpop.permute.xlu1 %6306 }
 0x2d6   :  { %v8741_v12 = vpop.permute.xlu0 %6231 }
 0x2d9   :  { %v8743_v45 = vpop.permute.xlu1 %6216 }
 0x2da   :  { %v8745_v9 = vpop.permute.xlu0 %6327 }
 0x2dd   :  { %v8747_v54 = vpop.permute.xlu1 %6312 }
 0x2de   :  { %9032 = vst [vmem:[#allocation9_spill] sm:$0xff] %v8747_v54  ;;  %v8749_v56 = vpop.permute.xlu0 %6237  ;;  %v6382_v54 = vrot.slane %v8489_v11, %v8791_v52  ;;  %v6572_v11 = vrot.slane %v8645_v47, %v8806_v48  ;;  %v6577_v47 = vrot.slane %v8584_v57, %v8816_v24 }
 0x2e0   :  { %v6384_v32 = vsel %vm6383_vm3, %v6382_v54, %v6377_v42  ;;  %v6573_v3 = vsel %vm6390_vm4, %v6572_v11, %v6568_v14  ;;  %v6641_v11 = vrot.slane %v8737_v1, %v8785_v53  ;;  %v6420_v1 = vadd.s32 4294967232, %v8774_v49 }
 0x2e1   :  { %v8751_v35 = vpop.permute.xlu1 %6222  ;;  %v6391_v54 = vsel %vm6390_vm4, %v6389_v38, %v6384_v32  ;;  %v8854_v38 = vsub.s32 %v6427_v40, %v7564_v5  ;;  %v6578_v32 = vsel %vm6397_vm5, %v6577_v47, %v6573_v3  ;;  %v6417_v40 = vrot.slane %v8610_v61, %v8843_v21 }
 0x2e2   :  { %v8753_v33 = vpop.permute.xlu0 %6333  ;;  %v6479_v42 = vrot.slane %v8751_v35, %v6369_v50  ;;  %v6398_v35 = vsel %vm6397_vm5, %v6396_v8, %v6391_v54  ;;  %v6493_v53 = vrot.slane %v8741_v12, %v8806_v48  ;;  %v6651_v12 = vrot.slane %v8745_v9, %v8806_v48 }
 0x2e3   :  { %v6405_v54 = vsel %vm6404_vm6, %v6403_v28, %v6398_v35  ;;  %v6602_v61 = vrot.slane %v8719_v15, %v8854_v38  ;;  %v6583_v28 = vsel %vm6404_vm6, %v6582_v41, %v6578_v32  ;;  %v6503_v35 = vrot.slane %v8749_v56, %v8813_v20 }
 0x2e4   :  { %v6484_v16 = vsel %vm6376_vm2, %v6483_v25, %v6479_v42  ;;  %v6431_v42 = vrot.slane %v8712_v26, %v8854_v38  ;;  %v6434_v48 = vadd.s32 4294967216, %v8774_v49 }
 0x2e5   :  { %v8755_v60 = vpop.permute.xlu1 %6318 }
 0x2e6   :  { %v8757_v62 = vpop.permute.xlu0 %6243  ;;  %v6637_v57 = vrot.slane %v8755_v60, %v6369_v50  ;;  %v6592_v60 = vrot.slane %v8692_v59, %v8843_v21  ;;  %v6409_v50 = vsub.s32 %v6406_v19, %v7564_v5 }
 0x2e8   :  { %v6642_v47 = vsel %vm6376_vm2, %v6641_v11, %v6637_v57  ;;  %v6410_v26 = vrot.slane %v8628_v51, %v6409_v50 }
 0x2e9   :  { %v8759_v0 = vpop.permute.xlu1 %6228 }
 0x2ea   :  { %v8761_v22 = vpop.permute.xlu0 %6339  ;;  %v6488_v7 = vrot.slane %v8759_v0, %v8791_v52  ;;  %v6441_v0 = vadd.s32 4294967208, %v8774_v49 }
 0x2ec   :  { %v6489_v8 = vsel %vm6383_vm3, %v6488_v7, %v6484_v16  ;;  %v8888_v7 = vsub.s32 %v6441_v0, %v7564_v5  ;;  %v6455_v0 = vadd.s32 4294967192, %v8774_v49 }
 0x2ed   :  { %v8763_v23 = vpop.permute.xlu1 %6324  ;;  %v6494_v3 = vsel %vm6390_vm4, %v6493_v53, %v6489_v8 }
 0x2ee   :  { %v8765_v55 = vpop.permute.xlu0 %6249  ;;  %v6646_v18 = vrot.slane %v8763_v23, %v8791_v52  ;;  %v6612_v11 = vrot.slane %v8717_v34, %v8888_v7 }
 0x2f0   :  { %v6647_v19 = vsel %vm6383_vm3, %v6646_v18, %v6642_v47 }
 0x2f1   :  { %v8767_v17 = vpop.permute.xlu1 %6234  ;;  %v6652_v18 = vsel %vm6390_vm4, %v6651_v12, %v6647_v19 }
 0x2f2   :  { %v8769_v2 = vpop.permute.xlu0 %6345  ;;  %v6498_v23 = vrot.slane %v8767_v17, %v8816_v24 }
 0x2f4   :  { %v6499_v25 = vsel %vm6397_vm5, %v6498_v23, %v6494_v3  ;;  %v6448_v23 = vadd.s32 4294967200, %v8774_v49 }
 0x2f5   :  { %v8771_v6 = vpop.permute.xlu1 %6330  ;;  %v6504_v56 = vsel %vm6404_vm6, %v6503_v35, %v6499_v25 }
 0x2f6   :  { %v8776_v10 = vpop.permute.xlu0 %6255  ;;  %v6656_v17 = vrot.slane %v8771_v6, %v8816_v24  ;;  %v6587_v6 = vrot.slane %v8658_v58, %v6409_v50  ;;  %v6423_v24 = vsub.s32 %v6420_v1, %v7564_v5  ;;  %v6445_v58 = vrot.slane %v8723_v31, %v8888_v7 }
 0x2f7   :  { %v6513_v31 = vrot.slane %v8757_v62, %v8843_v21  ;;  %v6533_v59 = vrot.slane %v8776_v10, %v8888_v7 }
 0x2f8   :  { %v6657_v51 = vsel %vm6397_vm5, %v6656_v17, %v6652_v18  ;;  %v6424_v8 = vrot.slane %v8683_v37, %v6423_v24  ;;  %v6588_v47 = vsel %vm6411_vm7, %v6587_v6, %v6583_v28  ;;  %v6671_v37 = vrot.slane %v8761_v22, %v8843_v21 }
 0x2f9   :  { %v6597_v17 = vrot.slane %v8707_v44, %v6423_v24  ;;  %v6523_v28 = vrot.slane %v8765_v55, %v8854_v38  ;;  %v6593_v6 = vsel %vm6418_vm8, %v6592_v60, %v6588_v47 }
 0x2fa   :  { %v8782_v13 = vpop.permute.xlu0 %6351 }
 0x2fb   :  { %v6598_v35 = vsel %vm6425_vm9, %v6597_v17, %v6593_v6  ;;  %v9037_v6 = vld [vmem:[#allocation5_spill] sm:$0xff] }
 0x2fc   :  { %v6603_v10 = vsel %vm6432_vm10, %v6602_v61, %v6598_v35  ;;  %v9033_v61 = vld [vmem:[#allocation6_spill] sm:$0xff] }
 0x300   :  { %v8780_v46 = vpop.permute.xlu1 %6240 }
 0x301   :  { %v6508_v57 = vrot.slane %v8780_v46, %v6409_v50  ;;  %v6661_v46 = vrot.slane %v8753_v33, %v8813_v20  ;;  %v6437_v20 = vsub.s32 %v6434_v48, %v7564_v5 }
 0x303   :  { %v6509_v16 = vsel %vm6411_vm7, %v6508_v57, %v6504_v56  ;;  %v6662_v33 = vsel %vm6404_vm6, %v6661_v46, %v6657_v51  ;;  %v6438_v25 = vrot.slane %v8721_v36, %v6437_v20  ;;  %v6451_v57 = vsub.s32 %v6448_v23, %v7564_v5 }
 0x304   :  { %v6458_v46 = vsub.s32 %v6455_v0, %v7564_v5 }
 0x305   :  { %v8801_v27 = vpop.permute.xlu0 %6348  ;;  %v6452_v48 = vrot.slane %v8735_v63, %v6451_v57  ;;  %v6617_v15 = vrot.slane %v8739_v4, %v6451_v57 }
 0x30a   :  { %v8795_v29 = vpop.permute.xlu1 %6336 }
 0x30b   :  { %v6666_v41 = vrot.slane %v8795_v29, %v6409_v50  ;;  %v6412_v50 = vsel %vm6411_vm7, %v6410_v26, %v6405_v54  ;;  %v6514_v54 = vsel %vm6418_vm8, %v6513_v31, %v6509_v16  ;;  %v6459_v31 = vrot.slane %v9033_v61, %v6458_v46 }
 0x30c   :  { %v6419_v19 = vsel %vm6418_vm8, %v6417_v40, %v6412_v50  ;;  %v6462_v40 = vadd.s32 4294967184, %v8774_v49 }
 0x30d   :  { %v6667_v1 = vsel %vm6411_vm7, %v6666_v41, %v6662_v33 }
 0x30e   :  { %v6672_v22 = vsel %vm6418_vm8, %v6671_v37, %v6667_v1  ;;  %v6465_v51 = vsub.s32 %v6462_v40, %v7564_v5 }
 0x30f   :  { %v8834_v30 = vpop.permute.xlu0 %6261 }
 0x310   :  { %v6543_v0 = vrot.slane %v8834_v30, %v6458_v46 }
 0x315   :  { %v8826_v43 = vpop.permute.xlu1 %6246 }
 0x316   :  { %v6518_v29 = vrot.slane %v8826_v43, %v6423_v24  ;;  %v6469_v43 = vadd.s32 4294967176, %v8774_v49 }
 0x318   :  { %v6519_v12 = vsel %vm6425_vm9, %v6518_v29, %v6514_v54 }
 0x319   :  { %v6524_v55 = vsel %vm6432_vm10, %v6523_v28, %v6519_v12 }
 0x31a   :  { %v8871_v52 = vpop.permute.xlu0 %6357 }
 0x31f   :  { %v8863_v14 = vpop.permute.xlu1 %6342 }
 0x320   :  { %v6676_v53 = vrot.slane %v8863_v14, %v6423_v24  ;;  %v6426_v14 = vsel %vm6425_vm9, %v6424_v8, %v6419_v19  ;;  %v6681_v24 = vrot.slane %v8769_v2, %v8854_v38  ;;  %v6466_v38 = vrot.slane %v8743_v45, %v6465_v51 }
 0x321   :  { %v6433_v36 = vsel %vm6432_vm10, %v6431_v42, %v6426_v14  ;;  %v6686_v42 = vrot.slane %v8801_v27, %v6437_v20 }
 0x322   :  { %v6677_v44 = vsel %vm6425_vm9, %v6676_v53, %v6672_v22  ;;  %v6440_v2 = vsel %vm6439_vm11, %v6438_v25, %v6433_v36  ;;  %v9035_v53 = vld [vmem:[#allocation9_spill] sm:$0xff]  ;;  %v9038_v36 = vlaneseq }
 0x323   :  { %v6682_v21 = vsel %vm6432_vm10, %v6681_v24, %v6677_v44  ;;  %v6447_v50 = vsel %vm6446_vm12, %v6445_v58, %v6440_v2  ;;  %v9034_v58 = vld [vmem:[#allocation8_spill] sm:$0xff]  ;;  %v6627_v47 = vrot.slane %v9035_v53, %v6465_v51 }
 0x324   :  { %v8905_v32 = vpop.permute.xlu0 %6354  ;;  %v6687_v16 = vsel %vm6439_vm11, %v6686_v42, %v6682_v21  ;;  %v6454_v8 = vsel %vm6453_vm13, %v6452_v48, %v6447_v50  ;;  %v6622_v23 = vrot.slane %v9034_v58, %v6458_v46  ;;  %vm6739_vm1 = vcmp.lt.s32.totalorder %v9038_v36, 512 }
 0x325   :  { %v6696_v30 = vrot.slane %v8905_v32, %v6451_v57  ;;  %v6461_v45 = vsel %vm6460_vm14, %v6459_v31, %v6454_v8  ;;  %v6701_v32 = vrot.slane %v8871_v52, %v6458_v46 }
 0x326   :  { %v6468_v54 = vsel %vm6467_vm15, %v6466_v38, %v6461_v45 }
 0x32a   :  { %v6253_v9 = vpop.permute.xlu1 %6252 }
 0x32b   :  { %v6528_v3 = vrot.slane %v6253_v9, %v6437_v20  ;;  %v6607_v9 = vrot.slane %v8727_v39, %v6437_v20  ;;  %v6472_v39 = vsub.s32 %v6469_v43, %v7564_v5  ;;  %v6691_v5 = vrot.slane %v8782_v13, %v8888_v7 }
 0x32d   :  { %v6529_v18 = vsel %vm6439_vm11, %v6528_v3, %v6524_v55  ;;  %v6608_v27 = vsel %vm6439_vm11, %v6607_v9, %v6603_v10  ;;  %v6692_v33 = vsel %vm6446_vm12, %v6691_v5, %v6687_v16 }
 0x32e   :  { %v6534_v56 = vsel %vm6446_vm12, %v6533_v59, %v6529_v18  ;;  %v6613_v13 = vsel %vm6446_vm12, %v6612_v11, %v6608_v27  ;;  %v6697_v34 = vsel %vm6453_vm13, %v6696_v30, %v6692_v33  ;;  %v9036_v11 = vld [vmem:[#allocation7_spill] sm:$0xff] }
 0x32f   :  { %v8934_v26 = vpop.permute.xlu0 %6267  ;;  %v6618_v37 = vsel %vm6453_vm13, %v6617_v15, %v6613_v13 }
 0x330   :  { %v6553_v43 = vrot.slane %v8934_v26, %v6472_v39  ;;  %v6623_v14 = vsel %vm6460_vm14, %v6622_v23, %v6618_v37  ;;  %v6702_v26 = vsel %vm6460_vm14, %v6701_v32, %v6697_v34 }
 0x331   :  { %v6628_v22 = vsel %vm6467_vm15, %v6627_v47, %v6623_v14 }
 0x334   :  { %v6259_v62 = vpop.permute.xlu1 %6258 }
 0x335   :  { %v6538_v49 = vrot.slane %v6259_v62, %v6451_v57  ;;  %v6473_v62 = vrot.slane %v9036_v11, %v6472_v39 }
 0x337   :  { %v6539_v63 = vsel %vm6453_vm13, %v6538_v49, %v6534_v56  ;;  %v6475_v3 = vsel %vm6474_vm0, %v6473_v62, %v6468_v54 }
 0x338   :  { %v6544_v20 = vsel %vm6460_vm14, %v6543_v0, %v6539_v63 }
 0x339   :  { %v6361_v41 = vpop.permute.xlu0 %6360 }
 0x33a   :  { %v6706_v7 = vrot.slane %v6361_v41, %v6465_v51 }
 0x33c   :  { %v6707_v25 = vsel %vm6467_vm15, %v6706_v7, %v6702_v26 }
 0x33f   :  { %v6265_v60 = vpop.permute.xlu1 %6264 }
 0x340   :  { %v6548_v29 = vrot.slane %v6265_v60, %v6465_v51 }
 0x342   :  { %v6549_v4 = vsel %vm6467_vm15, %v6548_v29, %v6544_v20 }
 0x343   :  { %v6554_v19 = vsel %vm6474_vm0, %v6553_v43, %v6549_v4 }
 0x344   :  { %v6364_v1 = vpop.permute.xlu0 %6363  ;;  %v6713_v57 = vcombine.low %v6475_v3, %v6554_v19 }
 0x345   :  { %v6711_v17 = vrot.slane %v6364_v1, %v6472_v39 }
 0x346   :  { %v6721_v24 = vrot.slane %v6713_v57, %v9037_v6 }
 0x347   :  { %v6712_v40 = vsel %vm6474_vm0, %v6711_v17, %v6707_v25 }
 0x349   :  { %v6316_v12 = vpop.permute.xlu1 %6315 }
 0x34a   :  { %v6632_v28 = vrot.slane %v6316_v12, %v6472_v39 }
 0x34c   :  { %v6633_v52 = vsel %vm6474_vm0, %v6632_v28, %v6628_v22 }
 0x34d   :  { %v6714_v44 = vcombine.low %v6633_v52, %v6712_v40 }
 0x34f   :  { %v6728_v55 = vrot.slane %v6714_v44, %v9037_v6 }
 0x351   :  { %v6729_v35 = vcombine.low %v6721_v24, %v6728_v55 }
 0x353   :  { %v6736_v18 = vrot.slane %v6729_v35, %v9037_v6 }
 0x355   :  { %6741 = vst.msk [vmem:[#allocation2] sm:$0xf] %vm6739_vm1, %v6736_v18 }
 0x356   :  { %7021 = shalt.err (!%p7018_p4)
}
 0x357   :  { %s7022_s13 = scalar_lea.hbm %s9024_s3, 64 }
 0x358   :  { %p7023_p5 = scmp.ne.s32.totalorder %s9024_s3, %s7022_s13  ;;  %p7026_p6 = scmp.lt.u32.totalorder %s7022_s13, %s9024_s3 }
 0x35a   :  { %p7028_p7 = pnand %p7026_p6, %p7023_p5 }
 0x35c   :  { %7031 = shalt.err (!%p7028_p7)
}
 0x35d   :  { %6751 = dma.vmem_to_hbm [thread:$0]  %s6749_s2, 64, %s9024_s3, [#allocation3]  }
 0x35e   :  { %7032 = dma.done.wait [#allocation3], 64  }
 0x35f   :  { %7033 = vsyncadd [#allocation3], 4294967232 }
 0x360   :  { %6755 = vsyncpa [#allocation3], 1 }

</bundles_post_ra>
